<compile_context>
chip_gen: v7x
topology: tpu7x:2x2x1
jax: 0.10.0
libtpu: 0.0.40
codegen_flags: <defaults>
</compile_context>

<pallas_src>
import functools

import jax
import jax.numpy as jnp
from jax.experimental import pallas as pl
from jax.experimental.pallas import tpu as pltpu

EPS = 1e-5
_SQRT_HALF = 0.7071067811865476  # 1/sqrt(2)
_LANE = 128
_VMEM_LIMIT = 32 * 1024 * 1024   # safe on v5e/v6e (128 MiB) and v7x (64 MiB)


# ------------------------------------------------------------------ helpers --
def _round_up(x, m):
    return (x + m - 1) // m * m


def _gelu(x):
    return 0.5 * x * (1.0 + jax.lax.erf(x * _SQRT_HALF))


def _pad_channels(x, target):
    pad = target - x.shape[-1]
    if pad == 0:
        return x
    return jnp.pad(x, [(0, 0)] * (x.ndim - 1) + [(0, pad)])


def _pad_conv_w(w, cpi, cpo):
    _, _, ci, co = w.shape
    return jnp.pad(w, ((0, 0), (0, 0), (0, cpi - ci), (0, cpo - co)))


def _choose_tile_rows(h, w, c, budget_bytes=8 * 1024 * 1024):
    """Largest divisor of H whose double-buffered blocks fit the VMEM budget."""
    per_row = ((w + 2) * c + 2 * w * c) * 4          # window + out + residual, f32
    th = max(1, min(h, budget_bytes // (2 * per_row)))
    while h % th:
        th -= 1
    return th


def _make_windows(x_nhwc, th):
    """(N,H,W,C) -> reflect pad -> overlapping row windows (N*nT, th+2, W+2, C).

    Halo rows are duplicated here by XLA (~(th+2)/th extra traffic, vs 9x for
    im2col).
    """
    # TODO(synk): replace this wrapper-side window materialization with manual
    # in-kernel halo DMA (memory_space=pl.ANY + make_async_copy) to remove the
    # remaining extra HBM pass.
    n, h, w, c = x_nhwc.shape
    xp = jnp.pad(x_nhwc, ((0, 0), (1, 1), (1, 1), (0, 0)), mode="reflect")
    nt = h // th
    wins = jnp.stack([xp[:, t * th: t * th + th + 2] for t in range(nt)], axis=1)
    return wins.reshape(n * nt, th + 2, w + 2, c)


def _compiler_params(n_axes):
    return pltpu.CompilerParams(
        dimension_semantics=("parallel",) * n_axes,   # shard grid across TCs on v7x
        vmem_limit_bytes=_VMEM_LIMIT,
    )


# ------------------------------------------------------------------ kernels --
def _partial_stats_kernel(x_ref, o_ref, *, block_rows, total_rows):
    """Per-tile per-channel sum / sum-of-squares (BatchNorm pass 1)."""
    x = x_ref[...]                                            # (tm, C)
    i = pl.program_id(0)
    row = i * block_rows + jax.lax.broadcasted_iota(jnp.int32, x.shape, 0)
    x = jnp.where(row < total_rows, x, 0.0)                   # mask OOB rows of last tile
    c = x.shape[1]
    o_ref[:, 0:1, :] = jnp.sum(x, axis=0, keepdims=True).reshape(1, 1, c)
    o_ref[:, 1:2, :] = jnp.sum(x * x, axis=0, keepdims=True).reshape(1, 1, c)


def _bn_act_conv3x3(win_ref, w_ref, b_ref, scale_ref, shift_ref):
    """Fused BN(folded scale/shift) -> exact GELU -> 3x3 conv on one halo tile.

    win_ref   : (1, TH+2, W+2, Cin) f32   reflect-padded halo window
    w_ref     : (9, Cin, Cout)      bf16
    b_ref     : (1, Cout)           f32
    scale/shift : (1, Cin)          f32
    returns (TH*W, Cout) f32 accumulator and (TH, W, Cout) dims.
    """
    _, thp2, wp2, cpi = win_ref.shape
    th, w = thp2 - 2, wp2 - 2
    cpo = w_ref.shape[2]

    a = win_ref[...].reshape(thp2, wp2, cpi)
    a = a * scale_ref[...].reshape(1, 1, cpi) + shift_ref[...].reshape(1, 1, cpi)
    a = _gelu(a).astype(jnp.bfloat16)                 # cast right before the MXU

    wv = w_ref[...]                                   # (9, Cin, Cout) resident in VMEM
    acc = None
    for k in range(9):                                # unrolled 9-tap accumulation
        dy, dx = divmod(k, 3)
        lhs = a[dy:dy + th, dx:dx + w, :].reshape(th * w, cpi)
        p = jnp.dot(lhs, wv[k], preferred_element_type=jnp.float32)
        acc = p if acc is None else acc + p
    return acc + b_ref[...], th, w, cpo


def _conv1_kernel(win_ref, w_ref, b_ref, scale_ref, shift_ref, h_ref, pstat_ref):
    acc, th, w, cpo = _bn_act_conv3x3(win_ref, w_ref, b_ref, scale_ref, shift_ref)
    h_ref[...] = acc.reshape(1, th, w, cpo)
    # BN2 partial statistics, fused for free from the f32 accumulator.
    pstat_ref[:, 0:1, :] = jnp.sum(acc, axis=0, keepdims=True).reshape(1, 1, cpo)
    pstat_ref[:, 1:2, :] = jnp.sum(acc * acc, axis=0, keepdims=True).reshape(1, 1, cpo)


def _conv2_residual_proj_kernel(win_ref, w_ref, b_ref, scale_ref, shift_ref,
                                x_ref, wsc_ref, bsc_ref, o_ref):
    acc, th, w, cpo = _bn_act_conv3x3(win_ref, w_ref, b_ref, scale_ref, shift_ref)
    cxi = x_ref.shape[3]
    xs = x_ref[...].reshape(th * w, cxi).astype(jnp.bfloat16)
    sc = jnp.dot(xs, wsc_ref[...], preferred_element_type=jnp.float32) + bsc_ref[...]
    o_ref[...] = (acc + sc).reshape(1, th, w, cpo)


def _conv2_residual_id_kernel(win_ref, w_ref, b_ref, scale_ref, shift_ref,
                              x_ref, o_ref):
    acc, th, w, cpo = _bn_act_conv3x3(win_ref, w_ref, b_ref, scale_ref, shift_ref)
    o_ref[...] = acc.reshape(1, th, w, cpo) + x_ref[...]   # no eye-matmul for identity


# ----------------------------------------------------------- pallas wrappers --
def bn_batch_stats(x2d, tile_rows=1024):
    """Global per-channel mean / biased var over the pixel axis (tiled)."""
    m, c = x2d.shape
    tm = m if m <= tile_rows else (tile_rows // 8) * 8
    nblk = pl.cdiv(m, tm)
    kernel = functools.partial(_partial_stats_kernel, block_rows=tm, total_rows=m)
    psums = pl.pallas_call(
        kernel,
        out_shape=jax.ShapeDtypeStruct((nblk, 2, c), jnp.float32),
        grid=(nblk,),
        in_specs=[pl.BlockSpec((tm, c), lambda i: (i, 0))],
        out_specs=pl.BlockSpec((1, 2, c), lambda i: (i, 0, 0)),
        compiler_params=_compiler_params(1),
    )(x2d)
    s = jnp.sum(psums, axis=0)                      # tiny (2, C) reduction
    mean = s[0] / m
    var = jnp.maximum(s[1] / m - mean * mean, 0.0)
    return mean, var


def _fold_bn_affine(mean, var, gamma, beta):
    scale = gamma * jax.lax.rsqrt(var + EPS)
    shift = beta - mean * scale
    return (scale.reshape(1, -1).astype(jnp.float32),
            shift.reshape(1, -1).astype(jnp.float32))


def _conv1_call(win, w9, bias, scale, shift):
    g, thp2, wp2, cpi = win.shape
    th, wid = thp2 - 2, wp2 - 2
    cpo = w9.shape[2]
    return pl.pallas_call(
        _conv1_kernel,
        out_shape=(jax.ShapeDtypeStruct((g, th, wid, cpo), jnp.float32),
                   jax.ShapeDtypeStruct((g, 2, cpo), jnp.float32)),
        grid=(g,),
        in_specs=[
            pl.BlockSpec((1, thp2, wp2, cpi), lambda i: (i, 0, 0, 0)),
            pl.BlockSpec((9, cpi, cpo), lambda i: (0, 0, 0)),
            pl.BlockSpec((1, cpo), lambda i: (0, 0)),
            pl.BlockSpec((1, cpi), lambda i: (0, 0)),
            pl.BlockSpec((1, cpi), lambda i: (0, 0)),
        ],
        out_specs=(
            pl.BlockSpec((1, th, wid, cpo), lambda i: (i, 0, 0, 0)),
            pl.BlockSpec((1, 2, cpo), lambda i: (i, 0, 0)),
        ),
        compiler_params=_compiler_params(1),
    )(win, w9, bias, scale, shift)


def _conv2_call(win, w9, bias, scale, shift, x_res, w_sc, b_sc):
    g, thp2, wp2, cpi = win.shape
    th, wid = thp2 - 2, wp2 - 2
    cpo = w9.shape[2]
    cxi = x_res.shape[3]
    in_specs = [
        pl.BlockSpec((1, thp2, wp2, cpi), lambda i: (i, 0, 0, 0)),
        pl.BlockSpec((9, cpi, cpo), lambda i: (0, 0, 0)),
        pl.BlockSpec((1, cpo), lambda i: (0, 0)),
        pl.BlockSpec((1, cpi), lambda i: (0, 0)),
        pl.BlockSpec((1, cpi), lambda i: (0, 0)),
        pl.BlockSpec((1, th, wid, cxi), lambda i: (i, 0, 0, 0)),
    ]
    args = [win, w9, bias, scale, shift, x_res]
    if w_sc is not None:
        kernel = _conv2_residual_proj_kernel
        in_specs += [pl.BlockSpec((cxi, cpo), lambda i: (0, 0)),
                     pl.BlockSpec((1, cpo), lambda i: (0, 0))]
        args += [w_sc, b_sc]
    else:
        kernel = _conv2_residual_id_kernel
    return pl.pallas_call(
        kernel,
        out_shape=jax.ShapeDtypeStruct((g, th, wid, cpo), jnp.float32),
        grid=(g,),
        in_specs=in_specs,
        out_specs=pl.BlockSpec((1, th, wid, cpo), lambda i: (i, 0, 0, 0)),
        compiler_params=_compiler_params(1),
    )(*args)


# ------------------------------------------------------------------ forward --
def resblk_forward(x_nchw, params, in_channels, out_channels, tile_rows=None):
    n, c, h, w = x_nchw.shape
    assert c == in_channels
    assert h >= 2 and w >= 2, "reflect padding requires H, W >= 2"

    cpi = _round_up(in_channels, _LANE)     # lane-dense channel padding
    cpo = _round_up(out_channels, _LANE)

    x = jnp.transpose(x_nchw, (0, 2, 3, 1)).astype(jnp.float32)   # NCHW -> NHWC once
    xp = _pad_channels(x, cpi)

    th = tile_rows if tile_rows else _choose_tile_rows(h, w, max(cpi, cpo))
    assert h % th == 0
    m = n * h * w

    # ---- BN1 statistics (pass 1, tiled global reduction) --------------------
    mean1, var1 = bn_batch_stats(xp.reshape(m, cpi))
    scale1, shift1 = _fold_bn_affine(
        mean1, var1,
        _pad_channels(params["gamma1"], cpi), _pad_channels(params["beta1"], cpi))

    # ---- BN1 + GELU fused into conv1 (also emits BN2 partial stats) ---------
    w1 = _pad_conv_w(params["w1"], cpi, cpo).reshape(9, cpi, cpo).astype(jnp.bfloat16)
    b1 = _pad_channels(params["b1"], cpo).reshape(1, cpo)
    h1, pstats2 = _conv1_call(_make_windows(xp, th), w1, b1, scale1, shift1)

    # ---- BN2 statistics from fused partials ----------------------------------
    s2 = jnp.sum(pstats2, axis=0)
    mean2 = s2[0] / m
    var2 = jnp.maximum(s2[1] / m - mean2 * mean2, 0.0)
    scale2, shift2 = _fold_bn_affine(
        mean2, var2,
        _pad_channels(params["gamma2"], cpo), _pad_channels(params["beta2"], cpo))

    # ---- BN2 + GELU fused into conv2 + shortcut + residual add ---------------
    w2 = _pad_conv_w(params["w2"], cpo, cpo).reshape(9, cpo, cpo).astype(jnp.bfloat16)
    b2 = _pad_channels(params["b2"], cpo).reshape(1, cpo)
    win2 = _make_windows(h1.reshape(n, h, w, cpo), th)
    x_res = xp.reshape(n * (h // th), th, w, cpi)
    if in_channels != out_channels:
        w_sc = jnp.pad(params["w_sc"],
                       ((0, cpi - in_channels), (0, cpo - out_channels))
                       ).astype(jnp.bfloat16)
        b_sc = _pad_channels(params["b_sc"], cpo).reshape(1, cpo)
        out = _conv2_call(win2, w2, b2, scale2, shift2, x_res, w_sc, b_sc)
    else:
        out = _conv2_call(win2, w2, b2, scale2, shift2, x_res, None, None)

    out = out.reshape(n, h, w, cpo)[..., :out_channels]
    return jnp.transpose(out, (0, 3, 1, 2))          # back to NCHW


# -------------------------------------------------------------------- params --
def init_resblk_params(key, in_channels, out_channels):
    k = jax.random.split(key, 10)
    p = {
        "gamma1": 1.0 + 0.1 * jax.random.normal(k[0], (in_channels,), jnp.float32),
        "beta1": 0.1 * jax.random.normal(k[1], (in_channels,), jnp.float32),
        "w1": 0.1 * jax.random.normal(k[2], (3, 3, in_channels, out_channels), jnp.float32),
        "b1": 0.1 * jax.random.normal(k[3], (out_channels,), jnp.float32),
        "gamma2": 1.0 + 0.1 * jax.random.normal(k[4], (out_channels,), jnp.float32),
        "beta2": 0.1 * jax.random.normal(k[5], (out_channels,), jnp.float32),
        "w2": 0.1 * jax.random.normal(k[6], (3, 3, out_channels, out_channels), jnp.float32),
        "b2": 0.1 * jax.random.normal(k[7], (out_channels,), jnp.float32),
    }
    if in_channels != out_channels:
        p["w_sc"] = 0.1 * jax.random.normal(k[8], (in_channels, out_channels), jnp.float32)
        p["b_sc"] = 0.1 * jax.random.normal(k[9], (out_channels,), jnp.float32)
    return p


# -------------------------------------------------------- pure-JAX reference --
def _ref_bn_gelu(x_nhwc, gamma, beta):
    mean = jnp.mean(x_nhwc, axis=(0, 1, 2), keepdims=True)
    var = jnp.mean((x_nhwc - mean) ** 2, axis=(0, 1, 2), keepdims=True)
    y = (x_nhwc - mean) / jnp.sqrt(var + EPS) * gamma + beta
    return 0.5 * y * (1.0 + jax.lax.erf(y * _SQRT_HALF))


def _ref_conv3x3(x_nhwc, w_hwio, b):
    xp = jnp.pad(x_nhwc, ((0, 0), (1, 1), (1, 1), (0, 0)), mode="reflect")
    out = jax.lax.conv_general_dilated(
        xp, w_hwio, window_strides=(1, 1), padding="VALID",
        dimension_numbers=("NHWC", "HWIO", "NHWC"))
    return out + b


def resblk_reference(x_nchw, params, in_channels, out_channels):
    x = jnp.transpose(x_nchw, (0, 2, 3, 1)).astype(jnp.float32)
    h = _ref_bn_gelu(x, params["gamma1"], params["beta1"])
    h = _ref_conv3x3(h, params["w1"], params["b1"])
    h = _ref_bn_gelu(h, params["gamma2"], params["beta2"])
    h = _ref_conv3x3(h, params["w2"], params["b2"])
    if in_channels != out_channels:
        x = jnp.einsum("nhwc,co->nhwo", x, params["w_sc"]) + params["b_sc"]
    return jnp.transpose(x + h, (0, 3, 1, 2))


# --------------------------------------------------------------------- main --
if __name__ == "__main__":
    key = jax.random.PRNGKey(0)
    k1x, k1p, k2x, k2p = jax.random.split(key, 4)
    fwd = jax.jit(resblk_forward, static_argnums=(2, 3, 4))

    # config 1: channel change -> 1x1 projection shortcut, forced multi-tile grid
    N, Cin, Cout, H, W = 2, 4, 8, 16, 16
    x1 = jax.random.normal(k1x, (N, Cin, H, W), jnp.float32)
    p1 = init_resblk_params(k1p, Cin, Cout)
    out1 = jax.block_until_ready(fwd(x1, p1, Cin, Cout, 8))
    assert out1.shape == (N, Cout, H, W)
    ref1 = resblk_reference(x1, p1, Cin, Cout)
    assert bool(jnp.allclose(out1, ref1, atol=5e-2, rtol=5e-2)), "proj mismatch"

    # config 2: identity shortcut (Cin == Cout), auto tile size
    C2 = 8
    x2 = jax.random.normal(k2x, (N, C2, H, W), jnp.float32)
    p2 = init_resblk_params(k2p, C2, C2)
    out2 = jax.block_until_ready(fwd(x2, p2, C2, C2, None))
    assert out2.shape == (N, C2, H, W)
    ref2 = resblk_reference(x2, p2, C2, C2)
    assert bool(jnp.allclose(out2, ref2, atol=5e-2, rtol=5e-2)), "identity mismatch"

    print("KERNEL_OK")
</pallas_src>

<mosaic_0001>
module attributes {stable_mosaic.version = 11 : i64} {
  func.func @_partial_stats_kernel(%arg0: i32, %arg1: memref<512x128xf32, #tpu.memory_space<vmem>>, %arg2: memref<1x2x128xf32, #tpu.memory_space<vmem>>) attributes {dimension_semantics = [#tpu.dimension_semantics<parallel>], iteration_bounds = array<i64: 1>, scalar_prefetch = 0 : i64, scratch_operands = 0 : i64, tpu.core_type = #tpu.core_type<tc>, window_params = [{transform_indices = @transform_0, window_bounds = array<i64: 512, 128>}, {transform_indices = @transform_1, window_bounds = array<i64: 1, 2, 128>}]} {
    %c0 = arith.constant 0 : index
    %c0_0 = arith.constant 0 : index
    %0 = vector.load %arg1[%c0, %c0_0] : memref<512x128xf32, #tpu.memory_space<vmem>>, vector<512x128xf32>
    %c512_i32 = arith.constant 512 : i32
    %1 = arith.muli %arg0, %c512_i32 : i32
    %2 = tpu.iota {dimensions = array<i32: 0>} : vector<512x128xi32>
    %3 = vector.broadcast %1 : i32 to vector<512x128xi32>
    %4 = arith.addi %3, %2 : vector<512x128xi32>
    %c512_i32_1 = arith.constant 512 : i32
    %5 = vector.broadcast %c512_i32_1 : i32 to vector<512x128xi32>
    %6 = arith.cmpi slt, %4, %5 : vector<512x128xi32>
    %cst = arith.constant 0.000000e+00 : f32
    %7 = vector.broadcast %cst : f32 to vector<512x128xf32>
    %8 = arith.select %6, %0, %7 : vector<512x128xi1>, vector<512x128xf32>
    %cst_2 = arith.constant dense<0.000000e+00> : vector<128xf32>
    %9 = vector.multi_reduction <add>, %8, %cst_2 [0] : vector<512x128xf32> to vector<128xf32>
    %10 = vector.shape_cast %9 : vector<128xf32> to vector<1x128xf32>
    %11 = vector.shape_cast %10 : vector<1x128xf32> to vector<1x1x128xf32>
    %c0_3 = arith.constant 0 : index
    %c0_4 = arith.constant 0 : index
    %c0_5 = arith.constant 0 : index
    %12 = vector.load %arg2[%c0_3, %c0_4, %c0_5] : memref<1x2x128xf32, #tpu.memory_space<vmem>>, vector<1x1x128xf32>
    tpu.vector_store %arg2[%c0_3, %c0_4, %c0_5], %11 {strides = array<i32>} : memref<1x2x128xf32, #tpu.memory_space<vmem>>, vector<1x1x128xf32>,
    %13 = arith.mulf %8, %8 : vector<512x128xf32>
    %cst_6 = arith.constant dense<0.000000e+00> : vector<128xf32>
    %14 = vector.multi_reduction <add>, %13, %cst_6 [0] : vector<512x128xf32> to vector<128xf32>
    %15 = vector.shape_cast %14 : vector<128xf32> to vector<1x128xf32>
    %16 = vector.shape_cast %15 : vector<1x128xf32> to vector<1x1x128xf32>
    %c0_7 = arith.constant 0 : index
    %c1 = arith.constant 1 : index
    %c0_8 = arith.constant 0 : index
    %17 = vector.load %arg2[%c0_7, %c1, %c0_8] : memref<1x2x128xf32, #tpu.memory_space<vmem>>, vector<1x1x128xf32>
    tpu.vector_store %arg2[%c0_7, %c1, %c0_8], %16 {strides = array<i32>} : memref<1x2x128xf32, #tpu.memory_space<vmem>>, vector<1x1x128xf32>,
    return
  }
  func.func @transform_0(%arg0: i32) -> (i32, i32) {
    %c0_i32 = arith.constant 0 : i32
    %c0_i32_0 = arith.constant 0 : i32
    return %arg0, %c0_i32 : i32, i32
  }
  func.func @transform_1(%arg0: i32) -> (i32, i32, i32) {
    %c0_i32 = arith.constant 0 : i32
    %c0_i32_0 = arith.constant 0 : i32
    %c0_i32_1 = arith.constant 0 : i32
    return %arg0, %c0_i32, %c0_i32_0 : i32, i32, i32
  }
}

module attributes {stable_mosaic.version = 11 : i64} {
  func.func @_conv1_kernel(%arg0: i32, %arg1: memref<1x10x18x128xf32, #tpu.memory_space<vmem>>, %arg2: memref<9x128x128xbf16, #tpu.memory_space<vmem>>, %arg3: memref<1x128xf32, #tpu.memory_space<vmem>>, %arg4: memref<1x128xf32, #tpu.memory_space<vmem>>, %arg5: memref<1x128xf32, #tpu.memory_space<vmem>>, %arg6: memref<1x8x16x128xf32, #tpu.memory_space<vmem>>, %arg7: memref<1x2x128xf32, #tpu.memory_space<vmem>>) attributes {dimension_semantics = [#tpu.dimension_semantics<parallel>], iteration_bounds = array<i64: 4>, scalar_prefetch = 0 : i64, scratch_operands = 0 : i64, tpu.core_type = #tpu.core_type<tc>, window_params = [{transform_indices = @transform_0, window_bounds = array<i64: 1, 10, 18, 128>}, {pipeline_mode = #tpu.pipeline_mode<synchronous>, transform_indices = @transform_1, window_bounds = array<i64: 9, 128, 128>}, {pipeline_mode = #tpu.pipeline_mode<synchronous>, transform_indices = @transform_2, window_bounds = array<i64: 1, 128>}, {pipeline_mode = #tpu.pipeline_mode<synchronous>, transform_indices = @transform_3, window_bounds = array<i64: 1, 128>}, {pipeline_mode = #tpu.pipeline_mode<synchronous>, transform_indices = @transform_4, window_bounds = array<i64: 1, 128>}, {transform_indices = @transform_5, window_bounds = array<i64: 1, 8, 16, 128>}, {transform_indices = @transform_6, window_bounds = array<i64: 1, 2, 128>}]} {
    %c0 = arith.constant 0 : index
    %c0_0 = arith.constant 0 : index
    %c0_1 = arith.constant 0 : index
    %c0_2 = arith.constant 0 : index
    %0 = vector.load %arg1[%c0, %c0_0, %c0_1, %c0_2] : memref<1x10x18x128xf32, #tpu.memory_space<vmem>>, vector<1x10x18x128xf32>
    %1 = vector.shape_cast %0 : vector<1x10x18x128xf32> to vector<10x18x128xf32>
    %c0_3 = arith.constant 0 : index
    %c0_4 = arith.constant 0 : index
    %2 = vector.load %arg4[%c0_3, %c0_4] : memref<1x128xf32, #tpu.memory_space<vmem>>, vector<1x128xf32>
    %3 = vector.shape_cast %2 : vector<1x128xf32> to vector<1x1x128xf32>
    %4 = vector.broadcast %3 : vector<1x1x128xf32> to vector<10x18x128xf32>
    %5 = arith.mulf %1, %4 : vector<10x18x128xf32>
    %c0_5 = arith.constant 0 : index
    %c0_6 = arith.constant 0 : index
    %6 = vector.load %arg5[%c0_5, %c0_6] : memref<1x128xf32, #tpu.memory_space<vmem>>, vector<1x128xf32>
    %7 = vector.shape_cast %6 : vector<1x128xf32> to vector<1x1x128xf32>
    %8 = vector.broadcast %7 : vector<1x1x128xf32> to vector<10x18x128xf32>
    %9 = arith.addf %5, %8 : vector<10x18x128xf32>
    %cst = arith.constant 5.000000e-01 : f32
    %10 = vector.broadcast %cst : f32 to vector<10x18x128xf32>
    %11 = arith.mulf %10, %9 : vector<10x18x128xf32>
    %cst_7 = arith.constant 0.707106769 : f32
    %12 = vector.broadcast %cst_7 : f32 to vector<10x18x128xf32>
    %13 = arith.mulf %9, %12 : vector<10x18x128xf32>
    %14 = math.erf %13 : vector<10x18x128xf32>
    %cst_8 = arith.constant 1.000000e+00 : f32
    %15 = vector.broadcast %cst_8 : f32 to vector<10x18x128xf32>
    %16 = arith.addf %15, %14 : vector<10x18x128xf32>
    %17 = arith.mulf %11, %16 : vector<10x18x128xf32>
    %18 = arith.truncf %17 : vector<10x18x128xf32> to vector<10x18x128xbf16>
    %c0_9 = arith.constant 0 : index
    %c0_10 = arith.constant 0 : index
    %c0_11 = arith.constant 0 : index
    %19 = vector.load %arg2[%c0_9, %c0_10, %c0_11] : memref<9x128x128xbf16, #tpu.memory_space<vmem>>, vector<9x128x128xbf16>
    %20 = vector.extract_strided_slice %18 {offsets = [0, 0, 0], sizes = [8, 16, 128], strides = [1, 1, 1]} : vector<10x18x128xbf16> to vector<8x16x128xbf16>
    %21 = vector.shape_cast %20 : vector<8x16x128xbf16> to vector<128x128xbf16>
    %22 = vector.extract_strided_slice %19 {offsets = [0, 0, 0], sizes = [1, 128, 128], strides = [1, 1, 1]} : vector<9x128x128xbf16> to vector<1x128x128xbf16>
    %23 = vector.shape_cast %22 : vector<1x128x128xbf16> to vector<128x128xbf16>
    %cst_12 = arith.constant dense<0.000000e+00> : vector<128x128xf32>
    %24 = tpu.matmul %21, %23, %cst_12 {dimension_numbers = #tpu.dot_dimension_numbers<[1], [0], [0], [1], [0, 0, 1, 1], [], []>} : vector<128x128xbf16>, vector<128x128xbf16>, vector<128x128xf32> -> vector<128x128xf32>
    %25 = vector.extract_strided_slice %18 {offsets = [0, 1, 0], sizes = [8, 16, 128], strides = [1, 1, 1]} : vector<10x18x128xbf16> to vector<8x16x128xbf16>
    %26 = vector.shape_cast %25 : vector<8x16x128xbf16> to vector<128x128xbf16>
    %27 = vector.extract_strided_slice %19 {offsets = [1, 0, 0], sizes = [1, 128, 128], strides = [1, 1, 1]} : vector<9x128x128xbf16> to vector<1x128x128xbf16>
    %28 = vector.shape_cast %27 : vector<1x128x128xbf16> to vector<128x128xbf16>
    %cst_13 = arith.constant dense<0.000000e+00> : vector<128x128xf32>
    %29 = tpu.matmul %26, %28, %cst_13 {dimension_numbers = #tpu.dot_dimension_numbers<[1], [0], [0], [1], [0, 0, 1, 1], [], []>} : vector<128x128xbf16>, vector<128x128xbf16>, vector<128x128xf32> -> vector<128x128xf32>
    %30 = arith.addf %24, %29 : vector<128x128xf32>
    %31 = vector.extract_strided_slice %18 {offsets = [0, 2, 0], sizes = [8, 16, 128], strides = [1, 1, 1]} : vector<10x18x128xbf16> to vector<8x16x128xbf16>
    %32 = vector.shape_cast %31 : vector<8x16x128xbf16> to vector<128x128xbf16>
    %33 = vector.extract_strided_slice %19 {offsets = [2, 0, 0], sizes = [1, 128, 128], strides = [1, 1, 1]} : vector<9x128x128xbf16> to vector<1x128x128xbf16>
    %34 = vector.shape_cast %33 : vector<1x128x128xbf16> to vector<128x128xbf16>
    %cst_14 = arith.constant dense<0.000000e+00> : vector<128x128xf32>
    %35 = tpu.matmul %32, %34, %cst_14 {dimension_numbers = #tpu.dot_dimension_numbers<[1], [0], [0], [1], [0, 0, 1, 1], [], []>} : vector<128x128xbf16>, vector<128x128xbf16>, vector<128x128xf32> -> vector<128x128xf32>
    %36 = arith.addf %30, %35 : vector<128x128xf32>
    %37 = vector.extract_strided_slice %18 {offsets = [1, 0, 0], sizes = [8, 16, 128], strides = [1, 1, 1]} : vector<10x18x128xbf16> to vector<8x16x128xbf16>
    %38 = vector.shape_cast %37 : vector<8x16x128xbf16> to vector<128x128xbf16>
    %39 = vector.extract_strided_slice %19 {offsets = [3, 0, 0], sizes = [1, 128, 128], strides = [1, 1, 1]} : vector<9x128x128xbf16> to vector<1x128x128xbf16>
    %40 = vector.shape_cast %39 : vector<1x128x128xbf16> to vector<128x128xbf16>
    %cst_15 = arith.constant dense<0.000000e+00> : vector<128x128xf32>
    %41 = tpu.matmul %38, %40, %cst_15 {dimension_numbers = #tpu.dot_dimension_numbers<[1], [0], [0], [1], [0, 0, 1, 1], [], []>} : vector<128x128xbf16>, vector<128x128xbf16>, vector<128x128xf32> -> vector<128x128xf32>
    %42 = arith.addf %36, %41 : vector<128x128xf32>
    %43 = vector.extract_strided_slice %18 {offsets = [1, 1, 0], sizes = [8, 16, 128], strides = [1, 1, 1]} : vector<10x18x128xbf16> to vector<8x16x128xbf16>
    %44 = vector.shape_cast %43 : vector<8x16x128xbf16> to vector<128x128xbf16>
    %45 = vector.extract_strided_slice %19 {offsets = [4, 0, 0], sizes = [1, 128, 128], strides = [1, 1, 1]} : vector<9x128x128xbf16> to vector<1x128x128xbf16>
    %46 = vector.shape_cast %45 : vector<1x128x128xbf16> to vector<128x128xbf16>
    %cst_16 = arith.constant dense<0.000000e+00> : vector<128x128xf32>
    %47 = tpu.matmul %44, %46, %cst_16 {dimension_numbers = #tpu.dot_dimension_numbers<[1], [0], [0], [1], [0, 0, 1, 1], [], []>} : vector<128x128xbf16>, vector<128x128xbf16>, vector<128x128xf32> -> vector<128x128xf32>
    %48 = arith.addf %42, %47 : vector<128x128xf32>
    %49 = vector.extract_strided_slice %18 {offsets = [1, 2, 0], sizes = [8, 16, 128], strides = [1, 1, 1]} : vector<10x18x128xbf16> to vector<8x16x128xbf16>
    %50 = vector.shape_cast %49 : vector<8x16x128xbf16> to vector<128x128xbf16>
    %51 = vector.extract_strided_slice %19 {offsets = [5, 0, 0], sizes = [1, 128, 128], strides = [1, 1, 1]} : vector<9x128x128xbf16> to vector<1x128x128xbf16>
    %52 = vector.shape_cast %51 : vector<1x128x128xbf16> to vector<128x128xbf16>
    %cst_17 = arith.constant dense<0.000000e+00> : vector<128x128xf32>
    %53 = tpu.matmul %50, %52, %cst_17 {dimension_numbers = #tpu.dot_dimension_numbers<[1], [0], [0], [1], [0, 0, 1, 1], [], []>} : vector<128x128xbf16>, vector<128x128xbf16>, vector<128x128xf32> -> vector<128x128xf32>
    %54 = arith.addf %48, %53 : vector<128x128xf32>
    %55 = vector.extract_strided_slice %18 {offsets = [2, 0, 0], sizes = [8, 16, 128], strides = [1, 1, 1]} : vector<10x18x128xbf16> to vector<8x16x128xbf16>
    %56 = vector.shape_cast %55 : vector<8x16x128xbf16> to vector<128x128xbf16>
    %57 = vector.extract_strided_slice %19 {offsets = [6, 0, 0], sizes = [1, 128, 128], strides = [1, 1, 1]} : vector<9x128x128xbf16> to vector<1x128x128xbf16>
    %58 = vector.shape_cast %57 : vector<1x128x128xbf16> to vector<128x128xbf16>
    %cst_18 = arith.constant dense<0.000000e+00> : vector<128x128xf32>
    %59 = tpu.matmul %56, %58, %cst_18 {dimension_numbers = #tpu.dot_dimension_numbers<[1], [0], [0], [1], [0, 0, 1, 1], [], []>} : vector<128x128xbf16>, vector<128x128xbf16>, vector<128x128xf32> -> vector<128x128xf32>
    %60 = arith.addf %54, %59 : vector<128x128xf32>
    %61 = vector.extract_strided_slice %18 {offsets = [2, 1, 0], sizes = [8, 16, 128], strides = [1, 1, 1]} : vector<10x18x128xbf16> to vector<8x16x128xbf16>
    %62 = vector.shape_cast %61 : vector<8x16x128xbf16> to vector<128x128xbf16>
    %63 = vector.extract_strided_slice %19 {offsets = [7, 0, 0], sizes = [1, 128, 128], strides = [1, 1, 1]} : vector<9x128x128xbf16> to vector<1x128x128xbf16>
    %64 = vector.shape_cast %63 : vector<1x128x128xbf16> to vector<128x128xbf16>
    %cst_19 = arith.constant dense<0.000000e+00> : vector<128x128xf32>
    %65 = tpu.matmul %62, %64, %cst_19 {dimension_numbers = #tpu.dot_dimension_numbers<[1], [0], [0], [1], [0, 0, 1, 1], [], []>} : vector<128x128xbf16>, vector<128x128xbf16>, vector<128x128xf32> -> vector<128x128xf32>
    %66 = arith.addf %60, %65 : vector<128x128xf32>
    %67 = vector.extract_strided_slice %18 {offsets = [2, 2, 0], sizes = [8, 16, 128], strides = [1, 1, 1]} : vector<10x18x128xbf16> to vector<8x16x128xbf16>
    %68 = vector.shape_cast %67 : vector<8x16x128xbf16> to vector<128x128xbf16>
    %69 = vector.extract_strided_slice %19 {offsets = [8, 0, 0], sizes = [1, 128, 128], strides = [1, 1, 1]} : vector<9x128x128xbf16> to vector<1x128x128xbf16>
    %70 = vector.shape_cast %69 : vector<1x128x128xbf16> to vector<128x128xbf16>
    %cst_20 = arith.constant dense<0.000000e+00> : vector<128x128xf32>
    %71 = tpu.matmul %68, %70, %cst_20 {dimension_numbers = #tpu.dot_dimension_numbers<[1], [0], [0], [1], [0, 0, 1, 1], [], []>} : vector<128x128xbf16>, vector<128x128xbf16>, vector<128x128xf32> -> vector<128x128xf32>
    %72 = arith.addf %66, %71 : vector<128x128xf32>
    %c0_21 = arith.constant 0 : index
    %c0_22 = arith.constant 0 : index
    %73 = vector.load %arg3[%c0_21, %c0_22] : memref<1x128xf32, #tpu.memory_space<vmem>>, vector<1x128xf32>
    %74 = vector.broadcast %73 : vector<1x128xf32> to vector<128x128xf32>
    %75 = arith.addf %72, %74 : vector<128x128xf32>
    %76 = vector.shape_cast %75 : vector<128x128xf32> to vector<1x8x16x128xf32>
    %c0_23 = arith.constant 0 : index
    %c0_24 = arith.constant 0 : index
    %c0_25 = arith.constant 0 : index
    %c0_26 = arith.constant 0 : index
    %77 = vector.load %arg6[%c0_23, %c0_24, %c0_25, %c0_26] : memref<1x8x16x128xf32, #tpu.memory_space<vmem>>, vector<1x8x16x128xf32>
    tpu.vector_store %arg6[%c0_23, %c0_24, %c0_25, %c0_26], %76 {strides = array<i32>} : memref<1x8x16x128xf32, #tpu.memory_space<vmem>>, vector<1x8x16x128xf32>,
    %cst_27 = arith.constant dense<0.000000e+00> : vector<128xf32>
    %78 = vector.multi_reduction <add>, %75, %cst_27 [0] : vector<128x128xf32> to vector<128xf32>
    %79 = vector.shape_cast %78 : vector<128xf32> to vector<1x128xf32>
    %80 = vector.shape_cast %79 : vector<1x128xf32> to vector<1x1x128xf32>
    %c0_28 = arith.constant 0 : index
    %c0_29 = arith.constant 0 : index
    %c0_30 = arith.constant 0 : index
    %81 = vector.load %arg7[%c0_28, %c0_29, %c0_30] : memref<1x2x128xf32, #tpu.memory_space<vmem>>, vector<1x1x128xf32>
    tpu.vector_store %arg7[%c0_28, %c0_29, %c0_30], %80 {strides = array<i32>} : memref<1x2x128xf32, #tpu.memory_space<vmem>>, vector<1x1x128xf32>,
    %82 = arith.mulf %75, %75 : vector<128x128xf32>
    %cst_31 = arith.constant dense<0.000000e+00> : vector<128xf32>
    %83 = vector.multi_reduction <add>, %82, %cst_31 [0] : vector<128x128xf32> to vector<128xf32>
    %84 = vector.shape_cast %83 : vector<128xf32> to vector<1x128xf32>
    %85 = vector.shape_cast %84 : vector<1x128xf32> to vector<1x1x128xf32>
    %c0_32 = arith.constant 0 : index
    %c1 = arith.constant 1 : index
    %c0_33 = arith.constant 0 : index
    %86 = vector.load %arg7[%c0_32, %c1, %c0_33] : memref<1x2x128xf32, #tpu.memory_space<vmem>>, vector<1x1x128xf32>
    tpu.vector_store %arg7[%c0_32, %c1, %c0_33], %85 {strides = array<i32>} : memref<1x2x128xf32, #tpu.memory_space<vmem>>, vector<1x1x128xf32>,
    return
  }
  func.func @transform_0(%arg0: i32) -> (i32, i32, i32, i32) {
    %c0_i32 = arith.constant 0 : i32
    %c0_i32_0 = arith.constant 0 : i32
    %c0_i32_1 = arith.constant 0 : i32
    %c0_i32_2 = arith.constant 0 : i32
    return %arg0, %c0_i32, %c0_i32_0, %c0_i32_1 : i32, i32, i32, i32
  }
  func.func @transform_1(%arg0: i32) -> (i32, i32, i32) {
    %c0_i32 = arith.constant 0 : i32
    %c0_i32_0 = arith.constant 0 : i32
    %c0_i32_1 = arith.constant 0 : i32
    %c0_i32_2 = arith.constant 0 : i32
    return %c0_i32, %c0_i32_0, %c0_i32_1 : i32, i32, i32
  }
  func.func @transform_2(%arg0: i32) -> (i32, i32) {
    %c0_i32 = arith.constant 0 : i32
    %c0_i32_0 = arith.constant 0 : i32
    %c0_i32_1 = arith.constant 0 : i32
    return %c0_i32, %c0_i32_0 : i32, i32
  }
  func.func @transform_3(%arg0: i32) -> (i32, i32) {
    %c0_i32 = arith.constant 0 : i32
    %c0_i32_0 = arith.constant 0 : i32
    %c0_i32_1 = arith.constant 0 : i32
    return %c0_i32, %c0_i32_0 : i32, i32
  }
  func.func @transform_4(%arg0: i32) -> (i32, i32) {
    %c0_i32 = arith.constant 0 : i32
    %c0_i32_0 = arith.constant 0 : i32
    %c0_i32_1 = arith.constant 0 : i32
    return %c0_i32, %c0_i32_0 : i32, i32
  }
  func.func @transform_5(%arg0: i32) -> (i32, i32, i32, i32) {
    %c0_i32 = arith.constant 0 : i32
    %c0_i32_0 = arith.constant 0 : i32
    %c0_i32_1 = arith.constant 0 : i32
    %c0_i32_2 = arith.constant 0 : i32
    return %arg0, %c0_i32, %c0_i32_0, %c0_i32_1 : i32, i32, i32, i32
  }
  func.func @transform_6(%arg0: i32) -> (i32, i32, i32) {
    %c0_i32 = arith.constant 0 : i32
    %c0_i32_0 = arith.constant 0 : i32
    %c0_i32_1 = arith.constant 0 : i32
    return %arg0, %c0_i32, %c0_i32_0 : i32, i32, i32
  }
}

module attributes {stable_mosaic.version = 11 : i64} {
  func.func @_conv2_residual_proj_kernel(%arg0: i32, %arg1: memref<1x10x18x128xf32, #tpu.memory_space<vmem>>, %arg2: memref<9x128x128xbf16, #tpu.memory_space<vmem>>, %arg3: memref<1x128xf32, #tpu.memory_space<vmem>>, %arg4: memref<1x128xf32, #tpu.memory_space<vmem>>, %arg5: memref<1x128xf32, #tpu.memory_space<vmem>>, %arg6: memref<1x8x16x128xf32, #tpu.memory_space<vmem>>, %arg7: memref<128x128xbf16, #tpu.memory_space<vmem>>, %arg8: memref<1x128xf32, #tpu.memory_space<vmem>>, %arg9: memref<1x8x16x128xf32, #tpu.memory_space<vmem>>) attributes {dimension_semantics = [#tpu.dimension_semantics<parallel>], iteration_bounds = array<i64: 4>, scalar_prefetch = 0 : i64, scratch_operands = 0 : i64, tpu.core_type = #tpu.core_type<tc>, window_params = [{transform_indices = @transform_0, window_bounds = array<i64: 1, 10, 18, 128>}, {pipeline_mode = #tpu.pipeline_mode<synchronous>, transform_indices = @transform_1, window_bounds = array<i64: 9, 128, 128>}, {pipeline_mode = #tpu.pipeline_mode<synchronous>, transform_indices = @transform_2, window_bounds = array<i64: 1, 128>}, {pipeline_mode = #tpu.pipeline_mode<synchronous>, transform_indices = @transform_3, window_bounds = array<i64: 1, 128>}, {pipeline_mode = #tpu.pipeline_mode<synchronous>, transform_indices = @transform_4, window_bounds = array<i64: 1, 128>}, {transform_indices = @transform_5, window_bounds = array<i64: 1, 8, 16, 128>}, {pipeline_mode = #tpu.pipeline_mode<synchronous>, transform_indices = @transform_6, window_bounds = array<i64: 128, 128>}, {pipeline_mode = #tpu.pipeline_mode<synchronous>, transform_indices = @transform_7, window_bounds = array<i64: 1, 128>}, {transform_indices = @transform_8, window_bounds = array<i64: 1, 8, 16, 128>}]} {
    %c0 = arith.constant 0 : index
    %c0_0 = arith.constant 0 : index
    %c0_1 = arith.constant 0 : index
    %c0_2 = arith.constant 0 : index
    %0 = vector.load %arg1[%c0, %c0_0, %c0_1, %c0_2] : memref<1x10x18x128xf32, #tpu.memory_space<vmem>>, vector<1x10x18x128xf32>
    %1 = vector.shape_cast %0 : vector<1x10x18x128xf32> to vector<10x18x128xf32>
    %c0_3 = arith.constant 0 : index
    %c0_4 = arith.constant 0 : index
    %2 = vector.load %arg4[%c0_3, %c0_4] : memref<1x128xf32, #tpu.memory_space<vmem>>, vector<1x128xf32>
    %3 = vector.shape_cast %2 : vector<1x128xf32> to vector<1x1x128xf32>
    %4 = vector.broadcast %3 : vector<1x1x128xf32> to vector<10x18x128xf32>
    %5 = arith.mulf %1, %4 : vector<10x18x128xf32>
    %c0_5 = arith.constant 0 : index
    %c0_6 = arith.constant 0 : index
    %6 = vector.load %arg5[%c0_5, %c0_6] : memref<1x128xf32, #tpu.memory_space<vmem>>, vector<1x128xf32>
    %7 = vector.shape_cast %6 : vector<1x128xf32> to vector<1x1x128xf32>
    %8 = vector.broadcast %7 : vector<1x1x128xf32> to vector<10x18x128xf32>
    %9 = arith.addf %5, %8 : vector<10x18x128xf32>
    %cst = arith.constant 5.000000e-01 : f32
    %10 = vector.broadcast %cst : f32 to vector<10x18x128xf32>
    %11 = arith.mulf %10, %9 : vector<10x18x128xf32>
    %cst_7 = arith.constant 0.707106769 : f32
    %12 = vector.broadcast %cst_7 : f32 to vector<10x18x128xf32>
    %13 = arith.mulf %9, %12 : vector<10x18x128xf32>
    %14 = math.erf %13 : vector<10x18x128xf32>
    %cst_8 = arith.constant 1.000000e+00 : f32
    %15 = vector.broadcast %cst_8 : f32 to vector<10x18x128xf32>
    %16 = arith.addf %15, %14 : vector<10x18x128xf32>
    %17 = arith.mulf %11, %16 : vector<10x18x128xf32>
    %18 = arith.truncf %17 : vector<10x18x128xf32> to vector<10x18x128xbf16>
    %c0_9 = arith.constant 0 : index
    %c0_10 = arith.constant 0 : index
    %c0_11 = arith.constant 0 : index
    %19 = vector.load %arg2[%c0_9, %c0_10, %c0_11] : memref<9x128x128xbf16, #tpu.memory_space<vmem>>, vector<9x128x128xbf16>
    %20 = vector.extract_strided_slice %18 {offsets = [0, 0, 0], sizes = [8, 16, 128], strides = [1, 1, 1]} : vector<10x18x128xbf16> to vector<8x16x128xbf16>
    %21 = vector.shape_cast %20 : vector<8x16x128xbf16> to vector<128x128xbf16>
    %22 = vector.extract_strided_slice %19 {offsets = [0, 0, 0], sizes = [1, 128, 128], strides = [1, 1, 1]} : vector<9x128x128xbf16> to vector<1x128x128xbf16>
    %23 = vector.shape_cast %22 : vector<1x128x128xbf16> to vector<128x128xbf16>
    %cst_12 = arith.constant dense<0.000000e+00> : vector<128x128xf32>
    %24 = tpu.matmul %21, %23, %cst_12 {dimension_numbers = #tpu.dot_dimension_numbers<[1], [0], [0], [1], [0, 0, 1, 1], [], []>} : vector<128x128xbf16>, vector<128x128xbf16>, vector<128x128xf32> -> vector<128x128xf32>
    %25 = vector.extract_strided_slice %18 {offsets = [0, 1, 0], sizes = [8, 16, 128], strides = [1, 1, 1]} : vector<10x18x128xbf16> to vector<8x16x128xbf16>
    %26 = vector.shape_cast %25 : vector<8x16x128xbf16> to vector<128x128xbf16>
    %27 = vector.extract_strided_slice %19 {offsets = [1, 0, 0], sizes = [1, 128, 128], strides = [1, 1, 1]} : vector<9x128x128xbf16> to vector<1x128x128xbf16>
    %28 = vector.shape_cast %27 : vector<1x128x128xbf16> to vector<128x128xbf16>
    %cst_13 = arith.constant dense<0.000000e+00> : vector<128x128xf32>
    %29 = tpu.matmul %26, %28, %cst_13 {dimension_numbers = #tpu.dot_dimension_numbers<[1], [0], [0], [1], [0, 0, 1, 1], [], []>} : vector<128x128xbf16>, vector<128x128xbf16>, vector<128x128xf32> -> vector<128x128xf32>
    %30 = arith.addf %24, %29 : vector<128x128xf32>
    %31 = vector.extract_strided_slice %18 {offsets = [0, 2, 0], sizes = [8, 16, 128], strides = [1, 1, 1]} : vector<10x18x128xbf16> to vector<8x16x128xbf16>
    %32 = vector.shape_cast %31 : vector<8x16x128xbf16> to vector<128x128xbf16>
    %33 = vector.extract_strided_slice %19 {offsets = [2, 0, 0], sizes = [1, 128, 128], strides = [1, 1, 1]} : vector<9x128x128xbf16> to vector<1x128x128xbf16>
    %34 = vector.shape_cast %33 : vector<1x128x128xbf16> to vector<128x128xbf16>
    %cst_14 = arith.constant dense<0.000000e+00> : vector<128x128xf32>
    %35 = tpu.matmul %32, %34, %cst_14 {dimension_numbers = #tpu.dot_dimension_numbers<[1], [0], [0], [1], [0, 0, 1, 1], [], []>} : vector<128x128xbf16>, vector<128x128xbf16>, vector<128x128xf32> -> vector<128x128xf32>
    %36 = arith.addf %30, %35 : vector<128x128xf32>
    %37 = vector.extract_strided_slice %18 {offsets = [1, 0, 0], sizes = [8, 16, 128], strides = [1, 1, 1]} : vector<10x18x128xbf16> to vector<8x16x128xbf16>
    %38 = vector.shape_cast %37 : vector<8x16x128xbf16> to vector<128x128xbf16>
    %39 = vector.extract_strided_slice %19 {offsets = [3, 0, 0], sizes = [1, 128, 128], strides = [1, 1, 1]} : vector<9x128x128xbf16> to vector<1x128x128xbf16>
    %40 = vector.shape_cast %39 : vector<1x128x128xbf16> to vector<128x128xbf16>
    %cst_15 = arith.constant dense<0.000000e+00> : vector<128x128xf32>
    %41 = tpu.matmul %38, %40, %cst_15 {dimension_numbers = #tpu.dot_dimension_numbers<[1], [0], [0], [1], [0, 0, 1, 1], [], []>} : vector<128x128xbf16>, vector<128x128xbf16>, vector<128x128xf32> -> vector<128x128xf32>
    %42 = arith.addf %36, %41 : vector<128x128xf32>
    %43 = vector.extract_strided_slice %18 {offsets = [1, 1, 0], sizes = [8, 16, 128], strides = [1, 1, 1]} : vector<10x18x128xbf16> to vector<8x16x128xbf16>
    %44 = vector.shape_cast %43 : vector<8x16x128xbf16> to vector<128x128xbf16>
    %45 = vector.extract_strided_slice %19 {offsets = [4, 0, 0], sizes = [1, 128, 128], strides = [1, 1, 1]} : vector<9x128x128xbf16> to vector<1x128x128xbf16>
    %46 = vector.shape_cast %45 : vector<1x128x128xbf16> to vector<128x128xbf16>
    %cst_16 = arith.constant dense<0.000000e+00> : vector<128x128xf32>
    %47 = tpu.matmul %44, %46, %cst_16 {dimension_numbers = #tpu.dot_dimension_numbers<[1], [0], [0], [1], [0, 0, 1, 1], [], []>} : vector<128x128xbf16>, vector<128x128xbf16>, vector<128x128xf32> -> vector<128x128xf32>
    %48 = arith.addf %42, %47 : vector<128x128xf32>
    %49 = vector.extract_strided_slice %18 {offsets = [1, 2, 0], sizes = [8, 16, 128], strides = [1, 1, 1]} : vector<10x18x128xbf16> to vector<8x16x128xbf16>
    %50 = vector.shape_cast %49 : vector<8x16x128xbf16> to vector<128x128xbf16>
    %51 = vector.extract_strided_slice %19 {offsets = [5, 0, 0], sizes = [1, 128, 128], strides = [1, 1, 1]} : vector<9x128x128xbf16> to vector<1x128x128xbf16>
    %52 = vector.shape_cast %51 : vector<1x128x128xbf16> to vector<128x128xbf16>
    %cst_17 = arith.constant dense<0.000000e+00> : vector<128x128xf32>
    %53 = tpu.matmul %50, %52, %cst_17 {dimension_numbers = #tpu.dot_dimension_numbers<[1], [0], [0], [1], [0, 0, 1, 1], [], []>} : vector<128x128xbf16>, vector<128x128xbf16>, vector<128x128xf32> -> vector<128x128xf32>
    %54 = arith.addf %48, %53 : vector<128x128xf32>
    %55 = vector.extract_strided_slice %18 {offsets = [2, 0, 0], sizes = [8, 16, 128], strides = [1, 1, 1]} : vector<10x18x128xbf16> to vector<8x16x128xbf16>
    %56 = vector.shape_cast %55 : vector<8x16x128xbf16> to vector<128x128xbf16>
    %57 = vector.extract_strided_slice %19 {offsets = [6, 0, 0], sizes = [1, 128, 128], strides = [1, 1, 1]} : vector<9x128x128xbf16> to vector<1x128x128xbf16>
    %58 = vector.shape_cast %57 : vector<1x128x128xbf16> to vector<128x128xbf16>
    %cst_18 = arith.constant dense<0.000000e+00> : vector<128x128xf32>
    %59 = tpu.matmul %56, %58, %cst_18 {dimension_numbers = #tpu.dot_dimension_numbers<[1], [0], [0], [1], [0, 0, 1, 1], [], []>} : vector<128x128xbf16>, vector<128x128xbf16>, vector<128x128xf32> -> vector<128x128xf32>
    %60 = arith.addf %54, %59 : vector<128x128xf32>
    %61 = vector.extract_strided_slice %18 {offsets = [2, 1, 0], sizes = [8, 16, 128], strides = [1, 1, 1]} : vector<10x18x128xbf16> to vector<8x16x128xbf16>
    %62 = vector.shape_cast %61 : vector<8x16x128xbf16> to vector<128x128xbf16>
    %63 = vector.extract_strided_slice %19 {offsets = [7, 0, 0], sizes = [1, 128, 128], strides = [1, 1, 1]} : vector<9x128x128xbf16> to vector<1x128x128xbf16>
    %64 = vector.shape_cast %63 : vector<1x128x128xbf16> to vector<128x128xbf16>
    %cst_19 = arith.constant dense<0.000000e+00> : vector<128x128xf32>
    %65 = tpu.matmul %62, %64, %cst_19 {dimension_numbers = #tpu.dot_dimension_numbers<[1], [0], [0], [1], [0, 0, 1, 1], [], []>} : vector<128x128xbf16>, vector<128x128xbf16>, vector<128x128xf32> -> vector<128x128xf32>
    %66 = arith.addf %60, %65 : vector<128x128xf32>
    %67 = vector.extract_strided_slice %18 {offsets = [2, 2, 0], sizes = [8, 16, 128], strides = [1, 1, 1]} : vector<10x18x128xbf16> to vector<8x16x128xbf16>
    %68 = vector.shape_cast %67 : vector<8x16x128xbf16> to vector<128x128xbf16>
    %69 = vector.extract_strided_slice %19 {offsets = [8, 0, 0], sizes = [1, 128, 128], strides = [1, 1, 1]} : vector<9x128x128xbf16> to vector<1x128x128xbf16>
    %70 = vector.shape_cast %69 : vector<1x128x128xbf16> to vector<128x128xbf16>
    %cst_20 = arith.constant dense<0.000000e+00> : vector<128x128xf32>
    %71 = tpu.matmul %68, %70, %cst_20 {dimension_numbers = #tpu.dot_dimension_numbers<[1], [0], [0], [1], [0, 0, 1, 1], [], []>} : vector<128x128xbf16>, vector<128x128xbf16>, vector<128x128xf32> -> vector<128x128xf32>
    %72 = arith.addf %66, %71 : vector<128x128xf32>
    %c0_21 = arith.constant 0 : index
    %c0_22 = arith.constant 0 : index
    %73 = vector.load %arg3[%c0_21, %c0_22] : memref<1x128xf32, #tpu.memory_space<vmem>>, vector<1x128xf32>
    %74 = vector.broadcast %73 : vector<1x128xf32> to vector<128x128xf32>
    %75 = arith.addf %72, %74 : vector<128x128xf32>
    %c0_23 = arith.constant 0 : index
    %c0_24 = arith.constant 0 : index
    %c0_25 = arith.constant 0 : index
    %c0_26 = arith.constant 0 : index
    %76 = vector.load %arg6[%c0_23, %c0_24, %c0_25, %c0_26] : memref<1x8x16x128xf32, #tpu.memory_space<vmem>>, vector<1x8x16x128xf32>
    %77 = vector.shape_cast %76 : vector<1x8x16x128xf32> to vector<128x128xf32>
    %78 = arith.truncf %77 : vector<128x128xf32> to vector<128x128xbf16>
    %c0_27 = arith.constant 0 : index
    %c0_28 = arith.constant 0 : index
    %79 = vector.load %arg7[%c0_27, %c0_28] : memref<128x128xbf16, #tpu.memory_space<vmem>>, vector<128x128xbf16>
    %cst_29 = arith.constant dense<0.000000e+00> : vector<128x128xf32>
    %80 = tpu.matmul %78, %79, %cst_29 {dimension_numbers = #tpu.dot_dimension_numbers<[1], [0], [0], [1], [0, 0, 1, 1], [], []>} : vector<128x128xbf16>, vector<128x128xbf16>, vector<128x128xf32> -> vector<128x128xf32>
    %c0_30 = arith.constant 0 : index
    %c0_31 = arith.constant 0 : index
    %81 = vector.load %arg8[%c0_30, %c0_31] : memref<1x128xf32, #tpu.memory_space<vmem>>, vector<1x128xf32>
    %82 = vector.broadcast %81 : vector<1x128xf32> to vector<128x128xf32>
    %83 = arith.addf %80, %82 : vector<128x128xf32>
    %84 = arith.addf %75, %83 : vector<128x128xf32>
    %85 = vector.shape_cast %84 : vector<128x128xf32> to vector<1x8x16x128xf32>
    %c0_32 = arith.constant 0 : index
    %c0_33 = arith.constant 0 : index
    %c0_34 = arith.constant 0 : index
    %c0_35 = arith.constant 0 : index
    %86 = vector.load %arg9[%c0_32, %c0_33, %c0_34, %c0_35] : memref<1x8x16x128xf32, #tpu.memory_space<vmem>>, vector<1x8x16x128xf32>
    tpu.vector_store %arg9[%c0_32, %c0_33, %c0_34, %c0_35], %85 {strides = array<i32>} : memref<1x8x16x128xf32, #tpu.memory_space<vmem>>, vector<1x8x16x128xf32>,
    return
  }
  func.func @transform_0(%arg0: i32) -> (i32, i32, i32, i32) {
    %c0_i32 = arith.constant 0 : i32
    %c0_i32_0 = arith.constant 0 : i32
    %c0_i32_1 = arith.constant 0 : i32
    %c0_i32_2 = arith.constant 0 : i32
    return %arg0, %c0_i32, %c0_i32_0, %c0_i32_1 : i32, i32, i32, i32
  }
  func.func @transform_1(%arg0: i32) -> (i32, i32, i32) {
    %c0_i32 = arith.constant 0 : i32
    %c0_i32_0 = arith.constant 0 : i32
    %c0_i32_1 = arith.constant 0 : i32
    %c0_i32_2 = arith.constant 0 : i32
    return %c0_i32, %c0_i32_0, %c0_i32_1 : i32, i32, i32
  }
  func.func @transform_2(%arg0: i32) -> (i32, i32) {
    %c0_i32 = arith.constant 0 : i32
    %c0_i32_0 = arith.constant 0 : i32
    %c0_i32_1 = arith.constant 0 : i32
    return %c0_i32, %c0_i32_0 : i32, i32
  }
  func.func @transform_3(%arg0: i32) -> (i32, i32) {
    %c0_i32 = arith.constant 0 : i32
    %c0_i32_0 = arith.constant 0 : i32
    %c0_i32_1 = arith.constant 0 : i32
    return %c0_i32, %c0_i32_0 : i32, i32
  }
  func.func @transform_4(%arg0: i32) -> (i32, i32) {
    %c0_i32 = arith.constant 0 : i32
    %c0_i32_0 = arith.constant 0 : i32
    %c0_i32_1 = arith.constant 0 : i32
    return %c0_i32, %c0_i32_0 : i32, i32
  }
  func.func @transform_5(%arg0: i32) -> (i32, i32, i32, i32) {
    %c0_i32 = arith.constant 0 : i32
    %c0_i32_0 = arith.constant 0 : i32
    %c0_i32_1 = arith.constant 0 : i32
    %c0_i32_2 = arith.constant 0 : i32
    return %arg0, %c0_i32, %c0_i32_0, %c0_i32_1 : i32, i32, i32, i32
  }
  func.func @transform_6(%arg0: i32) -> (i32, i32) {
    %c0_i32 = arith.constant 0 : i32
    %c0_i32_0 = arith.constant 0 : i32
    %c0_i32_1 = arith.constant 0 : i32
    return %c0_i32, %c0_i32_0 : i32, i32
  }
  func.func @transform_7(%arg0: i32) -> (i32, i32) {
    %c0_i32 = arith.constant 0 : i32
    %c0_i32_0 = arith.constant 0 : i32
    %c0_i32_1 = arith.constant 0 : i32
    return %c0_i32, %c0_i32_0 : i32, i32
  }
  func.func @transform_8(%arg0: i32) -> (i32, i32, i32, i32) {
    %c0_i32 = arith.constant 0 : i32
    %c0_i32_0 = arith.constant 0 : i32
    %c0_i32_1 = arith.constant 0 : i32
    %c0_i32_2 = arith.constant 0 : i32
    return %arg0, %c0_i32, %c0_i32_0, %c0_i32_1 : i32, i32, i32, i32
  }
}

</mosaic_0001>

<bundles_post_ra>
// kernel: resblk_forward.3
= control target key start
LH: loop header
LB: loop body
LE: loop exit
PB: predicated region body
PF: predicated region fallthrough
CT: control target
= control target key end

     0   :  { %s747_s0 = inlined_call_operand.vmem [shape: f32[512,128], index: 0, kind: input, shape index: {}]   ;;  %s748_s1 = inlined_call_operand.vmem [shape: f32[1,2,128], index: 1, kind: output, shape index: {}]  }
   0x1   :  { %v8_v0 = vld [vmem:[%s747_s0] sm:$0xff]  ;;  %v9_v1 = vld [vmem:[%s747_s0 + $0x8] sm:$0xff]  ;;  %v10_v2 = vld [vmem:[%s747_s0 + $0x10] sm:$0xff] }
   0x2   :  { %v11_v3 = vld [vmem:[%s747_s0 + $0x18] sm:$0xff]  ;;  %v331_v4 = vadd.f32 %v9_v1, %v8_v0  ;;  %v401_v5 = vmul.f32 %v8_v0, %v8_v0  ;;  %v402_v6 = vmul.f32 %v9_v1, %v9_v1  ;;  %v403_v7 = vmul.f32 %v10_v2, %v10_v2  ;;  %v12_v8 = vld [vmem:[%s747_s0 + $0x20] sm:$0xff]  ;;  %v13_v12 = vld [vmem:[%s747_s0 + $0x28] sm:$0xff] }
   0x3   :  { %v404_v10 = vmul.f32 %v11_v3, %v11_v3  ;;  %v405_v14 = vmul.f32 %v12_v8, %v12_v8  ;;  %v14_v16 = vld [vmem:[%s747_s0 + $0x30] sm:$0xff]  ;;  %v406_v18 = vmul.f32 %v13_v12, %v13_v12  ;;  %v15_v20 = vld [vmem:[%s747_s0 + $0x38] sm:$0xff]  ;;  %v16_v24 = vld [vmem:[%s747_s0 + $0x40] sm:$0xff] }
   0x4   :  { %v332_v9 = vadd.f32 %v331_v4, %v10_v2  ;;  %v465_v11 = vadd.f32 %v402_v6, %v401_v5  ;;  %v407_v22 = vmul.f32 %v14_v16, %v14_v16  ;;  %v408_v26 = vmul.f32 %v15_v20, %v15_v20  ;;  %v17_v28 = vld [vmem:[%s747_s0 + $0x48] sm:$0xff]  ;;  %v18_v32 = vld [vmem:[%s747_s0 + $0x50] sm:$0xff]  ;;  %v19_v36 = vld [vmem:[%s747_s0 + $0x58] sm:$0xff] }
   0x5   :  { %v409_v30 = vmul.f32 %v16_v24, %v16_v24  ;;  %v410_v34 = vmul.f32 %v17_v28, %v17_v28  ;;  %v411_v38 = vmul.f32 %v18_v32, %v18_v32  ;;  %v20_v40 = vld [vmem:[%s747_s0 + $0x60] sm:$0xff]  ;;  %v412_v42 = vmul.f32 %v19_v36, %v19_v36  ;;  %v21_v44 = vld [vmem:[%s747_s0 + $0x68] sm:$0xff]  ;;  %v22_v48 = vld [vmem:[%s747_s0 + $0x70] sm:$0xff] }
   0x6   :  { %v333_v13 = vadd.f32 %v332_v9, %v11_v3  ;;  %v466_v15 = vadd.f32 %v465_v11, %v403_v7  ;;  %v413_v46 = vmul.f32 %v20_v40, %v20_v40  ;;  %v414_v50 = vmul.f32 %v21_v44, %v21_v44  ;;  %v23_v52 = vld [vmem:[%s747_s0 + $0x78] sm:$0xff]  ;;  %v24_v56 = vld [vmem:[%s747_s0 + $0x80] sm:$0xff]  ;;  %v25_v60 = vld [vmem:[%s747_s0 + $0x88] sm:$0xff] }
   0x7   :  { %v415_v54 = vmul.f32 %v22_v48, %v22_v48  ;;  %v416_v58 = vmul.f32 %v23_v52, %v23_v52  ;;  %v417_v62 = vmul.f32 %v24_v56, %v24_v56  ;;  %v26_v0 = vld [vmem:[%s747_s0 + $0x90] sm:$0xff]  ;;  %v418_v2 = vmul.f32 %v25_v60, %v25_v60  ;;  %v27_v4 = vld [vmem:[%s747_s0 + $0x98] sm:$0xff] }
   0x8   :  { %v334_v17 = vadd.f32 %v333_v13, %v12_v8  ;;  %v467_v19 = vadd.f32 %v466_v15, %v404_v10  ;;  %v419_v6 = vmul.f32 %v26_v0, %v26_v0  ;;  %v28_v8 = vld [vmem:[%s747_s0 + $0xa0] sm:$0xff]  ;;  %v420_v10 = vmul.f32 %v27_v4, %v27_v4 }
   0xa   :  { %v335_v21 = vadd.f32 %v334_v17, %v13_v12  ;;  %v468_v23 = vadd.f32 %v467_v19, %v405_v14  ;;  %v29_v12 = vld [vmem:[%s747_s0 + $0xa8] sm:$0xff]  ;;  %v421_v14 = vmul.f32 %v28_v8, %v28_v8 }
   0xc   :  { %v336_v25 = vadd.f32 %v335_v21, %v14_v16  ;;  %v469_v27 = vadd.f32 %v468_v23, %v406_v18  ;;  %v30_v16 = vld [vmem:[%s747_s0 + $0xb0] sm:$0xff]  ;;  %v422_v18 = vmul.f32 %v29_v12, %v29_v12 }
   0xe   :  { %v337_v29 = vadd.f32 %v336_v25, %v15_v20  ;;  %v470_v31 = vadd.f32 %v469_v27, %v407_v22  ;;  %v31_v20 = vld [vmem:[%s747_s0 + $0xb8] sm:$0xff]  ;;  %v423_v22 = vmul.f32 %v30_v16, %v30_v16 }
  0x10   :  { %v338_v33 = vadd.f32 %v337_v29, %v16_v24  ;;  %v471_v35 = vadd.f32 %v470_v31, %v408_v26  ;;  %v32_v24 = vld [vmem:[%s747_s0 + $0xc0] sm:$0xff]  ;;  %v424_v26 = vmul.f32 %v31_v20, %v31_v20 }
  0x12   :  { %v339_v37 = vadd.f32 %v338_v33, %v17_v28  ;;  %v472_v39 = vadd.f32 %v471_v35, %v409_v30  ;;  %v33_v28 = vld [vmem:[%s747_s0 + $0xc8] sm:$0xff]  ;;  %v425_v30 = vmul.f32 %v32_v24, %v32_v24 }
  0x14   :  { %v340_v41 = vadd.f32 %v339_v37, %v18_v32  ;;  %v473_v43 = vadd.f32 %v472_v39, %v410_v34  ;;  %v34_v32 = vld [vmem:[%s747_s0 + $0xd0] sm:$0xff]  ;;  %v426_v34 = vmul.f32 %v33_v28, %v33_v28 }
  0x16   :  { %v341_v45 = vadd.f32 %v340_v41, %v19_v36  ;;  %v474_v47 = vadd.f32 %v473_v43, %v411_v38  ;;  %v35_v36 = vld [vmem:[%s747_s0 + $0xd8] sm:$0xff]  ;;  %v427_v38 = vmul.f32 %v34_v32, %v34_v32 }
  0x18   :  { %v342_v49 = vadd.f32 %v341_v45, %v20_v40  ;;  %v475_v51 = vadd.f32 %v474_v47, %v412_v42  ;;  %v36_v40 = vld [vmem:[%s747_s0 + $0xe0] sm:$0xff]  ;;  %v428_v42 = vmul.f32 %v35_v36, %v35_v36 }
  0x1a   :  { %v343_v53 = vadd.f32 %v342_v49, %v21_v44  ;;  %v476_v55 = vadd.f32 %v475_v51, %v413_v46  ;;  %v37_v44 = vld [vmem:[%s747_s0 + $0xe8] sm:$0xff]  ;;  %v429_v46 = vmul.f32 %v36_v40, %v36_v40 }
  0x1c   :  { %v344_v57 = vadd.f32 %v343_v53, %v22_v48  ;;  %v477_v59 = vadd.f32 %v476_v55, %v414_v50  ;;  %v38_v48 = vld [vmem:[%s747_s0 + $0xf0] sm:$0xff]  ;;  %v430_v50 = vmul.f32 %v37_v44, %v37_v44 }
  0x1e   :  { %v345_v61 = vadd.f32 %v344_v57, %v23_v52  ;;  %v478_v63 = vadd.f32 %v477_v59, %v415_v54  ;;  %v39_v52 = vld [vmem:[%s747_s0 + $0xf8] sm:$0xff]  ;;  %v431_v54 = vmul.f32 %v38_v48, %v38_v48 }
  0x20   :  { %v346_v1 = vadd.f32 %v345_v61, %v24_v56  ;;  %v479_v3 = vadd.f32 %v478_v63, %v416_v58  ;;  %v40_v56 = vld [vmem:[%s747_s0 + $0x100] sm:$0xff]  ;;  %v432_v58 = vmul.f32 %v39_v52, %v39_v52 }
  0x22   :  { %v347_v5 = vadd.f32 %v346_v1, %v25_v60  ;;  %v480_v7 = vadd.f32 %v479_v3, %v417_v62  ;;  %v41_v60 = vld [vmem:[%s747_s0 + $0x108] sm:$0xff]  ;;  %v433_v62 = vmul.f32 %v40_v56, %v40_v56 }
  0x24   :  { %v348_v9 = vadd.f32 %v347_v5, %v26_v0  ;;  %v481_v11 = vadd.f32 %v480_v7, %v418_v2  ;;  %v42_v0 = vld [vmem:[%s747_s0 + $0x110] sm:$0xff]  ;;  %v434_v2 = vmul.f32 %v41_v60, %v41_v60 }
  0x26   :  { %v349_v13 = vadd.f32 %v348_v9, %v27_v4  ;;  %v482_v15 = vadd.f32 %v481_v11, %v419_v6  ;;  %v43_v4 = vld [vmem:[%s747_s0 + $0x118] sm:$0xff]  ;;  %v435_v6 = vmul.f32 %v42_v0, %v42_v0 }
  0x28   :  { %v350_v17 = vadd.f32 %v349_v13, %v28_v8  ;;  %v483_v19 = vadd.f32 %v482_v15, %v420_v10  ;;  %v44_v8 = vld [vmem:[%s747_s0 + $0x120] sm:$0xff]  ;;  %v436_v10 = vmul.f32 %v43_v4, %v43_v4 }
  0x2a   :  { %v351_v21 = vadd.f32 %v350_v17, %v29_v12  ;;  %v484_v23 = vadd.f32 %v483_v19, %v421_v14  ;;  %v45_v12 = vld [vmem:[%s747_s0 + $0x128] sm:$0xff]  ;;  %v437_v14 = vmul.f32 %v44_v8, %v44_v8 }
  0x2c   :  { %v352_v25 = vadd.f32 %v351_v21, %v30_v16  ;;  %v485_v27 = vadd.f32 %v484_v23, %v422_v18  ;;  %v46_v16 = vld [vmem:[%s747_s0 + $0x130] sm:$0xff]  ;;  %v438_v18 = vmul.f32 %v45_v12, %v45_v12 }
  0x2e   :  { %v353_v29 = vadd.f32 %v352_v25, %v31_v20  ;;  %v486_v31 = vadd.f32 %v485_v27, %v423_v22  ;;  %v47_v20 = vld [vmem:[%s747_s0 + $0x138] sm:$0xff]  ;;  %v439_v22 = vmul.f32 %v46_v16, %v46_v16 }
  0x30   :  { %v354_v33 = vadd.f32 %v353_v29, %v32_v24  ;;  %v487_v35 = vadd.f32 %v486_v31, %v424_v26  ;;  %v48_v24 = vld [vmem:[%s747_s0 + $0x140] sm:$0xff]  ;;  %v440_v26 = vmul.f32 %v47_v20, %v47_v20 }
  0x32   :  { %v355_v37 = vadd.f32 %v354_v33, %v33_v28  ;;  %v488_v39 = vadd.f32 %v487_v35, %v425_v30  ;;  %v49_v28 = vld [vmem:[%s747_s0 + $0x148] sm:$0xff]  ;;  %v441_v30 = vmul.f32 %v48_v24, %v48_v24 }
  0x34   :  { %v356_v41 = vadd.f32 %v355_v37, %v34_v32  ;;  %v489_v43 = vadd.f32 %v488_v39, %v426_v34  ;;  %v50_v32 = vld [vmem:[%s747_s0 + $0x150] sm:$0xff]  ;;  %v442_v34 = vmul.f32 %v49_v28, %v49_v28 }
  0x36   :  { %v357_v45 = vadd.f32 %v356_v41, %v35_v36  ;;  %v490_v47 = vadd.f32 %v489_v43, %v427_v38  ;;  %v51_v36 = vld [vmem:[%s747_s0 + $0x158] sm:$0xff]  ;;  %v443_v38 = vmul.f32 %v50_v32, %v50_v32 }
  0x38   :  { %v358_v49 = vadd.f32 %v357_v45, %v36_v40  ;;  %v491_v51 = vadd.f32 %v490_v47, %v428_v42  ;;  %v52_v40 = vld [vmem:[%s747_s0 + $0x160] sm:$0xff]  ;;  %v444_v42 = vmul.f32 %v51_v36, %v51_v36 }
  0x3a   :  { %v359_v53 = vadd.f32 %v358_v49, %v37_v44  ;;  %v492_v55 = vadd.f32 %v491_v51, %v429_v46  ;;  %v53_v44 = vld [vmem:[%s747_s0 + $0x168] sm:$0xff]  ;;  %v445_v46 = vmul.f32 %v52_v40, %v52_v40 }
  0x3c   :  { %v360_v57 = vadd.f32 %v359_v53, %v38_v48  ;;  %v493_v59 = vadd.f32 %v492_v55, %v430_v50  ;;  %v54_v48 = vld [vmem:[%s747_s0 + $0x170] sm:$0xff]  ;;  %v446_v50 = vmul.f32 %v53_v44, %v53_v44 }
  0x3e   :  { %v361_v61 = vadd.f32 %v360_v57, %v39_v52  ;;  %v494_v63 = vadd.f32 %v493_v59, %v431_v54  ;;  %v55_v52 = vld [vmem:[%s747_s0 + $0x178] sm:$0xff]  ;;  %v447_v54 = vmul.f32 %v54_v48, %v54_v48 }
  0x40   :  { %v362_v1 = vadd.f32 %v361_v61, %v40_v56  ;;  %v495_v3 = vadd.f32 %v494_v63, %v432_v58  ;;  %v56_v56 = vld [vmem:[%s747_s0 + $0x180] sm:$0xff]  ;;  %v448_v58 = vmul.f32 %v55_v52, %v55_v52 }
  0x42   :  { %v363_v5 = vadd.f32 %v362_v1, %v41_v60  ;;  %v496_v7 = vadd.f32 %v495_v3, %v433_v62  ;;  %v57_v60 = vld [vmem:[%s747_s0 + $0x188] sm:$0xff]  ;;  %v449_v62 = vmul.f32 %v56_v56, %v56_v56 }
  0x44   :  { %v364_v9 = vadd.f32 %v363_v5, %v42_v0  ;;  %v497_v11 = vadd.f32 %v496_v7, %v434_v2  ;;  %v58_v0 = vld [vmem:[%s747_s0 + $0x190] sm:$0xff]  ;;  %v450_v2 = vmul.f32 %v57_v60, %v57_v60 }
  0x46   :  { %v365_v13 = vadd.f32 %v364_v9, %v43_v4  ;;  %v498_v15 = vadd.f32 %v497_v11, %v435_v6  ;;  %v59_v4 = vld [vmem:[%s747_s0 + $0x198] sm:$0xff]  ;;  %v451_v6 = vmul.f32 %v58_v0, %v58_v0 }
  0x48   :  { %v366_v17 = vadd.f32 %v365_v13, %v44_v8  ;;  %v499_v19 = vadd.f32 %v498_v15, %v436_v10  ;;  %v60_v8 = vld [vmem:[%s747_s0 + $0x1a0] sm:$0xff]  ;;  %v452_v10 = vmul.f32 %v59_v4, %v59_v4 }
  0x4a   :  { %v367_v21 = vadd.f32 %v366_v17, %v45_v12  ;;  %v500_v23 = vadd.f32 %v499_v19, %v437_v14  ;;  %v61_v12 = vld [vmem:[%s747_s0 + $0x1a8] sm:$0xff]  ;;  %v453_v14 = vmul.f32 %v60_v8, %v60_v8 }
  0x4c   :  { %v368_v25 = vadd.f32 %v367_v21, %v46_v16  ;;  %v501_v27 = vadd.f32 %v500_v23, %v438_v18  ;;  %v62_v16 = vld [vmem:[%s747_s0 + $0x1b0] sm:$0xff]  ;;  %v454_v18 = vmul.f32 %v61_v12, %v61_v12 }
  0x4e   :  { %v369_v29 = vadd.f32 %v368_v25, %v47_v20  ;;  %v502_v31 = vadd.f32 %v501_v27, %v439_v22  ;;  %v63_v20 = vld [vmem:[%s747_s0 + $0x1b8] sm:$0xff]  ;;  %v455_v22 = vmul.f32 %v62_v16, %v62_v16 }
  0x50   :  { %v370_v33 = vadd.f32 %v369_v29, %v48_v24  ;;  %v503_v35 = vadd.f32 %v502_v31, %v440_v26  ;;  %v64_v24 = vld [vmem:[%s747_s0 + $0x1c0] sm:$0xff]  ;;  %v456_v26 = vmul.f32 %v63_v20, %v63_v20 }
  0x52   :  { %v371_v37 = vadd.f32 %v370_v33, %v49_v28  ;;  %v504_v39 = vadd.f32 %v503_v35, %v441_v30  ;;  %v65_v28 = vld [vmem:[%s747_s0 + $0x1c8] sm:$0xff]  ;;  %v457_v30 = vmul.f32 %v64_v24, %v64_v24 }
  0x54   :  { %v372_v41 = vadd.f32 %v371_v37, %v50_v32  ;;  %v505_v43 = vadd.f32 %v504_v39, %v442_v34  ;;  %v66_v32 = vld [vmem:[%s747_s0 + $0x1d0] sm:$0xff]  ;;  %v458_v34 = vmul.f32 %v65_v28, %v65_v28 }
  0x56   :  { %v373_v45 = vadd.f32 %v372_v41, %v51_v36  ;;  %v506_v47 = vadd.f32 %v505_v43, %v443_v38  ;;  %v67_v36 = vld [vmem:[%s747_s0 + $0x1d8] sm:$0xff]  ;;  %v459_v38 = vmul.f32 %v66_v32, %v66_v32 }
  0x58   :  { %v374_v49 = vadd.f32 %v373_v45, %v52_v40  ;;  %v507_v51 = vadd.f32 %v506_v47, %v444_v42  ;;  %v68_v40 = vld [vmem:[%s747_s0 + $0x1e0] sm:$0xff]  ;;  %v460_v42 = vmul.f32 %v67_v36, %v67_v36 }
  0x5a   :  { %v375_v53 = vadd.f32 %v374_v49, %v53_v44  ;;  %v508_v55 = vadd.f32 %v507_v51, %v445_v46  ;;  %v69_v44 = vld [vmem:[%s747_s0 + $0x1e8] sm:$0xff]  ;;  %v461_v46 = vmul.f32 %v68_v40, %v68_v40 }
  0x5c   :  { %v376_v57 = vadd.f32 %v375_v53, %v54_v48  ;;  %v509_v59 = vadd.f32 %v508_v55, %v446_v50  ;;  %v70_v48 = vld [vmem:[%s747_s0 + $0x1f0] sm:$0xff]  ;;  %v462_v50 = vmul.f32 %v69_v44, %v69_v44 }
  0x5e   :  { %v377_v61 = vadd.f32 %v376_v57, %v55_v52  ;;  %v510_v63 = vadd.f32 %v509_v59, %v447_v54  ;;  %v71_v52 = vld [vmem:[%s747_s0 + $0x1f8] sm:$0xff]  ;;  %v463_v54 = vmul.f32 %v70_v48, %v70_v48 }
  0x5f   :  { %v464_v57 = vmul.f32 %v71_v52, %v71_v52 }
  0x60   :  { %v378_v1 = vadd.f32 %v377_v61, %v56_v56  ;;  %v511_v3 = vadd.f32 %v510_v63, %v448_v58 }
  0x62   :  { %v379_v5 = vadd.f32 %v378_v1, %v57_v60  ;;  %v512_v7 = vadd.f32 %v511_v3, %v449_v62 }
  0x64   :  { %v380_v9 = vadd.f32 %v379_v5, %v58_v0  ;;  %v513_v11 = vadd.f32 %v512_v7, %v450_v2 }
  0x66   :  { %v381_v13 = vadd.f32 %v380_v9, %v59_v4  ;;  %v514_v15 = vadd.f32 %v513_v11, %v451_v6 }
  0x68   :  { %v382_v17 = vadd.f32 %v381_v13, %v60_v8  ;;  %v515_v19 = vadd.f32 %v514_v15, %v452_v10 }
  0x6a   :  { %v383_v21 = vadd.f32 %v382_v17, %v61_v12  ;;  %v516_v23 = vadd.f32 %v515_v19, %v453_v14 }
  0x6c   :  { %v384_v25 = vadd.f32 %v383_v21, %v62_v16  ;;  %v517_v27 = vadd.f32 %v516_v23, %v454_v18 }
  0x6e   :  { %v385_v29 = vadd.f32 %v384_v25, %v63_v20  ;;  %v518_v31 = vadd.f32 %v517_v27, %v455_v22 }
  0x70   :  { %v386_v33 = vadd.f32 %v385_v29, %v64_v24  ;;  %v519_v35 = vadd.f32 %v518_v31, %v456_v26 }
  0x72   :  { %v387_v37 = vadd.f32 %v386_v33, %v65_v28  ;;  %v520_v39 = vadd.f32 %v519_v35, %v457_v30 }
  0x74   :  { %v388_v41 = vadd.f32 %v387_v37, %v66_v32  ;;  %v521_v43 = vadd.f32 %v520_v39, %v458_v34 }
  0x76   :  { %v389_v45 = vadd.f32 %v388_v41, %v67_v36  ;;  %v522_v47 = vadd.f32 %v521_v43, %v459_v38 }
  0x78   :  { %v390_v49 = vadd.f32 %v389_v45, %v68_v40  ;;  %v523_v51 = vadd.f32 %v522_v47, %v460_v42 }
  0x7a   :  { %v391_v53 = vadd.f32 %v390_v49, %v69_v44  ;;  %v524_v55 = vadd.f32 %v523_v51, %v461_v46 }
  0x7c   :  { %v392_v56 = vadd.f32 %v391_v53, %v70_v48  ;;  %v525_v58 = vadd.f32 %v524_v55, %v462_v50 }
  0x7e   :  { %v393_v59 = vadd.f32 %v392_v56, %v71_v52  ;;  %v526_v60 = vadd.f32 %v525_v58, %v463_v54 }
  0x80   :  { %v394_v61 = vrot.slane %v393_v59, 4  ;;  %v527_v62 = vadd.f32 %v526_v60, %v464_v57 }
  0x82   :  { %v395_v63 = vadd.f32 %v394_v61, %v393_v59  ;;  %v528_v0 = vrot.slane %v527_v62, 4 }
  0x84   :  { %v396_v1 = vrot.slane %v395_v63, 2  ;;  %v529_v2 = vadd.f32 %v528_v0, %v527_v62 }
  0x86   :  { %v397_v3 = vadd.f32 %v396_v1, %v395_v63  ;;  %v530_v4 = vrot.slane %v529_v2, 2 }
  0x88   :  { %v398_v5 = vrot.slane %v397_v3, 1  ;;  %v531_v6 = vadd.f32 %v530_v4, %v529_v2 }
  0x8a   :  { %v399_v7 = vadd.f32 %v398_v5, %v397_v3  ;;  %v532_v8 = vrot.slane %v531_v6, 1 }
  0x8c   :  { %400 = vst [vmem:[%s748_s1] sm:$0x1] %v399_v7  ;;  %v533_v9 = vadd.f32 %v532_v8, %v531_v6 }
  0x8e   :  { %534 = vst [vmem:[%s748_s1 + $0x1] sm:$0x1] %v533_v9 }

// kernel: resblk_forward.4
= control target key start
LH: loop header
LB: loop body
LE: loop exit
PB: predicated region body
PF: predicated region fallthrough
CT: control target
= control target key end

     0   :  { %s3325_s21 = smov 0   ;;  %s4053_s0 = inlined_call_operand.vmem [shape: f32[4,10,18,128], index: 0, kind: input, shape index: {}]   ;;  %s4054_s1 = inlined_call_operand.vmem [shape: bf16[9,128,128], index: 1, kind: input, shape index: {}]   ;;  %s4055_s2 = inlined_call_operand.vmem [shape: f32[1,128], index: 2, kind: input, shape index: {}]   ;;  %s4056_s3 = inlined_call_operand.vmem [shape: f32[1,128], index: 3, kind: input, shape index: {}]   ;;  %s4057_s4 = inlined_call_operand.vmem [shape: f32[1,128], index: 4, kind: input, shape index: {}]   ;;  %s4058_s5 = inlined_call_operand.vmem [shape: f32[4,8,16,128], index: 5, kind: output, shape index: {0}]   ;;  %s4059_s6 = inlined_call_operand.vmem [shape: f32[4,2,128], index: 6, kind: output, shape index: {1}]  }
   0x1 LB: > { %s2476_s22 = sadd.s32 4294967295, %s3288_s21   ;;  %p2480_p0 = scmp.ge.s32.totalorder %s3288_s21, 1  ;;  %s3288_s21 = sphi %s3325_s21, %s17_s21  }
   0x2   : > { %p215_p1 = scmp.lt.s32.totalorder %s3288_s21, 5 }
   0x4   : > { %p216_p2 = pnand %p2480_p0, %p215_p1 }
   0x5   : > { %v3148_v0 = vld [vmem:[%s4054_s1 + $0x100] sm:$0xff] (!%p216_p2)   ;;  %p249_p3 = scmp.lt.s32.totalorder (!%p216_p2), %s2476_s22, 3  ;;  %v3150_v2 = vld [vmem:[%s4054_s1 + $0x108] sm:$0xff] (!%p216_p2)   ;;  %v3152_v4 = vld [vmem:[%s4054_s1 + $0x110] sm:$0xff] (!%p216_p2)   ;;  %vm682_vm0 = vsmask.f32 (!%p216_p2), 7424 }
   0x6   : > { %219 = sbr.rel (%p216_p2) target bundleno = 465 (0x1d1), region = 40  ;;  %v3149_v1 = vld [vmem:[%s4054_s1 + $0x40] sm:$0xff] (!%p216_p2)   ;;  %2835 = vmatprep.subr.bf16.mxu0 (!%p216_p2), %v3148_v0  ;;  %v3151_v3 = vld [vmem:[%s4054_s1 + $0x48] sm:$0xff] (!%p216_p2)   ;;  %v3153_v5 = vld [vmem:[%s4054_s1 + $0x50] sm:$0xff] (!%p216_p2)   ;;  %vm1093_vm1 = vcmask (!%p216_p2), 1046528  }
   0x7   : > { %2707 = vmatprep.subr.bf16.mxu1 (!%p216_p2), %v3149_v1  ;;  %2836 = vmatpush3.bf16.msra.mxu0 (!%p216_p2), %v3148_v0  ;;  %v3154_v6 = vld [vmem:[%s4054_s1 + $0x118] sm:$0xff] (!%p216_p2)   ;;  %v3156_v8 = vld [vmem:[%s4054_s1 + $0x120] sm:$0xff] (!%p216_p2)   ;;  %v3158_v10 = vld [vmem:[%s4054_s1 + $0x128] sm:$0xff] (!%p216_p2)  }
   0x8   : > { %2708 = vmatpush3.bf16.msra.mxu1 (!%p216_p2), %v3149_v1  ;;  %2837 = vmatprep.subr.bf16.mxu0 (!%p216_p2), %v3150_v2  ;;  %v3155_v7 = vld [vmem:[%s4054_s1 + $0x58] sm:$0xff] (!%p216_p2)   ;;  %v3157_v9 = vld [vmem:[%s4054_s1 + $0x60] sm:$0xff] (!%p216_p2)   ;;  %v3159_v11 = vld [vmem:[%s4054_s1 + $0x68] sm:$0xff] (!%p216_p2)  }
   0x9   : > { %2709 = vmatprep.subr.bf16.mxu1 (!%p216_p2), %v3151_v3  ;;  %v3383_v15 = vld [vmem:[%s4056_s3] ss:$0 sm:$0xff] (!%p216_p2)  ;;  %v3160_v26 = vld [vmem:[%s4054_s1 + $0x130] sm:$0xff] (!%p216_p2)   ;;  %v3162_v35 = vld [vmem:[%s4054_s1 + $0x138] sm:$0xff] (!%p216_p2)  }
   0xa   : > { %v3388_v16 = vld [vmem:[%s4057_s4] ss:$0 sm:$0xff] (!%p216_p2)  ;;  %v3161_v31 = vld [vmem:[%s4054_s1 + $0x70] sm:$0xff] (!%p216_p2)   ;;  %v3163_v45 = vld [vmem:[%s4054_s1 + $0x78] sm:$0xff] (!%p216_p2)  }
   0xb   : > { %2838 = vmatpush3.bf16.msra.mxu0 (!%p216_p2), %v3150_v2  ;;  %v3438_v54 = vld [vmem:[%s4054_s1 + $0x140] sm:$0xff] (!%p216_p2)  }
   0xc   : > { %2710 = vmatpush3.bf16.msra.mxu1 (!%p216_p2), %v3151_v3  ;;  %2839 = vmatprep.subr.bf16.mxu0 (!%p216_p2), %v3152_v4  ;;  %v3450_v62 = vld [vmem:[%s4054_s1] sm:$0xff] (!%p216_p2)  }
   0xd   : > { %s4061_s22 = smov (!%p249_p3, %s2476_s22), 3  ;;  %2711 = vmatprep.subr.bf16.mxu1 %v3153_v5 }
   0xe   : > { %s3139_s15 = smul.u32 240, %s4061_s22  ;;  %s2562_s29 = sshll.u32 %s4061_s22, 7 }
   0xf   : > { %2840 = vmatpush3.bf16.msra.mxu0 %v3152_v4  ;;  %s3978_s10 = scalar_lea.vmem %s4058_s5, %s2562_s29  ;;  %s2484_s11 = sshll.u32 %s4061_s22, 1 }
  0x10   : > { %2712 = vmatpush3.bf16.msra.mxu1 %v3153_v5  ;;  %2841 = vmatprep.subr.bf16.mxu0 %v3154_v6  ;;  %s3369_s24 = scalar_lea.vmem %s4053_s0, %s3139_s15  ;;  %s262_s14 = scalar_lea.vmem %s4059_s6, %s2484_s11 }
  0x11   : > { %2713 = vmatprep.subr.bf16.mxu1 %v3155_v7  ;;  %v264_v12 = vld [vmem:[%s3369_s24] sm:$0xff]  ;;  %v265_v13 = vld [vmem:[%s3369_s24 + $0x8] sm:$0xff]  ;;  %v266_v14 = vld [vmem:[%s3369_s24 + $0x10] sm:$0x3] }
  0x12   : > { %v267_v17 = vld [vmem:[%s3369_s24 + $0x18] sm:$0xff]  ;;  %v301_v18 = vmul.f32 %v3383_v15, %v264_v12  ;;  %v302_v19 = vmul.f32 %v3383_v15, %v265_v13  ;;  %v303_v20 = vmul.f32 %v3383_v15, %v266_v14  ;;  %v268_v21 = vld [vmem:[%s3369_s24 + $0x20] sm:$0xff]  ;;  %v269_v22 = vld [vmem:[%s3369_s24 + $0x28] sm:$0x3] }
  0x13   : > { %2842 = vmatpush3.bf16.msra.mxu0 %v3154_v6  ;;  %v304_v23 = vmul.f32 %v3383_v15, %v267_v17  ;;  %v305_v24 = vmul.f32 %v3383_v15, %v268_v21  ;;  %v306_v25 = vmul.f32 %v3383_v15, %v269_v22  ;;  %v270_v30 = vld [vmem:[%s3369_s24 + $0x30] sm:$0xff]  ;;  %v271_v38 = vld [vmem:[%s3369_s24 + $0x38] sm:$0xff]  ;;  %v272_v39 = vld [vmem:[%s3369_s24 + $0x40] sm:$0x3] }
  0x14   : > { %2714 = vmatpush3.bf16.msra.mxu1 %v3155_v7  ;;  %2843 = vmatprep.subr.bf16.mxu0 %v3156_v8  ;;  %v338_v27 = vadd.f32 %v3388_v16, %v301_v18  ;;  %v339_v28 = vadd.f32 %v3388_v16, %v302_v19  ;;  %v340_v29 = vadd.f32 %v3388_v16, %v303_v20  ;;  %v273_v56 = vld [vmem:[%s3369_s24 + $0x48] sm:$0xff]  ;;  %v274_v57 = vld [vmem:[%s3369_s24 + $0x50] sm:$0xff]  ;;  %v275_v60 = vld [vmem:[%s3369_s24 + $0x58] sm:$0x3] }
  0x15   : > { %2715 = vmatprep.subr.bf16.mxu1 %v3157_v9  ;;  %v341_v32 = vadd.f32 %v3388_v16, %v304_v23  ;;  %v342_v33 = vadd.f32 %v3388_v16, %v305_v24  ;;  %v343_v34 = vadd.f32 %v3388_v16, %v306_v25  ;;  %v307_v40 = vmul.f32 %v3383_v15, %v270_v30 }
  0x16   : > { %v3415_v36 = vmul.f32 0.5, %v338_v27  ;;  %v398_v37 = vmul.f32 0.70710677, %v338_v27  ;;  %v3420_v41 = vmul.f32 0.5, %v339_v28  ;;  %v3422_v42 = vmul.f32 0.5, %v340_v29 }
  0x17   : > { %2844 = vmatpush3.bf16.msra.mxu0 %v3156_v8  ;;  %v399_v43 = vmul.f32 0.70710677, %v339_v28  ;;  %v400_v44 = vmul.f32 0.70710677, %v340_v29  ;;  %v3427_v46 = vmul.f32 0.5, %v341_v32  ;;  %v308_v50 = vmul.f32 %v3383_v15, %v271_v38  ;;  %v276_v8 = vld [vmem:[%s3369_s24 + $0x60] sm:$0xff] }
  0x18   : > { %2716 = vmatpush3.bf16.msra.mxu1 %v3157_v9  ;;  %2845 = vmatprep.subr.bf16.mxu0 %v3158_v10  ;;  %3220 = verf.f32 %v398_v37  ;;  %v401_v47 = vmul.f32 0.70710677, %v341_v32  ;;  %v402_v48 = vmul.f32 0.70710677, %v342_v33  ;;  %v403_v49 = vmul.f32 0.70710677, %v343_v34 }
  0x19   : > { %2717 = vmatprep.subr.bf16.mxu1 %v3159_v11  ;;  %3222 = verf.f32 %v399_v43  ;;  %v309_v51 = vmul.f32 %v3383_v15, %v272_v39  ;;  %v3431_v52 = vmul.f32 0.5, %v342_v33  ;;  %v3433_v53 = vmul.f32 0.5, %v343_v34  ;;  %v277_v9 = vld [vmem:[%s3369_s24 + $0x68] sm:$0xff] }
  0x1a   : > { %3224 = verf.f32 %v400_v44  ;;  %v344_v55 = vadd.f32 %v3388_v16, %v307_v40  ;;  %v345_v58 = vadd.f32 %v3388_v16, %v308_v50  ;;  %v310_v61 = vmul.f32 %v3383_v15, %v273_v56  ;;  %v281_v56 = vld [vmem:[%s3369_s24 + $0x88] sm:$0x3] }
  0x1b   : > { %2846 = vmatpush3.bf16.msra.mxu0 %v3158_v10  ;;  %3226 = verf.f32 %v401_v47  ;;  %v346_v59 = vadd.f32 %v3388_v16, %v309_v51  ;;  %v311_v1 = vmul.f32 %v3383_v15, %v274_v57  ;;  %v312_v6 = vmul.f32 %v3383_v15, %v275_v60 }
  0x1c   : > { %2718 = vmatpush3.bf16.msra.mxu1 %v3159_v11  ;;  %2847 = vmatprep.subr.bf16.mxu0 %v3160_v26  ;;  %3228 = verf.f32 %v402_v48  ;;  %v3452_v63 = vmul.f32 0.5, %v344_v55  ;;  %v404_v0 = vmul.f32 0.70710677, %v344_v55  ;;  %v3455_v2 = vmul.f32 0.5, %v345_v58  ;;  %v278_v11 = vld [vmem:[%s3369_s24 + $0x70] sm:$0x3] }
  0x1d   : > { %2719 = vmatprep.subr.bf16.mxu1 %v3161_v31  ;;  %3230 = verf.f32 %v403_v49  ;;  %v3457_v3 = vmul.f32 0.5, %v346_v59  ;;  %v405_v4 = vmul.f32 0.70710677, %v345_v58  ;;  %v406_v5 = vmul.f32 0.70710677, %v346_v59  ;;  %v280_v49 = vld [vmem:[%s3369_s24 + $0x80] sm:$0xff] }
  0x1e   : > { %3232 = verf.f32 %v404_v0  ;;  %v347_v7 = vadd.f32 %v3388_v16, %v310_v61  ;;  %v348_v10 = vadd.f32 %v3388_v16, %v311_v1  ;;  %v313_v12 = vmul.f32 %v3383_v15, %v276_v8 }
  0x1f   : > { %2848 = vmatpush3.bf16.msra.mxu0 %v3160_v26  ;;  %3234 = verf.f32 %v405_v4  ;;  %v314_v13 = vmul.f32 %v3383_v15, %v277_v9  ;;  %v349_v14 = vadd.f32 %v3388_v16, %v312_v6  ;;  %v315_v21 = vmul.f32 %v3383_v15, %v278_v11 }
  0x20   : > { %2720 = vmatpush3.bf16.msra.mxu1 %v3161_v31  ;;  %2849 = vmatprep.subr.bf16.mxu0 %v3162_v35  ;;  %3236 = verf.f32 %v406_v5  ;;  %v3469_v17 = vmul.f32 0.5, %v347_v7  ;;  %v407_v18 = vmul.f32 0.70710677, %v347_v7  ;;  %v3472_v19 = vmul.f32 0.5, %v348_v10  ;;  %v279_v31 = vld [vmem:[%s3369_s24 + $0x78] sm:$0xff] }
  0x21   : > { %2721 = vmatprep.subr.bf16.mxu1 %v3163_v45  ;;  %v408_v20 = vmul.f32 0.70710677, %v348_v10  ;;  %v350_v22 = vadd.f32 %v3388_v16, %v313_v12  ;;  %v3476_v24 = vmul.f32 0.5, %v349_v14  ;;  %v409_v25 = vmul.f32 0.70710677, %v349_v14 }
  0x22   : > { %v3221_v23 = vpop.eup %3220  ;;  %3238 = verf.f32 %v407_v18  ;;  %v351_v26 = vadd.f32 %v3388_v16, %v314_v13  ;;  %v352_v29 = vadd.f32 %v3388_v16, %v315_v21  ;;  %v3493_v57 = vmul.f32 %v3383_v15, %v279_v31 }
  0x23   : > { %2850 = vmatpush3.bf16.msra.mxu0 %v3162_v35  ;;  %v3223_v27 = vpop.eup %3222  ;;  %v458_v28 = vadd.f32 1.0, %v3221_v23  ;;  %3240 = verf.f32 %v408_v20  ;;  %v3480_v30 = vmul.f32 0.5, %v350_v22  ;;  %v410_v35 = vmul.f32 0.70710677, %v350_v22 }
  0x24   : > { %2722 = vmatpush3.bf16.msra.mxu1 %v3163_v45  ;;  %2867 = vmatprep.subr.bf16.mxu0 %v3438_v54  ;;  %v3225_v32 = vpop.eup %3224  ;;  %v459_v33 = vadd.f32 1.0, %v3223_v27  ;;  %3242 = verf.f32 %v409_v25  ;;  %v3483_v34 = vmul.f32 0.5, %v351_v26  ;;  %v3486_v40 = vmul.f32 0.5, %v352_v29 }
  0x25   : > { %2739 = vmatprep.subr.bf16.mxu1 %v3450_v62  ;;  %v3227_v37 = vpop.eup %3226  ;;  %v460_v38 = vadd.f32 1.0, %v3225_v32  ;;  %v488_v39 = vmul.f32 %v458_v28, %v3415_v36  ;;  %v411_v43 = vmul.f32 0.70710677, %v351_v26  ;;  %v412_v48 = vmul.f32 0.70710677, %v352_v29 }
  0x26   : > { %v3229_v44 = vpop.eup %3228  ;;  %v489_v45 = vmul.f32 %v459_v33, %v3420_v41  ;;  %v461_v47 = vadd.f32 1.0, %v3227_v37  ;;  %3244 = verf.f32 %v410_v35  ;;  %v318_v18 = vmul.f32 %v3383_v15, %v281_v56 }
  0x27   : > { %v3231_v50 = vpop.eup %3230  ;;  %v490_v51 = vmul.f32 %v460_v38, %v3422_v42  ;;  %v462_v55 = vadd.f32 1.0, %v3229_v44  ;;  %3246 = verf.f32 %v411_v43  ;;  %v3502_v42 = vmul.f32 %v3383_v15, %v280_v49 }
  0x28   : > { %v3233_v36 = vpop.eup %3232  ;;  %v3495_v58 = vpack.c.bf16 %v489_v45, %v488_v39  ;;  %v463_v59 = vadd.f32 1.0, %v3231_v50  ;;  %v491_v60 = vmul.f32 %v461_v47, %v3427_v46  ;;  %3248 = verf.f32 %v412_v48  ;;  %v3167_v50 = vld [vmem:[%s4054_s1 + $0x8] sm:$0xff]  }
  0x29   : > { %v3235_v41 = vpop.eup %3234  ;;  %v3498_v61 = vpack.c.bf16 %v490_v51, %v490_v51  ;;  %v492_v0 = vmul.f32 %v462_v55, %v3431_v52  ;;  %v464_v1 = vadd.f32 1.0, %v3233_v36 }
  0x2a   : > { %v3237_v4 = vpop.eup %3236  ;;  %v684_v5 = vshrl.u32 %v3495_v58, 16  ;;  %v686_v6 = vshll.u32 %v3495_v58, 16  ;;  %v493_v7 = vmul.f32 %v463_v59, %v3433_v53  ;;  %v465_v8 = vadd.f32 1.0, %v3235_v41 }
  0x2b   : > { %v691_v46 = vshll.u32 %v3498_v61, 16  ;;  %v3508_v9 = vpack.c.bf16 %v492_v0, %v491_v60  ;;  %v466_v10 = vadd.f32 1.0, %v3237_v4  ;;  %v494_v11 = vmul.f32 %v464_v1, %v3452_v63  ;;  %v3166_v60 = vld [vmem:[%s4054_s1 + $0x148] sm:$0xff]  }
  0x2c   : > { %v3239_v52 = vpop.eup %3238  ;;  %v688_v12 = vrot.slane %v686_v6, 1  ;;  %v3511_v13 = vpack.c.bf16 %v493_v7, %v493_v7  ;;  %v495_v14 = vmul.f32 %v465_v8, %v3455_v2 }
  0x2d   : > { %v3241_v20 = vpop.eup %3240  ;;  %v693_v21 = vrot.slane %v691_v46, 1  ;;  %v696_v53 = vshrl.u32 %v3508_v9, 16  ;;  %v698_v22 = vshll.u32 %v3508_v9, 16  ;;  %v496_v23 = vmul.f32 %v466_v10, %v3457_v3  ;;  %v282_v10 = vld [vmem:[%s3369_s24 + $0x90] sm:$0xff] }
  0x2e   : > { %v3243_v25 = vpop.eup %3242  ;;  %v689_v26 = vor.u32 %v688_v12, %v684_v5  ;;  %v703_v63 = vshll.u32 %v3511_v13, 16  ;;  %v3519_v27 = vpack.c.bf16 %v495_v14, %v494_v11  ;;  %v467_v28 = vadd.f32 1.0, %v3239_v52 }
  0x2f   : > { %v700_v29 = vrot.slane %v698_v22, 1  ;;  %v3521_v31 = vpack.c.bf16 %v496_v23, %v496_v23  ;;  %v468_v2 = vadd.f32 1.0, %v3241_v20  ;;  %v469_v32 = vadd.f32 1.0, %v3243_v25  ;;  %v284_v20 = vld [vmem:[%s3369_s24 + $0xa0] sm:$0x3] }
  0x30   : > { %v3245_v33 = vpop.eup %3244  ;;  %v694_v35 = vsel %vm682_vm0, %v689_v26, %v693_v21  ;;  %v705_v37 = vrot.slane %v703_v63, 1  ;;  %v708_v38 = vshrl.u32 %v3519_v27, 16  ;;  %v710_v3 = vshll.u32 %v3519_v27, 16  ;;  %v285_v21 = vld [vmem:[%s3369_s24 + $0xa8] sm:$0xff] }
  0x31   : > { %v3247_v39 = vpop.eup %3246  ;;  %2723 = vmatprep.mubr.bf16.mxu1 %v694_v35  ;;  %v701_v43 = vor.u32 %v700_v29, %v696_v53  ;;  %v715_v44 = vshll.u32 %v3521_v31, 16  ;;  %v497_v45 = vmul.f32 %v467_v28, %v3469_v17  ;;  %v498_v47 = vmul.f32 %v468_v2, %v3472_v19  ;;  %v287_v28 = vld [vmem:[%s3369_s24 + $0xb8] sm:$0x3] }
  0x32   : > { %v3249_v48 = vpop.eup %3248  ;;  %v712_v49 = vrot.slane %v710_v3, 1  ;;  %v499_v51 = vmul.f32 %v469_v32, %v3476_v24  ;;  %v470_v55 = vadd.f32 1.0, %v3245_v33  ;;  %v471_v56 = vadd.f32 1.0, %v3247_v39  ;;  %v3169_v24 = vld [vmem:[%s4054_s1 + $0x10] sm:$0xff]  }
  0x33   : > { %v706_v36 = vsel %vm682_vm0, %v701_v43, %v705_v37  ;;  %v717_v59 = vrot.slane %v715_v44, 1  ;;  %v3537_v17 = vpack.c.bf16 %v498_v47, %v497_v45  ;;  %v472_v19 = vadd.f32 1.0, %v3249_v48  ;;  %v3170_v44 = vld [vmem:[%s4054_s1 + $0x158] sm:$0xff]  }
  0x34   : > { %2851 = vmatprep.mubr.bf16.mxu0 %v706_v36  ;;  %2724 = vmatmul.mubr.bf16.vlgmr.msra.gmra.mrb[0].mxu1 %v706_v36  ;;  %v713_v41 = vor.u32 %v712_v49, %v708_v38  ;;  %v3539_v0 = vpack.c.bf16 %v499_v51, %v499_v51  ;;  %v500_v1 = vmul.f32 %v470_v55, %v3480_v30  ;;  %v3173_v51 = vld [vmem:[%s4054_s1 + $0x20] sm:$0xff]  }
  0x35   : > { %2740 = vmatpush3.bf16.msra.mxu1 %v3450_v62  ;;  %v720_v4 = vshrl.u32 %v3537_v17, 16  ;;  %v722_v5 = vshll.u32 %v3537_v17, 16  ;;  %v501_v6 = vmul.f32 %v471_v56, %v3483_v34  ;;  %v502_v7 = vmul.f32 %v472_v19, %v3486_v40  ;;  %v3168_v40 = vld [vmem:[%s4054_s1 + $0x150] sm:$0xff]   ;;  %v288_v36 = vld [vmem:[%s3369_s24 + $0xc0] sm:$0xff]  ;;  %v289_v19 = vld [vmem:[%s3369_s24 + $0xc8] sm:$0xff] }
  0x36   : > { %v3551_v8 = vsel %vm682_vm0, %v713_v41, %v717_v59  ;;  %2741 = vmatprep.subr.bf16.mxu1 %v3167_v50  ;;  %v727_v46 = vshll.u32 %v3539_v0, 16  ;;  %v3556_v62 = vadd.f32 %v3388_v16, %v3493_v57  ;;  %v3560_v30 = vadd.f32 %v3388_v16, %v3502_v42  ;;  %v283_v42 = vld [vmem:[%s3369_s24 + $0x98] sm:$0xff]  ;;  %v3172_v41 = vld [vmem:[%s4054_s1 + $0x160] sm:$0xff]  }
  0x37   : > { %2852 = vmatmul.mubr.bf16.vlgmr.msra.gmra.mrb[0].mxu0 %v3551_v8  ;;  %2727 = vmatprep.mubr.bf16.mxu1 %v3551_v8  ;;  %v724_v34 = vrot.slane %v722_v5, 1  ;;  %v3568_v11 = vpack.c.bf16 %v501_v6, %v500_v1  ;;  %v3570_v52 = vpack.c.bf16 %v502_v7, %v502_v7  ;;  %v3573_v57 = vadd.f32 %v3388_v16, %v318_v18  ;;  %v3171_v18 = vld [vmem:[%s4054_s1 + $0x18] sm:$0xff]   ;;  %v290_v1 = vld [vmem:[%s3369_s24 + $0xd0] sm:$0x3] }
  0x38   : > { %2868 = vmatpush3.bf16.msra.mxu0 %v3438_v54  ;;  %v729_v12 = vrot.slane %v727_v46, 1  ;;  %v413_v14 = vmul.f32 0.70710677, %v3556_v62  ;;  %v286_v54 = vld [vmem:[%s3369_s24 + $0xb0] sm:$0xff]  ;;  %v414_v26 = vmul.f32 0.70710677, %v3560_v30  ;;  %v319_v33 = vmul.f32 %v3383_v15, %v282_v10 }
  0x39   : > { %2869 = vmatprep.subr.bf16.mxu0 %v3166_v60  ;;  %2742 = vmatpush3.bf16.msra.mxu1 %v3167_v50  ;;  %v725_v53 = vor.u32 %v724_v34, %v720_v4  ;;  %v732_v22 = vshrl.u32 %v3568_v11, 16  ;;  %v734_v23 = vshll.u32 %v3568_v11, 16  ;;  %v739_v25 = vshll.u32 %v3570_v52, 16  ;;  %v3175_v46 = vld [vmem:[%s4054_s1 + $0x28] sm:$0xff]  }
  0x3a   : > { %2743 = vmatprep.subr.bf16.mxu1 %v3169_v24  ;;  %v415_v63 = vmul.f32 0.70710677, %v3573_v57  ;;  %3250 = verf.f32 %v413_v14  ;;  %v320_v35 = vmul.f32 %v3383_v15, %v283_v42  ;;  %v321_v37 = vmul.f32 %v3383_v15, %v284_v20 }
  0x3b   : > { %v3591_v29 = vsel %vm682_vm0, %v725_v53, %v729_v12  ;;  %v736_v2 = vrot.slane %v734_v23, 1  ;;  %v741_v32 = vrot.slane %v739_v25, 1  ;;  %3252 = verf.f32 %v414_v26 }
  0x3c   : > { %2870 = vmatpush3.bf16.msra.mxu0 %v3166_v60  ;;  %2855 = vmatprep.mubr.bf16.mxu0 %v3591_v29  ;;  %v322_v38 = vmul.f32 %v3383_v15, %v285_v21  ;;  %3254 = verf.f32 %v415_v63  ;;  %v3600_v39 = vadd.f32 %v3388_v16, %v319_v33  ;;  %v323_v43 = vmul.f32 %v3383_v15, %v286_v54  ;;  %v3177_v54 = vld [vmem:[%s4054_s1 + $0x30] sm:$0xff]  }
  0x3d   : > { %2871 = vmatprep.subr.bf16.mxu0 %v3168_v40  ;;  %2728 = vmatmul.mubr.bf16.gmra.mrb[4].mxu1 %v3591_v29  ;;  %v737_v3 = vor.u32 %v736_v2, %v732_v22  ;;  %v357_v45 = vadd.f32 %v3388_v16, %v320_v35  ;;  %v3608_v47 = vadd.f32 %v3388_v16, %v321_v37  ;;  %v383_v7 = vmul.f32 0.5, %v3556_v62  ;;  %v3174_v22 = vld [vmem:[%s4054_s1 + $0x168] sm:$0xff]   ;;  %v3176_v33 = vld [vmem:[%s4054_s1 + $0x170] sm:$0xff]   ;;  %v3179_v35 = vld [vmem:[%s4054_s1 + $0x38] sm:$0xff]  }
  0x3e   : > { %2744 = vmatpush3.bf16.msra.mxu1 %v3169_v24  ;;  %v324_v48 = vmul.f32 %v3383_v15, %v287_v28  ;;  %v3612_v49 = vadd.f32 %v3388_v16, %v322_v38  ;;  %v416_v55 = vmul.f32 0.70710677, %v3600_v39  ;;  %v3622_v56 = vadd.f32 %v3388_v16, %v323_v43 }
  0x3f   : > { %v3615_v50 = vsel %vm682_vm0, %v737_v3, %v741_v32  ;;  %2745 = vmatprep.subr.bf16.mxu1 %v3171_v18  ;;  %v417_v59 = vmul.f32 0.70710677, %v357_v45  ;;  %v418_v60 = vmul.f32 0.70710677, %v3608_v47  ;;  %v325_v6 = vmul.f32 %v3383_v15, %v288_v36 }
  0x40   : > { %2856 = vmatmul.mubr.bf16.gmra.mrb[4].mxu0 %v3615_v50  ;;  %2731 = vmatprep.mubr.bf16.mxu1 %v3615_v50  ;;  %3256 = verf.f32 %v416_v55  ;;  %v3633_v24 = vadd.f32 %v3388_v16, %v324_v48  ;;  %v419_v4 = vmul.f32 0.70710677, %v3612_v49  ;;  %v420_v5 = vmul.f32 0.70710677, %v3622_v56 }
  0x41   : > { %2872 = vmatpush3.bf16.msra.mxu0 %v3168_v40  ;;  %3258 = verf.f32 %v417_v59  ;;  %v326_v34 = vmul.f32 %v3383_v15, %v289_v19  ;;  %v327_v42 = vmul.f32 %v3383_v15, %v290_v1  ;;  %v362_v12 = vadd.f32 %v3388_v16, %v325_v6 }
  0x42   : > { %2873 = vmatprep.subr.bf16.mxu0 %v3170_v44  ;;  %2746 = vmatpush3.bf16.msra.mxu1 %v3171_v18  ;;  %3260 = verf.f32 %v418_v60  ;;  %v421_v10 = vmul.f32 0.70710677, %v3633_v24  ;;  %v384_v14 = vmul.f32 0.5, %v3560_v30  ;;  %v385_v53 = vmul.f32 0.5, %v3573_v57 }
  0x43   : > { %2747 = vmatprep.subr.bf16.mxu1 %v3173_v51  ;;  %3262 = verf.f32 %v419_v4  ;;  %v363_v20 = vadd.f32 %v3388_v16, %v326_v34  ;;  %v364_v15 = vadd.f32 %v3388_v16, %v327_v42  ;;  %v422_v23 = vmul.f32 0.70710677, %v362_v12 }
  0x44   : > { %v3251_v40 = vpop.eup %3250  ;;  %3264 = verf.f32 %v420_v5  ;;  %v386_v32 = vmul.f32 0.5, %v3600_v39  ;;  %v387_v16 = vmul.f32 0.5, %v357_v45  ;;  %v388_v3 = vmul.f32 0.5, %v3608_v47 }
  0x45   : > { %2874 = vmatpush3.bf16.msra.mxu0 %v3170_v44  ;;  %v473_v62 = vadd.f32 1.0, %v3251_v40  ;;  %v3253_v21 = vpop.eup %3252  ;;  %3266 = verf.f32 %v421_v10  ;;  %v423_v26 = vmul.f32 0.70710677, %v363_v20  ;;  %v424_v63 = vmul.f32 0.70710677, %v364_v15 }
  0x46   : > { %2875 = vmatprep.subr.bf16.mxu0 %v3172_v41  ;;  %2748 = vmatpush3.bf16.msra.mxu1 %v3173_v51  ;;  %v3255_v25 = vpop.eup %3254  ;;  %v474_v18 = vadd.f32 1.0, %v3253_v21  ;;  %3268 = verf.f32 %v422_v23  ;;  %v389_v43 = vmul.f32 0.5, %v3612_v49  ;;  %v390_v48 = vmul.f32 0.5, %v3622_v56  ;;  %v3178_v56 = vld [vmem:[%s4054_s1 + $0x178] sm:$0xff]  }
  0x47   : > { %v503_v30 = vmul.f32 %v473_v62, %v383_v7  ;;  %2749 = vmatprep.subr.bf16.mxu1 %v3175_v46  ;;  %v475_v57 = vadd.f32 1.0, %v3255_v25  ;;  %3270 = verf.f32 %v423_v26  ;;  %v391_v60 = vmul.f32 0.5, %v3633_v24  ;;  %v3681_v24 = vld [vmem:[%s4054_s1 + $0x80] sm:$0xff]  }
  0x48   : > { %v504_v28 = vmul.f32 %v474_v18, %v384_v14  ;;  %3272 = verf.f32 %v424_v63  ;;  %v392_v1 = vmul.f32 0.5, %v362_v12  ;;  %v394_v12 = vmul.f32 0.5, %v364_v15 }
  0x49   : > { %2876 = vmatpush3.bf16.msra.mxu0 %v3172_v41  ;;  %v505_v2 = vmul.f32 %v475_v57, %v385_v53 }
  0x4a   : > { %2877 = vmatprep.subr.bf16.mxu0 %v3174_v22  ;;  %2750 = vmatpush3.bf16.msra.mxu1 %v3175_v46  ;;  %v3257_v37 = vpop.eup %3256  ;;  %v3664_v38 = vpack.c.bf16 %v504_v28, %v503_v30  ;;  %v393_v46 = vmul.f32 0.5, %v363_v20  ;;  %v3688_v20 = vld [vmem:[%s4054_s1 + $0x180] sm:$0xff]  }
  0x4b   : > { %2751 = vmatprep.subr.bf16.mxu1 %v3177_v54  ;;  %v3259_v39 = vpop.eup %3258  ;;  %v3668_v44 = vpack.c.bf16 %v505_v2, %v505_v2  ;;  %v476_v45 = vadd.f32 1.0, %v3257_v37 }
  0x4c   : > { %v3261_v51 = vpop.eup %3260  ;;  %v744_v55 = vshrl.u32 %v3664_v38, 16  ;;  %v746_v36 = vshll.u32 %v3664_v38, 16  ;;  %v477_v59 = vadd.f32 1.0, %v3259_v39 }
  0x4d   : > { %2878 = vmatpush3.bf16.msra.mxu0 %v3174_v22  ;;  %v3263_v19 = vpop.eup %3262  ;;  %v751_v47 = vshll.u32 %v3668_v44, 16  ;;  %v478_v49 = vadd.f32 1.0, %v3261_v51  ;;  %v506_v41 = vmul.f32 %v476_v45, %v386_v32 }
  0x4e   : > { %2879 = vmatprep.subr.bf16.mxu0 %v3176_v33  ;;  %2752 = vmatpush3.bf16.msra.mxu1 %v3177_v54  ;;  %v3265_v4 = vpop.eup %3264  ;;  %v748_v5 = vrot.slane %v746_v36, 1  ;;  %v507_v6 = vmul.f32 %v477_v59, %v387_v16  ;;  %v479_v7 = vadd.f32 1.0, %v3263_v19  ;;  %v1094_v59 = vrot.slane %v3495_v58, 1 }
  0x4f   : > { %2753 = vmatprep.subr.bf16.mxu1 %v3179_v35  ;;  %v3267_v10 = vpop.eup %3266  ;;  %v753_v34 = vrot.slane %v751_v47, 1  ;;  %v508_v40 = vmul.f32 %v478_v49, %v388_v3  ;;  %v480_v42 = vadd.f32 1.0, %v3265_v4 }
  0x50   : > { %v749_v14 = vor.u32 %v748_v5, %v744_v55  ;;  %v3683_v62 = vpack.c.bf16 %v507_v6, %v506_v41  ;;  %v481_v21 = vadd.f32 1.0, %v3267_v10  ;;  %v509_v53 = vmul.f32 %v479_v7, %v389_v43  ;;  %v3269_v22 = vpop.eup %3268 }
  0x51   : > { %2880 = vmatpush3.bf16.msra.mxu0 %v3176_v33  ;;  %v3690_v23 = vpack.c.bf16 %v508_v40, %v508_v40  ;;  %v510_v25 = vmul.f32 %v480_v42, %v390_v48  ;;  %v3271_v18 = vpop.eup %3270  ;;  %v482_v2 = vadd.f32 1.0, %v3269_v22  ;;  %v1097_v6 = vrot.slane %v3508_v9, 1 }
  0x52   : > { %2881 = vmatprep.subr.bf16.mxu0 %v3178_v56  ;;  %2754 = vmatpush3.bf16.msra.mxu1 %v3179_v35  ;;  %v3693_v15 = vsel %vm682_vm0, %v749_v14, %v753_v34  ;;  %v756_v30 = vshrl.u32 %v3683_v62, 16  ;;  %v758_v54 = vshll.u32 %v3683_v62, 16  ;;  %v511_v26 = vmul.f32 %v481_v21, %v391_v60  ;;  %v3273_v57 = vpop.eup %3272 }
  0x53   : > { %2771 = vmatprep.subr.bf16.mxu1 %v3681_v24  ;;  %2859 = vmatprep.mubr.bf16.mxu0 %v3693_v15  ;;  %v763_v63 = vshll.u32 %v3690_v23, 16  ;;  %v3701_v28 = vpack.c.bf16 %v510_v25, %v509_v53  ;;  %v483_v32 = vadd.f32 1.0, %v3271_v18  ;;  %v484_v35 = vadd.f32 1.0, %v3273_v57  ;;  %v3182_v25 = vld [vmem:[%s4054_s1 + $0x188] sm:$0xff]   ;;  %v3186_v57 = vld [vmem:[%s4054_s1 + $0x198] sm:$0xff]  }
  0x54   : > { %2732 = vmatmul.mubr.bf16.gmra.mrb[8].mxu1 %v3693_v15  ;;  %v760_v16 = vrot.slane %v758_v54, 1  ;;  %v3703_v33 = vpack.c.bf16 %v511_v26, %v511_v26  ;;  %v512_v39 = vmul.f32 %v482_v2, %v392_v1  ;;  %v1095_v60 = vrot.slane %v3498_v61, 1  ;;  %v3184_v54 = vld [vmem:[%s4054_s1 + $0x190] sm:$0xff]  }
  0x55   : > { %2882 = vmatpush3.bf16.msra.mxu0 %v3178_v56  ;;  %v765_v37 = vrot.slane %v763_v63, 1  ;;  %v768_v3 = vshrl.u32 %v3701_v28, 16  ;;  %v770_v43 = vshll.u32 %v3701_v28, 16  ;;  %v513_v51 = vmul.f32 %v483_v32, %v393_v46 }
  0x56   : > { %2899 = vmatprep.subr.bf16.mxu0 %v3688_v20  ;;  %v761_v45 = vor.u32 %v760_v16, %v756_v30  ;;  %v775_v48 = vshll.u32 %v3703_v33, 16  ;;  %v514_v55 = vmul.f32 %v484_v35, %v394_v12  ;;  %v1098_v7 = vrot.slane %v3511_v13, 1  ;;  %v3183_v13 = vld [vmem:[%s4054_s1 + $0x88] sm:$0xff]   ;;  %v3187_v30 = vld [vmem:[%s4054_s1 + $0x98] sm:$0xff]   ;;  %v3188_v35 = vld [vmem:[%s4054_s1 + $0x1a0] sm:$0xff]  }
  0x57   : > { %v772_v36 = vrot.slane %v770_v43, 1  ;;  %v3714_v49 = vpack.c.bf16 %v513_v51, %v512_v39  ;;  %v3729_v46 = vsel %vm1093_vm1, %v1094_v59, %v1095_v60  ;;  %v1100_v14 = vrot.slane %v3519_v27, 1  ;;  %v3191_v16 = vld [vmem:[%s4054_s1 + $0xa8] sm:$0xff]   ;;  %v3192_v59 = vld [vmem:[%s4054_s1 + $0x1b0] sm:$0xff]   ;;  %v3280_v60 = vld [vmem:[%s4056_s3] ss:$0 sm:$0xff] }
  0x58   : > { %v3712_v19 = vsel %vm682_vm0, %v761_v45, %v765_v37  ;;  %v777_v47 = vrot.slane %v775_v48, 1  ;;  %v3716_v41 = vpack.c.bf16 %v514_v55, %v514_v55  ;;  %v3735_v42 = vsel %vm1093_vm1, %v1097_v6, %v1098_v7  ;;  %v3190_v43 = vld [vmem:[%s4054_s1 + $0x1a8] sm:$0xff]   ;;  %v291_v45 = vld [vmem:[%s3369_s24 + $0xd8] sm:$0xff]  ;;  %v292_v48 = vld [vmem:[%s3369_s24 + $0xe0] sm:$0xff] }
  0x59   : > { %2860 = vmatmul.mubr.bf16.gmra.mrb[8].mxu0 %v3712_v19  ;;  %2735 = vmatprep.mubr.bf16.mxu1 %v3712_v19  ;;  %v773_v1 = vor.u32 %v772_v36, %v768_v3  ;;  %v1449_v56 = vshrl.u32 %v3714_v49, 16  ;;  %v1451_v4 = vshll.u32 %v3714_v49, 16  ;;  %v1101_v21 = vrot.slane %v3521_v31, 1  ;;  %v3195_v36 = vld [vmem:[%s4054_s1 + $0xb8] sm:$0xff]  }
  0x5a   : > { %v1456_v5 = vshll.u32 %v3716_v41, 16  ;;  %v1104_v53 = vrot.slane %v3539_v0, 1  ;;  %v3185_v0 = vld [vmem:[%s4054_s1 + $0x90] sm:$0xff]   ;;  %v1107_v18 = vrot.slane %v3570_v52, 1  ;;  %v1109_v26 = vrot.slane %v3664_v38, 1 }
  0x5b   : > { %v3724_v61 = vsel %vm682_vm0, %v773_v1, %v777_v47  ;;  %v1453_v10 = vrot.slane %v1451_v4, 1  ;;  %v3753_v22 = vsel %vm1093_vm1, %v1100_v14, %v1101_v21  ;;  %v1112_v2 = vrot.slane %v3683_v62, 1  ;;  %v3197_v4 = vld [vmem:[%s4054_s1 + $0xc0] sm:$0xff]   ;;  %v3201_v14 = vld [vmem:[%s4054_s1 + $0xd0] sm:$0xff]  }
  0x5c   : > { %2863 = vmatprep.mubr.bf16.mxu0 %v3724_v61  ;;  %2736 = vmatmul.mubr.bf16.gmra.mrb[12].mxu1 %v3724_v61  ;;  %v1458_v34 = vrot.slane %v1456_v5, 1  ;;  %v1113_v32 = vrot.slane %v3690_v23, 1  ;;  %v1115_v37 = vrot.slane %v3701_v28, 1  ;;  %v1116_v3 = vrot.slane %v3703_v33, 1  ;;  %v3193_v33 = vld [vmem:[%s4054_s1 + $0xb0] sm:$0xff]  }
  0x5d   : > { %2755 = vmatprep.mubr.bf16.mxu1 %v3495_v58  ;;  %v1454_v40 = vor.u32 %v1453_v10, %v1449_v56  ;;  %v1103_v58 = vrot.slane %v3537_v17, 1  ;;  %v1624_v51 = vrot.slane %v3714_v49, 1  ;;  %v1625_v55 = vrot.slane %v3716_v41, 1  ;;  %v3194_v56 = vld [vmem:[%s4054_s1 + $0x1b8] sm:$0xff]   ;;  %v3281_v5 = vld [vmem:[%s4057_s4] ss:$0 sm:$0xff] }
  0x5e   : > { %v3806_v23 = vsel %vm1093_vm1, %v1112_v2, %v1113_v32  ;;  %v3812_v39 = vsel %vm1093_vm1, %v1115_v37, %v1116_v3  ;;  %v328_v47 = vmul.f32 %v3280_v60, %v291_v45  ;;  %v329_v1 = vmul.f32 %v3280_v60, %v292_v48  ;;  %v3196_v10 = vld [vmem:[%s4054_s1 + $0x1c0] sm:$0xff]   ;;  %v3200_v21 = vld [vmem:[%s4054_s1 + $0x1d0] sm:$0xff]   ;;  %v3206_v32 = vld [vmem:[%s4054_s1 + $0x1e8] sm:$0xff]  }
  0x5f   : > { %v3738_v12 = vsel %vm682_vm0, %v1454_v40, %v1458_v34  ;;  %v3759_v31 = vsel %vm1093_vm1, %v1103_v58, %v1104_v53  ;;  %v3835_v41 = vsel %vm1093_vm1, %v1624_v51, %v1625_v55  ;;  %v293_v58 = vld [vmem:[%s3369_s24 + $0xe8] sm:$0x3]  ;;  %v3202_v53 = vld [vmem:[%s4054_s1 + $0x1d8] sm:$0xff]   ;;  %v3212_v51 = vld [vmem:[%s4054_s1 + $0x200] sm:$0xff]  }
  0x60   : > { %v365_v6 = vadd.f32 %v3281_v5, %v328_v47  ;;  %v366_v7 = vadd.f32 %v3281_v5, %v329_v1  ;;  %v3210_v48 = vld [vmem:[%s4054_s1 + $0x1f8] sm:$0xff]   ;;  %v3218_v47 = vld [vmem:[%s4054_s1 + $0x230] sm:$0xff]  }
  0x61   : > { %2864 = vmatmul.mubr.bf16.gmra.mrb[12].mxu0 %v3738_v12 }
  0x62   : > { %2883 = vmatprep.mubr.bf16.mxu0 %v3735_v42  ;;  %v425_v34 = vmul.f32 0.70710677, %v365_v6  ;;  %v426_v40 = vmul.f32 0.70710677, %v366_v7 }
  0x64   : > { %2756 = vmatmul.mubr.bf16.vlgmr.msra.gmra.mrb[0].mxu1 %v3508_v9  ;;  %3274 = verf.f32 %v425_v34 }
  0x65   : > { %2772 = vmatpush3.bf16.msra.mxu1 %v3681_v24  ;;  %2759 = vmatprep.mubr.bf16.mxu1 %v3519_v27  ;;  %v1106_v24 = vrot.slane %v3568_v11, 1  ;;  %3276 = verf.f32 %v426_v40 }
  0x66   : > { %2773 = vmatprep.subr.bf16.mxu1 %v3183_v13 }
  0x67   : > { %v3780_v52 = vsel %vm1093_vm1, %v1106_v24, %v1107_v18  ;;  %v330_v24 = vmul.f32 %v3280_v60, %v293_v58 }
  0x69   : > { %2884 = vmatmul.mubr.bf16.vlgmr.msra.gmra.mrb[0].mxu0 %v3753_v22  ;;  %2774 = vmatpush3.bf16.msra.mxu1 %v3183_v13  ;;  %v3198_v13 = vld [vmem:[%s4054_s1 + $0x1c8] sm:$0xff]   ;;  %v367_v2 = vadd.f32 %v3281_v5, %v330_v24 }
  0x6a   : > { %2900 = vmatpush3.bf16.msra.mxu0 %v3688_v20  ;;  %2887 = vmatprep.mubr.bf16.mxu0 %v3759_v31  ;;  %v1110_v20 = vrot.slane %v3668_v44, 1  ;;  %v3189_v44 = vld [vmem:[%s4054_s1 + $0xa0] sm:$0xff]  }
  0x6b   : > { %2901 = vmatprep.subr.bf16.mxu0 %v3182_v25  ;;  %2775 = vmatprep.subr.bf16.mxu1 %v3185_v0  ;;  %v427_v3 = vmul.f32 0.70710677, %v367_v2 }
  0x6c   : > { %2760 = vmatmul.mubr.bf16.gmra.mrb[4].mxu1 %v3537_v17  ;;  %v3786_v63 = vsel %vm1093_vm1, %v1109_v26, %v1110_v20  ;;  %v395_v26 = vmul.f32 0.5, %v365_v6  ;;  %v396_v20 = vmul.f32 0.5, %v366_v7 }
  0x6d   : > { %2776 = vmatpush3.bf16.msra.mxu1 %v3185_v0  ;;  %2763 = vmatprep.mubr.bf16.mxu1 %v3568_v11  ;;  %3278 = verf.f32 %v427_v3 }
  0x6e   : > { %2902 = vmatpush3.bf16.msra.mxu0 %v3182_v25  ;;  %2777 = vmatprep.subr.bf16.mxu1 %v3187_v30  ;;  %v3205_v25 = vld [vmem:[%s4054_s1 + $0xe0] sm:$0xff]   ;;  %v3275_v0 = vpop.eup %3274 }
  0x6f   : > { %2903 = vmatprep.subr.bf16.mxu0 %v3184_v54  ;;  %v3277_v18 = vpop.eup %3276 }
  0x71   : > { %2888 = vmatmul.mubr.bf16.gmra.mrb[4].mxu0 %v3780_v52  ;;  %2778 = vmatpush3.bf16.msra.mxu1 %v3187_v30  ;;  %v3207_v30 = vld [vmem:[%s4054_s1 + $0xe8] sm:$0xff]  }
  0x72   : > { %2904 = vmatpush3.bf16.msra.mxu0 %v3184_v54  ;;  %2891 = vmatprep.mubr.bf16.mxu0 %v3786_v63  ;;  %v3204_v54 = vld [vmem:[%s4054_s1 + $0x1e0] sm:$0xff]  }
  0x73   : > { %2905 = vmatprep.subr.bf16.mxu0 %v3186_v57  ;;  %2779 = vmatprep.subr.bf16.mxu1 %v3189_v44 }
  0x74   : > { %2764 = vmatmul.mubr.bf16.gmra.mrb[8].mxu1 %v3664_v38 }
  0x75   : > { %2780 = vmatpush3.bf16.msra.mxu1 %v3189_v44  ;;  %2767 = vmatprep.mubr.bf16.mxu1 %v3683_v62  ;;  %v486_v44 = vadd.f32 1.0, %v3277_v18 }
  0x76   : > { %2906 = vmatpush3.bf16.msra.mxu0 %v3186_v57  ;;  %2781 = vmatprep.subr.bf16.mxu1 %v3191_v16  ;;  %v485_v57 = vadd.f32 1.0, %v3275_v0 }
  0x77   : > { %2907 = vmatprep.subr.bf16.mxu0 %v3188_v35  ;;  %v516_v37 = vmul.f32 %v486_v44, %v396_v20  ;;  %v3279_v55 = vpop.eup %3278 }
  0x79   : > { %2892 = vmatmul.mubr.bf16.gmra.mrb[8].mxu0 %v3806_v23  ;;  %2782 = vmatpush3.bf16.msra.mxu1 %v3191_v16  ;;  %v3209_v16 = vld [vmem:[%s4054_s1 + $0xf0] sm:$0xff]  }
  0x7a   : > { %2908 = vmatpush3.bf16.msra.mxu0 %v3188_v35  ;;  %2895 = vmatprep.mubr.bf16.mxu0 %v3812_v39  ;;  %v515_v35 = vmul.f32 %v485_v57, %v395_v26 }
  0x7b   : > { %2909 = vmatprep.subr.bf16.mxu0 %v3190_v43  ;;  %2783 = vmatprep.subr.bf16.mxu1 %v3193_v33 }
  0x7c   : > { %2768 = vmatmul.mubr.bf16.gmra.mrb[12].mxu1 %v3701_v28  ;;  %v3904_v45 = vpack.c.bf16 %v516_v37, %v515_v35 }
  0x7d   : > { %2784 = vmatpush3.bf16.msra.mxu1 %v3193_v33  ;;  %2787 = vmatprep.mubr.bf16.mxu1 %v3729_v46  ;;  %v3199_v46 = vld [vmem:[%s4054_s1 + $0xc8] sm:$0xff]   ;;  %v3208_v33 = vld [vmem:[%s4054_s1 + $0x1f0] sm:$0xff]  }
  0x7e   : > { %2910 = vmatpush3.bf16.msra.mxu0 %v3190_v43  ;;  %2785 = vmatprep.subr.bf16.mxu1 %v3195_v36  ;;  %v3211_v43 = vld [vmem:[%s4054_s1 + $0xf8] sm:$0xff]  }
  0x7f   : > { %2911 = vmatprep.subr.bf16.mxu0 %v3192_v59 }
  0x81   : > { %2896 = vmatmul.mubr.bf16.gmra.mrb[12].mxu0 %v3835_v41  ;;  %2786 = vmatpush3.bf16.msra.mxu1 %v3195_v36  ;;  %v3214_v36 = vld [vmem:[%s4054_s1 + $0x210] sm:$0xff]  }
  0x82   : > { %2912 = vmatpush3.bf16.msra.mxu0 %v3192_v59  ;;  %2915 = vmatprep.mubr.bf16.mxu0 %v3519_v27 }
  0x83   : > { %2913 = vmatprep.subr.bf16.mxu0 %v3194_v56  ;;  %2803 = vmatprep.subr.bf16.mxu1 %v3197_v4 }
  0x84   : > { %2788 = vmatmul.mubr.bf16.vlgmr.msra.gmra.mrb[0].mxu1 %v3735_v42  ;;  %v3203_v42 = vld [vmem:[%s4054_s1 + $0xd8] sm:$0xff]  }
  0x85   : > { %2804 = vmatpush3.bf16.msra.mxu1 %v3197_v4  ;;  %2791 = vmatprep.mubr.bf16.mxu1 %v3753_v22 }
  0x86   : > { %2914 = vmatpush3.bf16.msra.mxu0 %v3194_v56  ;;  %2805 = vmatprep.subr.bf16.mxu1 %v3199_v46 }
  0x87   : > { %2931 = vmatprep.subr.bf16.mxu0 %v3196_v10 }
  0x89   : > { %2916 = vmatmul.mubr.bf16.vlgmr.msra.gmra.mrb[0].mxu0 %v3537_v17  ;;  %2806 = vmatpush3.bf16.msra.mxu1 %v3199_v46 }
  0x8a   : > { %2932 = vmatpush3.bf16.msra.mxu0 %v3196_v10  ;;  %2919 = vmatprep.mubr.bf16.mxu0 %v3568_v11 }
  0x8b   : > { %2933 = vmatprep.subr.bf16.mxu0 %v3198_v13  ;;  %2807 = vmatprep.subr.bf16.mxu1 %v3201_v14 }
  0x8c   : > { %2792 = vmatmul.mubr.bf16.gmra.mrb[4].mxu1 %v3759_v31 }
  0x8d   : > { %2808 = vmatpush3.bf16.msra.mxu1 %v3201_v14  ;;  %2795 = vmatprep.mubr.bf16.mxu1 %v3780_v52 }
  0x8e   : > { %2934 = vmatpush3.bf16.msra.mxu0 %v3198_v13  ;;  %2809 = vmatprep.subr.bf16.mxu1 %v3203_v42 }
  0x8f   : > { %2935 = vmatprep.subr.bf16.mxu0 %v3200_v21 }
  0x91   : > { %2920 = vmatmul.mubr.bf16.gmra.mrb[4].mxu0 %v3664_v38  ;;  %2810 = vmatpush3.bf16.msra.mxu1 %v3203_v42 }
  0x92   : > { %2936 = vmatpush3.bf16.msra.mxu0 %v3200_v21  ;;  %2923 = vmatprep.mubr.bf16.mxu0 %v3683_v62 }
  0x93   : > { %2937 = vmatprep.subr.bf16.mxu0 %v3202_v53  ;;  %2811 = vmatprep.subr.bf16.mxu1 %v3205_v25 }
  0x94   : > { %2796 = vmatmul.mubr.bf16.gmra.mrb[8].mxu1 %v3786_v63 }
  0x95   : > { %2812 = vmatpush3.bf16.msra.mxu1 %v3205_v25  ;;  %2799 = vmatprep.mubr.bf16.mxu1 %v3806_v23 }
  0x96   : > { %2938 = vmatpush3.bf16.msra.mxu0 %v3202_v53  ;;  %2813 = vmatprep.subr.bf16.mxu1 %v3207_v30 }
  0x97   : > { %2939 = vmatprep.subr.bf16.mxu0 %v3204_v54 }
  0x99   : > { %2924 = vmatmul.mubr.bf16.gmra.mrb[8].mxu0 %v3701_v28  ;;  %2814 = vmatpush3.bf16.msra.mxu1 %v3207_v30 }
  0x9a   : > { %2940 = vmatpush3.bf16.msra.mxu0 %v3204_v54  ;;  %2927 = vmatprep.mubr.bf16.mxu0 %v3714_v49 }
  0x9b   : > { %2941 = vmatprep.subr.bf16.mxu0 %v3206_v32  ;;  %2815 = vmatprep.subr.bf16.mxu1 %v3209_v16 }
  0x9c   : > { %2800 = vmatmul.mubr.bf16.gmra.mrb[12].mxu1 %v3812_v39 }
  0x9d   : > { %2816 = vmatpush3.bf16.msra.mxu1 %v3209_v16  ;;  %2819 = vmatprep.mubr.bf16.mxu1 %v3508_v9  ;;  %v3213_v9 = vld [vmem:[%s4054_s1 + $0x208] sm:$0xff]  }
  0x9e   : > { %2942 = vmatpush3.bf16.msra.mxu0 %v3206_v32  ;;  %2817 = vmatprep.subr.bf16.mxu1 %v3211_v43 }
  0x9f   : > { %2943 = vmatprep.subr.bf16.mxu0 %v3208_v33 }
  0xa1   : > { %2928 = vmatmul.mubr.bf16.gmra.mrb[12].mxu0 %v3904_v45  ;;  %2818 = vmatpush3.bf16.msra.mxu1 %v3211_v43 }
  0xa2   : > { %2944 = vmatpush3.bf16.msra.mxu0 %v3208_v33  ;;  %2947 = vmatprep.mubr.bf16.mxu0 %v3551_v8  ;;  %v397_v8 = vmul.f32 0.5, %v367_v2  ;;  %v3973_v2 = vld [vmem:[%s4055_s2] ss:$0 sm:$0xff] }
  0xa3   : > { %2945 = vmatprep.subr.bf16.mxu0 %v3210_v48  ;;  %2995 = vmatprep.subr.bf16.mxu1 %v3212_v51 }
  0xa4   : > { %2820 = vmatmul.mubr.bf16.vlgmr.msra.gmra.mrb[0].mxu1 %v3519_v27  ;;  %v3215_v27 = vld [vmem:[%s4054_s1 + $0x218] sm:$0xff]  }
  0xa5   : > { %3003 = vmatpush3.bf16.msra.mxu1 %v3212_v51  ;;  %2823 = vmatprep.mubr.bf16.mxu1 %v3537_v17  ;;  %v487_v17 = vadd.f32 1.0, %v3279_v55 }
  0xa6   : > { %2946 = vmatpush3.bf16.msra.mxu0 %v3210_v48  ;;  %2996 = vmatprep.subr.bf16.mxu1 %v3213_v9 }
  0xa7   : > { %2963 = vmatprep.subr.bf16.mxu0 %v3212_v51 }
  0xa9   : > { %2948 = vmatmul.mubr.bf16.vlgmr.msra.gmra.mrb[0].mxu0 %v3591_v29  ;;  %3004 = vmatpush3.bf16.msra.mxu1 %v3213_v9  ;;  %v517_v29 = vmul.f32 %v487_v17, %v397_v8 }
  0xaa   : > { %2964 = vmatpush3.bf16.msra.mxu0 %v3212_v51  ;;  %2951 = vmatprep.mubr.bf16.mxu0 %v3615_v50  ;;  %v3216_v50 = vld [vmem:[%s4054_s1 + $0x220] sm:$0xff]  }
  0xab   : > { %2965 = vmatprep.subr.bf16.mxu0 %v3213_v9  ;;  %2997 = vmatprep.subr.bf16.mxu1 %v3214_v36  ;;  %v537_v59 = vpack.c.bf16 %v517_v29, %v517_v29 }
  0xac   : > { %2824 = vmatmul.mubr.bf16.gmra.mrb[4].mxu1 %v3568_v11  ;;  %v3217_v11 = vld [vmem:[%s4054_s1 + $0x228] sm:$0xff]  }
  0xad   : > { %3005 = vmatpush3.bf16.msra.mxu1 %v3214_v36  ;;  %2827 = vmatprep.mubr.bf16.mxu1 %v3664_v38  ;;  %v1953_v38 = vshll.u32 %v3904_v45, 16 }
  0xae   : > { %2966 = vmatpush3.bf16.msra.mxu0 %v3213_v9  ;;  %2998 = vmatprep.subr.bf16.mxu1 %v3215_v27 }
  0xaf   : > { %2967 = vmatprep.subr.bf16.mxu0 %v3214_v36  ;;  %v1955_v60 = vrot.slane %v1953_v38, 1 }
  0xb1   : > { %2952 = vmatmul.mubr.bf16.gmra.mrb[4].mxu0 %v3693_v15  ;;  %3006 = vmatpush3.bf16.msra.mxu1 %v3215_v27  ;;  %v1951_v15 = vshrl.u32 %v3904_v45, 16 }
  0xb2   : > { %2968 = vmatpush3.bf16.msra.mxu0 %v3214_v36  ;;  %2955 = vmatprep.mubr.bf16.mxu0 %v3712_v19  ;;  %v1958_v19 = vshll.u32 %v537_v59, 16 }
  0xb3   : > { %2969 = vmatprep.subr.bf16.mxu0 %v3215_v27  ;;  %2999 = vmatprep.subr.bf16.mxu1 %v3216_v50 }
  0xb4   : > { %2828 = vmatmul.mubr.bf16.gmra.mrb[8].mxu1 %v3683_v62  ;;  %v1956_v62 = vor.u32 %v1955_v60, %v1951_v15  ;;  %v1960_v1 = vrot.slane %v1958_v19, 1 }
  0xb5   : > { %3007 = vmatpush3.bf16.msra.mxu1 %v3216_v50  ;;  %2831 = vmatprep.mubr.bf16.mxu1 %v3701_v28  ;;  %v3219_v28 = vld [vmem:[%s4054_s1 + $0x238] sm:$0xff]  }
  0xb6   : > { %2970 = vmatpush3.bf16.msra.mxu0 %v3215_v27  ;;  %3000 = vmatprep.subr.bf16.mxu1 %v3217_v11 }
  0xb7   : > { %2971 = vmatprep.subr.bf16.mxu0 %v3216_v50 }
  0xb9   : > { %2956 = vmatmul.mubr.bf16.gmra.mrb[8].mxu0 %v3724_v61  ;;  %3008 = vmatpush3.bf16.msra.mxu1 %v3217_v11  ;;  %v1961_v61 = vsel %vm682_vm0, %v1956_v62, %v1960_v1 }
  0xba   : > { %2972 = vmatpush3.bf16.msra.mxu0 %v3216_v50  ;;  %2959 = vmatprep.mubr.bf16.mxu0 %v3738_v12  ;;  %v2127_v12 = vrot.slane %v537_v59, 1 }
  0xbb   : > { %2973 = vmatprep.subr.bf16.mxu0 %v3217_v11  ;;  %3001 = vmatprep.subr.bf16.mxu1 %v3218_v47 }
  0xbc   : > { %2832 = vmatmul.mubr.bf16.gmra.mrb[12].mxu1 %v3714_v49  ;;  %v2126_v49 = vrot.slane %v3904_v45, 1 }
  0xbd   : > { %3009 = vmatpush3.bf16.msra.mxu1 %v3218_v47  ;;  %2987 = vmatprep.mubr.bf16.mxu1 %v3806_v23 }
  0xbe   : > { %2974 = vmatpush3.bf16.msra.mxu0 %v3217_v11  ;;  %3002 = vmatprep.subr.bf16.mxu1 %v3219_v28  ;;  %v2128_v23 = vsel %vm1093_vm1, %v2126_v49, %v2127_v12 }
  0xbf   : > { %2975 = vmatprep.subr.bf16.mxu0 %v3218_v47 }
  0xc1   : > { %2960 = vmatmul.mubr.bf16.gmra.mrb[12].mxu0 %v1961_v61  ;;  %3010 = vmatpush3.bf16.msra.mxu1 %v3219_v28 }
  0xc2   : > { %2976 = vmatpush3.bf16.msra.mxu0 %v3218_v47  ;;  %2979 = vmatprep.mubr.bf16.mxu0 %v3753_v22 }
  0xc3   : > { %2977 = vmatprep.subr.bf16.mxu0 %v3219_v28 }
  0xc4   : > { %2988 = vmatmul.mubr.bf16.vlgmr.msra.gmra.mrb[16].mxu1 %v3812_v39 }
  0xc5   : > { %2991 = vmatprep.mubr.bf16.mxu1 %v3835_v41 }
  0xc6   : > { %2978 = vmatpush3.bf16.msra.mxu0 %v3219_v28 }
  0xc9   : > { %2980 = vmatmul.mubr.bf16.vlgmr.msra.gmra.mrb[0].mxu0 %v3759_v31 }
  0xca   : > { %2983 = vmatprep.mubr.bf16.mxu0 %v3780_v52 }
  0xcc   : > { %2992 = vmatmul.mubr.bf16.gmra.mrb[20].mxu1 %v2128_v23 }
  0xd1   : > { %2984 = vmatmul.mubr.bf16.gmra.mrb[4].mxu0 %v3786_v63 }
 0x177   : > { %v2821_v56 = vpop.f32.mrb[0].mxu1 }
 0x178   : > { %v1369_v22 = vpop.f32.mrb[1].mxu1 }
 0x179   : > { %v2822_v4 = vpop.f32.mrb[2].mxu1 }
 0x17a   : > { %v1372_v5 = vpop.f32.mrb[3].mxu1 }
 0x17f   : > { %v3961_v39 = vpop.f32.mrb[4].mxu1 }
 0x180   : > { %v3963_v41 = vpop.f32.mrb[5].mxu1 }
 0x181   : > { %v3965_v6 = vpop.f32.mrb[6].mxu1 }
 0x182   : > { %v3967_v7 = vpop.f32.mrb[7].mxu1 }
 0x187   : > { %v2829_v31 = vpop.f32.mrb[8].mxu1 }
 0x188   : > { %v1401_v46 = vpop.f32.mrb[9].mxu1 }
 0x189   : > { %v2830_v10 = vpop.f32.mrb[10].mxu1 }
 0x18a   : > { %v1404_v34 = vpop.f32.mrb[11].mxu1 }
 0x18c   : > { %v2957_v52 = vpop.f32.mrb[8].mxu0 }
 0x18d   : > { %v3019_v40 = vadd.f32 %v2957_v52, %v2829_v31  ;;  %v2077_v63 = vpop.f32.mrb[9].mxu0 }
 0x18e   : > { %v3021_v13 = vadd.f32 %v2077_v63, %v1401_v46  ;;  %v2958_v14 = vpop.f32.mrb[10].mxu0 }
 0x18f   : > { %v3023_v42 = vadd.f32 %v2958_v14, %v2830_v10  ;;  %v2080_v21 = vpop.f32.mrb[11].mxu0  ;;  %v2833_v58 = vpop.f32.mrb[12].mxu1 }
 0x190   : > { %v3025_v53 = vadd.f32 %v2080_v21, %v1404_v34  ;;  %v1417_v25 = vpop.f32.mrb[13].mxu1 }
 0x191   : > { %v2834_v0 = vpop.f32.mrb[14].mxu1 }
 0x192   : > { %v1420_v24 = vpop.f32.mrb[15].mxu1 }
 0x194   : > { %v2961_v18 = vpop.f32.mrb[12].mxu0 }
 0x195   : > { %v3027_v30 = vadd.f32 %v2961_v18, %v2833_v58  ;;  %v2093_v54 = vpop.f32.mrb[13].mxu0 }
 0x196   : > { %v3029_v26 = vadd.f32 %v2093_v54, %v1417_v25  ;;  %v2962_v20 = vpop.f32.mrb[14].mxu0 }
 0x197   : > { %v3031_v57 = vadd.f32 %v2962_v20, %v2834_v0  ;;  %v2096_v44 = vpop.f32.mrb[15].mxu0  ;;  %v2989_v32 = vpop.f32.mrb[16].mxu1 }
 0x198   : > { %v3033_v16 = vadd.f32 %v2096_v44, %v1420_v24  ;;  %v3020_v35 = vadd.f32 %v3019_v40, %v2989_v32  ;;  %v2244_v37 = vpop.f32.mrb[17].mxu1 }
 0x199   : > { %v3022_v3 = vadd.f32 %v3021_v13, %v2244_v37  ;;  %v2990_v43 = vpop.f32.mrb[18].mxu1 }
 0x19a   : > { %v3981_v33 = vadd.f32 %v3020_v35, %v3973_v2  ;;  %v3024_v45 = vadd.f32 %v3023_v42, %v2990_v43  ;;  %v2247_v48 = vpop.f32.mrb[19].mxu1 }
 0x19b   : > { %v3984_v51 = vadd.f32 %v3022_v3, %v3973_v2  ;;  %v3026_v9 = vadd.f32 %v3025_v53, %v2247_v48 }
 0x19c   : > { %v2981_v55 = vpop.f32.mrb[0].mxu0  ;;  %2324 = vst [vmem:[%s3978_s10 + $0x50] sm:$0xff] %v3981_v33  ;;  %v3989_v36 = vadd.f32 %v3024_v45, %v3973_v2 }
 0x19d   : > { %v3011_v27 = vadd.f32 %v2981_v55, %v2821_v56  ;;  %v2212_v8 = vpop.f32.mrb[1].mxu0  ;;  %2322 = vst [vmem:[%s3978_s10 + $0x40] sm:$0xff] %v3984_v51  ;;  %v3994_v17 = vadd.f32 %v3026_v9, %v3973_v2  ;;  %v2360_v48 = vmul.f32 %v3984_v51, %v3984_v51 }
 0x19e   : > { %v3012_v29 = vadd.f32 %v2212_v8, %v1369_v22  ;;  %v2982_v50 = vpop.f32.mrb[2].mxu0  ;;  %2325 = vst [vmem:[%s3978_s10 + $0x58] sm:$0xff] %v3989_v36 }
 0x19f   : > { %v2300_v11 = vadd.f32 %v3011_v27, %v3973_v2  ;;  %v3013_v59 = vadd.f32 %v2982_v50, %v2822_v4  ;;  %v2215_v38 = vpop.f32.mrb[3].mxu0  ;;  %2323 = vst [vmem:[%s3978_s10 + $0x48] sm:$0xff] %v3994_v17  ;;  %v2993_v15 = vpop.f32.mrb[20].mxu1 }
 0x1a0   : > { %v2298_v60 = vadd.f32 %v3012_v29, %v3973_v2  ;;  %v3014_v19 = vadd.f32 %v2215_v38, %v1372_v5  ;;  %v3028_v47 = vadd.f32 %v3027_v30, %v2993_v15  ;;  %v2260_v62 = vpop.f32.mrb[21].mxu1  ;;  %v2362_v29 = vmul.f32 %v3981_v33, %v3981_v33 }
 0x1a1   : > { %2316 = vst [vmem:[%s3978_s10 + $0x10] sm:$0xff] %v2300_v11  ;;  %v2301_v1 = vadd.f32 %v3013_v59, %v3973_v2  ;;  %v3030_v28 = vadd.f32 %v3029_v26, %v2260_v62  ;;  %v2994_v61 = vpop.f32.mrb[22].mxu1  ;;  %v2354_v13 = vmul.f32 %v2300_v11, %v2300_v11  ;;  %v2363_v59 = vmul.f32 %v3989_v36, %v3989_v36 }
 0x1a2   : > { %2314 = vst [vmem:[%s3978_s10] sm:$0xff] %v2298_v60  ;;  %v2299_v49 = vadd.f32 %v3014_v19, %v3973_v2  ;;  %v4007_v12 = vadd.f32 %v3028_v47, %v3973_v2  ;;  %v3032_v23 = vadd.f32 %v3031_v57, %v2994_v61  ;;  %v2263_v56 = vpop.f32.mrb[23].mxu1  ;;  %v2352_v5 = vmul.f32 %v2298_v60, %v2298_v60 }
 0x1a3   : > { %2317 = vst [vmem:[%s3978_s10 + $0x18] sm:$0xff] %v2301_v1  ;;  %v2310_v22 = vadd.f32 %v3030_v28, %v3973_v2  ;;  %v3034_v4 = vadd.f32 %v3033_v16, %v2263_v56  ;;  %v2355_v53 = vmul.f32 %v2301_v1, %v2301_v1 }
 0x1a4   : > { %2315 = vst [vmem:[%s3978_s10 + $0x8] sm:$0xff] %v2299_v49  ;;  %v2330_v31 = vadd.f32 %v2299_v49, %v2298_v60  ;;  %v2353_v46 = vmul.f32 %v2299_v49, %v2299_v49  ;;  %v2985_v10 = vpop.f32.mrb[4].mxu0  ;;  %2328 = vst [vmem:[%s3978_s10 + $0x70] sm:$0xff] %v4007_v12  ;;  %v2313_v34 = vadd.f32 %v3032_v23, %v3973_v2 }
 0x1a5   : > { %v3015_v52 = vadd.f32 %v2985_v10, %v3961_v39  ;;  %v2228_v40 = vpop.f32.mrb[5].mxu0  ;;  %2326 = vst [vmem:[%s3978_s10 + $0x60] sm:$0xff] %v2310_v22  ;;  %v2311_v63 = vadd.f32 %v3034_v4, %v3973_v2 }
 0x1a6   : > { %v2331_v14 = vadd.f32 %v2330_v31, %v2300_v11  ;;  %v2368_v42 = vadd.f32 %v2353_v46, %v2352_v5  ;;  %v3016_v21 = vadd.f32 %v2228_v40, %v3963_v41  ;;  %v2986_v58 = vpop.f32.mrb[6].mxu0  ;;  %2329 = vst [vmem:[%s3978_s10 + $0x78] sm:$0xff] %v2313_v34  ;;  %v2367_v61 = vmul.f32 %v2313_v34, %v2313_v34 }
 0x1a7   : > { %v2304_v25 = vadd.f32 %v3015_v52, %v3973_v2  ;;  %v3017_v0 = vadd.f32 %v2986_v58, %v3965_v6  ;;  %v2231_v39 = vpop.f32.mrb[7].mxu0  ;;  %2327 = vst [vmem:[%s3978_s10 + $0x68] sm:$0xff] %v2311_v63  ;;  %v2365_v62 = vmul.f32 %v2311_v63, %v2311_v63 }
 0x1a8   : > { %v2369_v24 = vadd.f32 %v2368_v42, %v2354_v13  ;;  %v2302_v18 = vadd.f32 %v3016_v21, %v3973_v2  ;;  %v2332_v30 = vadd.f32 %v2331_v14, %v2301_v1  ;;  %v3018_v54 = vadd.f32 %v2231_v39, %v3967_v7 }
 0x1a9   : > { %2320 = vst [vmem:[%s3978_s10 + $0x30] sm:$0xff] %v2304_v25  ;;  %v2305_v41 = vadd.f32 %v3017_v0, %v3973_v2  ;;  %v2358_v35 = vmul.f32 %v2304_v25, %v2304_v25 }
 0x1aa   : > { %2318 = vst [vmem:[%s3978_s10 + $0x20] sm:$0xff] %v2302_v18  ;;  %v2333_v26 = vadd.f32 %v2332_v30, %v2302_v18  ;;  %v2356_v20 = vmul.f32 %v2302_v18, %v2302_v18  ;;  %v2370_v57 = vadd.f32 %v2369_v24, %v2355_v53  ;;  %v2303_v44 = vadd.f32 %v3018_v54, %v3973_v2 }
 0x1ab   : > { %2321 = vst [vmem:[%s3978_s10 + $0x38] sm:$0xff] %v2305_v41  ;;  %v2359_v43 = vmul.f32 %v2305_v41, %v2305_v41  ;;  %v2361_v2 = vmul.f32 %v3994_v17, %v3994_v17 }
 0x1ac   : > { %v2371_v6 = vadd.f32 %v2370_v57, %v2356_v20  ;;  %2319 = vst [vmem:[%s3978_s10 + $0x28] sm:$0xff] %v2303_v44  ;;  %v2334_v32 = vadd.f32 %v2333_v26, %v2303_v44  ;;  %v2357_v16 = vmul.f32 %v2303_v44, %v2303_v44 }
 0x1ae   : > { %v2335_v37 = vadd.f32 %v2334_v32, %v2304_v25  ;;  %v2372_v3 = vadd.f32 %v2371_v6, %v2357_v16 }
 0x1b0   : > { %v2336_v45 = vadd.f32 %v2335_v37, %v2305_v41  ;;  %v2373_v7 = vadd.f32 %v2372_v3, %v2358_v35 }
 0x1b2   : > { %v2337_v9 = vadd.f32 %v2336_v45, %v3984_v51  ;;  %v2374_v55 = vadd.f32 %v2373_v7, %v2359_v43  ;;  %v2364_v51 = vmul.f32 %v2310_v22, %v2310_v22 }
 0x1b4   : > { %v2375_v27 = vadd.f32 %v2374_v55, %v2360_v48  ;;  %v2338_v8 = vadd.f32 %v2337_v9, %v3994_v17  ;;  %v2366_v17 = vmul.f32 %v4007_v12, %v4007_v12 }
 0x1b6   : > { %v2339_v50 = vadd.f32 %v2338_v8, %v3981_v33  ;;  %v2376_v11 = vadd.f32 %v2375_v27, %v2361_v2 }
 0x1b8   : > { %v2340_v38 = vadd.f32 %v2339_v50, %v3989_v36  ;;  %v2377_v15 = vadd.f32 %v2376_v11, %v2362_v29 }
 0x1ba   : > { %v2341_v60 = vadd.f32 %v2340_v38, %v2310_v22  ;;  %v2378_v19 = vadd.f32 %v2377_v15, %v2363_v59 }
 0x1bc   : > { %v2342_v47 = vadd.f32 %v2341_v60, %v2311_v63  ;;  %v2379_v1 = vadd.f32 %v2378_v19, %v2364_v51 }
 0x1be   : > { %v2343_v28 = vadd.f32 %v2342_v47, %v4007_v12  ;;  %v2380_v33 = vadd.f32 %v2379_v1, %v2365_v62 }
 0x1c0   : > { %v2344_v49 = vadd.f32 %v2343_v28, %v2313_v34  ;;  %v2381_v23 = vadd.f32 %v2380_v33, %v2366_v17 }
 0x1c2   : > { %v2345_v56 = vrot.slane %v2344_v49, 4  ;;  %v2382_v4 = vadd.f32 %v2381_v23, %v2367_v61 }
 0x1c4   : > { %v2346_v36 = vadd.f32 %v2345_v56, %v2344_v49  ;;  %v2383_v5 = vrot.slane %v2382_v4, 4 }
 0x1c6   : > { %v2347_v31 = vrot.slane %v2346_v36, 2  ;;  %v2384_v22 = vadd.f32 %v2383_v5, %v2382_v4 }
 0x1c8   : > { %v2348_v46 = vadd.f32 %v2347_v31, %v2346_v36  ;;  %v2385_v10 = vrot.slane %v2384_v22, 2 }
 0x1ca   : > { %v2349_v52 = vrot.slane %v2348_v46, 1  ;;  %v2386_v40 = vadd.f32 %v2385_v10, %v2384_v22 }
 0x1cc   : > { %v2350_v12 = vadd.f32 %v2349_v52, %v2348_v46  ;;  %v2387_v63 = vrot.slane %v2386_v40, 1 }
 0x1ce   : > { %2351 = vst [vmem:[%s262_s14] sm:$0x1] %v2350_v12  ;;  %v2388_v34 = vadd.f32 %v2387_v63, %v2386_v40 }
 0x1d0   : > { %2389 = vst [vmem:[%s262_s14 + $0x1] sm:$0x1] %v2388_v34 }
 0x1d1 PF: > { %s17_s21 = sadd.s32 1, %s3288_s21  }
 0x1d2   : > { %p14_p4 = scmp.ge.s32.totalorder %s17_s21, 6  }
 0x1d4   :  { %16 = sbr.rel (!%p14_p4) target bundleno = 1 (0x1), region = 82 }

// kernel: resblk_forward.5
= control target key start
LH: loop header
LB: loop body
LE: loop exit
PB: predicated region body
PF: predicated region fallthrough
CT: control target
= control target key end

     0   :  { %s3626_s27 = smov 0   ;;  %s4355_s0 = inlined_call_operand.vmem [shape: f32[4,10,18,128], index: 0, kind: input, shape index: {}]   ;;  %s4356_s1 = inlined_call_operand.vmem [shape: bf16[9,128,128], index: 1, kind: input, shape index: {}]   ;;  %s4357_s2 = inlined_call_operand.vmem [shape: f32[1,128], index: 2, kind: input, shape index: {}]   ;;  %s4358_s3 = inlined_call_operand.vmem [shape: f32[1,128], index: 3, kind: input, shape index: {}]   ;;  %s4359_s4 = inlined_call_operand.vmem [shape: f32[1,128], index: 4, kind: input, shape index: {}]   ;;  %s4360_s5 = inlined_call_operand.vmem [shape: f32[4,8,16,128], index: 5, kind: input, shape index: {}]   ;;  %s4361_s6 = inlined_call_operand.vmem [shape: bf16[128,128], index: 6, kind: input, shape index: {}]   ;;  %s4362_s7 = inlined_call_operand.vmem [shape: f32[1,128], index: 7, kind: input, shape index: {}]   ;;  %s4363_s8 = inlined_call_operand.vmem [shape: f32[4,8,16,128], index: 8, kind: output, shape index: {}]  }
   0x1 LB: > { %s2668_s28 = sadd.s32 4294967295, %s3579_s27   ;;  %p2672_p0 = scmp.ge.s32.totalorder %s3579_s27, 1  ;;  %s3579_s27 = sphi %s3626_s27, %s18_s27  }
   0x2   : > { %p272_p1 = scmp.lt.s32.totalorder %s3579_s27, 5 }
   0x4   : > { %p273_p2 = pnand %p2672_p0, %p272_p1 }
   0x5   : > { %v3431_v0 = vld [vmem:[%s4356_s1 + $0x140] sm:$0xff] (!%p273_p2)   ;;  %p311_p3 = scmp.lt.s32.totalorder (!%p273_p2), %s2668_s28, 3  ;;  %v3433_v2 = vld [vmem:[%s4356_s1 + $0x148] sm:$0xff] (!%p273_p2)   ;;  %v3435_v4 = vld [vmem:[%s4356_s1 + $0x150] sm:$0xff] (!%p273_p2)   ;;  %vm1156_vm0 = vcmask (!%p273_p2), 1046528  }
   0x6   : > { %276 = sbr.rel (%p273_p2) target bundleno = 446 (0x1be), region = 52  ;;  %v3432_v1 = vld [vmem:[%s4356_s1 + $0x40] sm:$0xff] (!%p273_p2)   ;;  %3086 = vmatprep.subr.bf16.mxu0 (!%p273_p2), %v3431_v0  ;;  %v3434_v3 = vld [vmem:[%s4356_s1 + $0x48] sm:$0xff] (!%p273_p2)   ;;  %v3436_v5 = vld [vmem:[%s4356_s1 + $0x50] sm:$0xff] (!%p273_p2)   ;;  %vm745_vm1 = vsmask.f32 (!%p273_p2), 7424 }
   0x7   : > { %3087 = vmatpush3.bf16.msra.mxu0 (!%p273_p2), %v3431_v0  ;;  %2926 = vmatprep.subr.bf16.mxu1 (!%p273_p2), %v3432_v1  ;;  %v3437_v6 = vld [vmem:[%s4356_s1 + $0x158] sm:$0xff] (!%p273_p2)   ;;  %v3439_v8 = vld [vmem:[%s4356_s1 + $0x160] sm:$0xff] (!%p273_p2)   ;;  %v3441_v10 = vld [vmem:[%s4356_s1 + $0x168] sm:$0xff] (!%p273_p2)  }
   0x8   : > { %2927 = vmatpush3.bf16.msra.mxu1 (!%p273_p2), %v3432_v1  ;;  %3088 = vmatprep.subr.bf16.mxu0 (!%p273_p2), %v3433_v2  ;;  %v3438_v7 = vld [vmem:[%s4356_s1 + $0x58] sm:$0xff] (!%p273_p2)   ;;  %v3440_v9 = vld [vmem:[%s4356_s1 + $0x60] sm:$0xff] (!%p273_p2)   ;;  %v3442_v11 = vld [vmem:[%s4356_s1 + $0x68] sm:$0xff] (!%p273_p2)  }
   0x9   : > { %2928 = vmatprep.subr.bf16.mxu1 (!%p273_p2), %v3434_v3  ;;  %v3684_v15 = vld [vmem:[%s4358_s3] ss:$0 sm:$0xff] (!%p273_p2)  ;;  %v3443_v27 = vld [vmem:[%s4356_s1 + $0x170] sm:$0xff] (!%p273_p2)   ;;  %v3445_v35 = vld [vmem:[%s4356_s1 + $0x178] sm:$0xff] (!%p273_p2)  }
   0xa   : > { %v3689_v16 = vld [vmem:[%s4359_s4] ss:$0 sm:$0xff] (!%p273_p2)  ;;  %v3444_v31 = vld [vmem:[%s4356_s1 + $0x70] sm:$0xff] (!%p273_p2)   ;;  %v3446_v45 = vld [vmem:[%s4356_s1 + $0x78] sm:$0xff] (!%p273_p2)  }
   0xb   : > { %3089 = vmatpush3.bf16.msra.mxu0 (!%p273_p2), %v3433_v2  ;;  %v3739_v54 = vld [vmem:[%s4356_s1 + $0x180] sm:$0xff] (!%p273_p2)  }
   0xc   : > { %2929 = vmatpush3.bf16.msra.mxu1 (!%p273_p2), %v3434_v3  ;;  %3090 = vmatprep.subr.bf16.mxu0 (!%p273_p2), %v3435_v4  ;;  %v3749_v60 = vld [vmem:[%s4356_s1] sm:$0xff] (!%p273_p2)  }
   0xd   : > { %s4365_s28 = smov (!%p311_p3, %s2668_s28), 3  ;;  %2930 = vmatprep.subr.bf16.mxu1 %v3436_v5 }
   0xe   : > { %s3422_s23 = smul.u32 240, %s4365_s28  ;;  %s2764_s14 = sshll.u32 %s4365_s28, 7 }
   0xf   : > { %3091 = vmatpush3.bf16.msra.mxu0 %v3435_v4  ;;  %s4245_s17 = scalar_lea.vmem %s4360_s5, %s2764_s14  ;;  %s4305_s12 = scalar_lea.vmem %s4363_s8, %s2764_s14 }
  0x10   : > { %2931 = vmatpush3.bf16.msra.mxu1 %v3436_v5  ;;  %3092 = vmatprep.subr.bf16.mxu0 %v3437_v6  ;;  %s3670_s10 = scalar_lea.vmem %s4355_s0, %s3422_s23 }
  0x11   : > { %2932 = vmatprep.subr.bf16.mxu1 %v3438_v7  ;;  %v330_v12 = vld [vmem:[%s3670_s10 + $0x18] sm:$0xff]  ;;  %v331_v13 = vld [vmem:[%s3670_s10 + $0x20] sm:$0xff]  ;;  %v332_v14 = vld [vmem:[%s3670_s10 + $0x28] sm:$0x3] }
  0x12   : > { %v333_v17 = vld [vmem:[%s3670_s10 + $0x30] sm:$0xff]  ;;  %v367_v18 = vmul.f32 %v3684_v15, %v330_v12  ;;  %v368_v19 = vmul.f32 %v3684_v15, %v331_v13  ;;  %v369_v20 = vmul.f32 %v3684_v15, %v332_v14  ;;  %v334_v21 = vld [vmem:[%s3670_s10 + $0x38] sm:$0xff]  ;;  %v335_v22 = vld [vmem:[%s3670_s10 + $0x40] sm:$0x3] }
  0x13   : > { %3093 = vmatpush3.bf16.msra.mxu0 %v3437_v6  ;;  %v370_v23 = vmul.f32 %v3684_v15, %v333_v17  ;;  %v371_v24 = vmul.f32 %v3684_v15, %v334_v21  ;;  %v372_v25 = vmul.f32 %v3684_v15, %v335_v22  ;;  %v327_v26 = vld [vmem:[%s3670_s10] sm:$0xff]  ;;  %v328_v38 = vld [vmem:[%s3670_s10 + $0x8] sm:$0xff]  ;;  %v329_v39 = vld [vmem:[%s3670_s10 + $0x10] sm:$0x3] }
  0x14   : > { %2933 = vmatpush3.bf16.msra.mxu1 %v3438_v7  ;;  %3094 = vmatprep.subr.bf16.mxu0 %v3439_v8  ;;  %v404_v28 = vadd.f32 %v3689_v16, %v367_v18  ;;  %v405_v29 = vadd.f32 %v3689_v16, %v368_v19  ;;  %v406_v30 = vadd.f32 %v3689_v16, %v369_v20  ;;  %v336_v56 = vld [vmem:[%s3670_s10 + $0x48] sm:$0xff]  ;;  %v337_v57 = vld [vmem:[%s3670_s10 + $0x50] sm:$0xff]  ;;  %v338_v61 = vld [vmem:[%s3670_s10 + $0x58] sm:$0x3] }
  0x15   : > { %2934 = vmatprep.subr.bf16.mxu1 %v3440_v9  ;;  %v407_v32 = vadd.f32 %v3689_v16, %v370_v23  ;;  %v408_v33 = vadd.f32 %v3689_v16, %v371_v24  ;;  %v409_v34 = vadd.f32 %v3689_v16, %v372_v25  ;;  %v364_v40 = vmul.f32 %v3684_v15, %v327_v26  ;;  %v339_v63 = vld [vmem:[%s3670_s10 + $0x60] sm:$0xff]  ;;  %v340_v3 = vld [vmem:[%s3670_s10 + $0x68] sm:$0xff]  ;;  %v341_v4 = vld [vmem:[%s3670_s10 + $0x70] sm:$0x3] }
  0x16   : > { %v3716_v36 = vmul.f32 0.5, %v404_v28  ;;  %v464_v37 = vmul.f32 0.70710677, %v404_v28  ;;  %v3721_v41 = vmul.f32 0.5, %v405_v29  ;;  %v3723_v42 = vmul.f32 0.5, %v406_v30 }
  0x17   : > { %3095 = vmatpush3.bf16.msra.mxu0 %v3439_v8  ;;  %v465_v43 = vmul.f32 0.70710677, %v405_v29  ;;  %v466_v44 = vmul.f32 0.70710677, %v406_v30  ;;  %v3728_v46 = vmul.f32 0.5, %v407_v32  ;;  %v365_v50 = vmul.f32 %v3684_v15, %v328_v38 }
  0x18   : > { %2935 = vmatpush3.bf16.msra.mxu1 %v3440_v9  ;;  %3096 = vmatprep.subr.bf16.mxu0 %v3441_v10  ;;  %3511 = verf.f32 %v464_v37  ;;  %v467_v47 = vmul.f32 0.70710677, %v407_v32  ;;  %v468_v48 = vmul.f32 0.70710677, %v408_v33  ;;  %v469_v49 = vmul.f32 0.70710677, %v409_v34 }
  0x19   : > { %2936 = vmatprep.subr.bf16.mxu1 %v3442_v11  ;;  %3513 = verf.f32 %v465_v43  ;;  %v366_v51 = vmul.f32 %v3684_v15, %v329_v39  ;;  %v3732_v52 = vmul.f32 0.5, %v408_v33  ;;  %v3734_v53 = vmul.f32 0.5, %v409_v34 }
  0x1a   : > { %3515 = verf.f32 %v466_v44  ;;  %v401_v55 = vadd.f32 %v3689_v16, %v364_v40  ;;  %v402_v58 = vadd.f32 %v3689_v16, %v365_v50  ;;  %v373_v62 = vmul.f32 %v3684_v15, %v336_v56 }
  0x1b   : > { %3097 = vmatpush3.bf16.msra.mxu0 %v3441_v10  ;;  %3517 = verf.f32 %v467_v47  ;;  %v403_v59 = vadd.f32 %v3689_v16, %v366_v51  ;;  %v374_v2 = vmul.f32 %v3684_v15, %v337_v57  ;;  %v375_v9 = vmul.f32 %v3684_v15, %v338_v61 }
  0x1c   : > { %2937 = vmatpush3.bf16.msra.mxu1 %v3442_v11  ;;  %3098 = vmatprep.subr.bf16.mxu0 %v3443_v27  ;;  %3519 = verf.f32 %v468_v48  ;;  %v3754_v0 = vmul.f32 0.5, %v401_v55  ;;  %v461_v1 = vmul.f32 0.70710677, %v401_v55  ;;  %v3759_v5 = vmul.f32 0.5, %v402_v58 }
  0x1d   : > { %2938 = vmatprep.subr.bf16.mxu1 %v3444_v31  ;;  %3521 = verf.f32 %v469_v49  ;;  %v3761_v6 = vmul.f32 0.5, %v403_v59  ;;  %v462_v7 = vmul.f32 0.70710677, %v402_v58  ;;  %v463_v8 = vmul.f32 0.70710677, %v403_v59  ;;  %v343_v49 = vld [vmem:[%s3670_s10 + $0x80] sm:$0xff] }
  0x1e   : > { %3523 = verf.f32 %v461_v1  ;;  %v410_v10 = vadd.f32 %v3689_v16, %v373_v62  ;;  %v411_v11 = vadd.f32 %v3689_v16, %v374_v2  ;;  %v376_v12 = vmul.f32 %v3684_v15, %v339_v63 }
  0x1f   : > { %3099 = vmatpush3.bf16.msra.mxu0 %v3443_v27  ;;  %3525 = verf.f32 %v462_v7  ;;  %v377_v13 = vmul.f32 %v3684_v15, %v340_v3  ;;  %v412_v14 = vadd.f32 %v3689_v16, %v375_v9  ;;  %v378_v21 = vmul.f32 %v3684_v15, %v341_v4 }
  0x20   : > { %2939 = vmatpush3.bf16.msra.mxu1 %v3444_v31  ;;  %3100 = vmatprep.subr.bf16.mxu0 %v3445_v35  ;;  %3527 = verf.f32 %v463_v8  ;;  %v3770_v17 = vmul.f32 0.5, %v410_v10  ;;  %v470_v18 = vmul.f32 0.70710677, %v410_v10  ;;  %v3773_v19 = vmul.f32 0.5, %v411_v11 }
  0x21   : > { %2940 = vmatprep.subr.bf16.mxu1 %v3446_v45  ;;  %v471_v20 = vmul.f32 0.70710677, %v411_v11  ;;  %v413_v22 = vadd.f32 %v3689_v16, %v376_v12  ;;  %v3777_v24 = vmul.f32 0.5, %v412_v14  ;;  %v472_v25 = vmul.f32 0.70710677, %v412_v14 }
  0x22   : > { %v3512_v23 = vpop.eup %3511  ;;  %3529 = verf.f32 %v470_v18  ;;  %v414_v26 = vadd.f32 %v3689_v16, %v377_v13  ;;  %v415_v29 = vadd.f32 %v3689_v16, %v378_v21 }
  0x23   : > { %3101 = vmatpush3.bf16.msra.mxu0 %v3445_v35  ;;  %v3514_v27 = vpop.eup %3513  ;;  %v524_v28 = vadd.f32 1.0, %v3512_v23  ;;  %3531 = verf.f32 %v471_v20  ;;  %v3781_v30 = vmul.f32 0.5, %v413_v22  ;;  %v473_v34 = vmul.f32 0.70710677, %v413_v22  ;;  %v342_v35 = vld [vmem:[%s3670_s10 + $0x78] sm:$0xff] }
  0x24   : > { %2941 = vmatpush3.bf16.msra.mxu1 %v3446_v45  ;;  %3118 = vmatprep.subr.bf16.mxu0 %v3739_v54  ;;  %v3516_v31 = vpop.eup %3515  ;;  %v525_v32 = vadd.f32 1.0, %v3514_v27  ;;  %3533 = verf.f32 %v472_v25  ;;  %v3783_v33 = vmul.f32 0.5, %v414_v26  ;;  %v3787_v40 = vmul.f32 0.5, %v415_v29  ;;  %v3449_v27 = vld [vmem:[%s4356_s1 + $0x188] sm:$0xff]  }
  0x25   : > { %2958 = vmatprep.subr.bf16.mxu1 %v3749_v60  ;;  %v3518_v37 = vpop.eup %3517  ;;  %v526_v38 = vadd.f32 1.0, %v3516_v31  ;;  %v554_v39 = vmul.f32 %v524_v28, %v3716_v36  ;;  %v474_v43 = vmul.f32 0.70710677, %v414_v26  ;;  %v475_v48 = vmul.f32 0.70710677, %v415_v29 }
  0x26   : > { %v3520_v44 = vpop.eup %3519  ;;  %v555_v45 = vmul.f32 %v525_v32, %v3721_v41  ;;  %v527_v47 = vadd.f32 1.0, %v3518_v37  ;;  %3535 = verf.f32 %v473_v34  ;;  %v3793_v56 = vmul.f32 %v3684_v15, %v342_v35 }
  0x27   : > { %v3522_v50 = vpop.eup %3521  ;;  %v556_v51 = vmul.f32 %v526_v38, %v3723_v42  ;;  %v528_v55 = vadd.f32 1.0, %v3520_v44  ;;  %3537 = verf.f32 %v474_v43  ;;  %v3800_v42 = vmul.f32 %v3684_v15, %v343_v49 }
  0x28   : > { %v3524_v36 = vpop.eup %3523  ;;  %v3795_v57 = vpack.c.bf16 %v555_v45, %v554_v39  ;;  %v529_v58 = vadd.f32 1.0, %v3522_v50  ;;  %v557_v59 = vmul.f32 %v527_v47, %v3728_v46  ;;  %3539 = verf.f32 %v475_v48 }
  0x29   : > { %v3526_v41 = vpop.eup %3525  ;;  %v584_v61 = vpack.c.bf16 %v556_v51, %v556_v51  ;;  %v558_v62 = vmul.f32 %v528_v55, %v3732_v52  ;;  %v521_v63 = vadd.f32 1.0, %v3524_v36  ;;  %v3451_v51 = vld [vmem:[%s4356_s1 + $0x190] sm:$0xff]  }
  0x2a   : > { %v3528_v1 = vpop.eup %3527  ;;  %v1160_v2 = vrot.slane %v3795_v57, 1  ;;  %v559_v3 = vmul.f32 %v529_v58, %v3734_v53  ;;  %v522_v4 = vadd.f32 1.0, %v3526_v41  ;;  %v759_v7 = vshrl.u32 %v3795_v57, 16  ;;  %v3450_v41 = vld [vmem:[%s4356_s1 + $0x8] sm:$0xff]  }
  0x2b   : > { %v1161_v8 = vrot.slane %v584_v61, 1  ;;  %v3805_v9 = vpack.c.bf16 %v558_v62, %v557_v59  ;;  %v523_v46 = vadd.f32 1.0, %v3528_v1  ;;  %v551_v10 = vmul.f32 %v521_v63, %v3754_v0  ;;  %v344_v59 = vld [vmem:[%s3670_s10 + $0x88] sm:$0x3] }
  0x2c   : > { %v3530_v11 = vpop.eup %3529  ;;  %v3808_v52 = vpack.c.bf16 %v559_v3, %v559_v3  ;;  %v552_v12 = vmul.f32 %v522_v4, %v3759_v5  ;;  %v761_v13 = vshll.u32 %v3795_v57, 16  ;;  %v766_v14 = vshll.u32 %v584_v61, 16 }
  0x2d   : > { %v3532_v18 = vpop.eup %3531  ;;  %v3813_v53 = vsel %vm1156_vm0, %v1160_v2, %v1161_v8  ;;  %v1163_v20 = vrot.slane %v3805_v9, 1  ;;  %v553_v21 = vmul.f32 %v523_v46, %v3761_v6  ;;  %v530_v22 = vadd.f32 1.0, %v3530_v11  ;;  %v345_v8 = vld [vmem:[%s3670_s10 + $0x90] sm:$0xff] }
  0x2e   : > { %v3534_v23 = vpop.eup %3533  ;;  %3102 = vmatprep.mubr.bf16.mxu0 %v3813_v53  ;;  %v1164_v0 = vrot.slane %v3808_v52, 1  ;;  %v3819_v25 = vpack.c.bf16 %v552_v12, %v551_v10  ;;  %v763_v5 = vrot.slane %v761_v13, 1  ;;  %v768_v26 = vrot.slane %v766_v14, 1  ;;  %v346_v13 = vld [vmem:[%s3670_s10 + $0x98] sm:$0xff] }
  0x2f   : > { %v3824_v28 = vpack.c.bf16 %v553_v21, %v553_v21  ;;  %v531_v29 = vadd.f32 1.0, %v3532_v18  ;;  %v532_v31 = vadd.f32 1.0, %v3534_v23  ;;  %v560_v6 = vmul.f32 %v530_v22, %v3770_v17  ;;  %v347_v22 = vld [vmem:[%s3670_s10 + $0xa0] sm:$0x3] }
  0x30   : > { %v3536_v32 = vpop.eup %3535  ;;  %v3828_v34 = vsel %vm1156_vm0, %v1163_v20, %v1164_v0  ;;  %v747_v35 = vshrl.u32 %v3819_v25, 16  ;;  %v749_v37 = vshll.u32 %v3819_v25, 16  ;;  %v764_v38 = vor.u32 %v763_v5, %v759_v7  ;;  %v3453_v7 = vld [vmem:[%s4356_s1 + $0x198] sm:$0xff]  }
  0x31   : > { %v3538_v39 = vpop.eup %3537  ;;  %3103 = vmatmul.mubr.bf16.vlgmr.msra.gmra.mrb[0].mxu0 %v3828_v34  ;;  %v754_v43 = vshll.u32 %v3824_v28, 16  ;;  %v561_v44 = vmul.f32 %v531_v29, %v3773_v19  ;;  %v562_v45 = vmul.f32 %v532_v31, %v3777_v24  ;;  %v533_v17 = vadd.f32 1.0, %v3536_v32  ;;  %v3455_v32 = vld [vmem:[%s4356_s1 + $0x1a0] sm:$0xff]  }
  0x32   : > { %v3540_v47 = vpop.eup %3539  ;;  %3119 = vmatpush3.bf16.msra.mxu0 %v3739_v54  ;;  %v751_v48 = vrot.slane %v749_v37, 1  ;;  %v3838_v49 = vsel %vm745_vm1, %v764_v38, %v768_v26  ;;  %v534_v50 = vadd.f32 1.0, %v3538_v39  ;;  %v771_v55 = vshrl.u32 %v3805_v9, 16 }
  0x33   : > { %v756_v36 = vrot.slane %v754_v43, 1  ;;  %3120 = vmatprep.subr.bf16.mxu0 %v3449_v27  ;;  %v3844_v19 = vpack.c.bf16 %v561_v44, %v560_v6  ;;  %v588_v24 = vpack.c.bf16 %v562_v45, %v562_v45  ;;  %v535_v58 = vadd.f32 1.0, %v3540_v47  ;;  %v3457_v47 = vld [vmem:[%s4356_s1 + $0x1a8] sm:$0xff]  }
  0x34   : > { %v752_v54 = vor.u32 %v751_v48, %v747_v35  ;;  %v563_v61 = vmul.f32 %v533_v17, %v3781_v30  ;;  %v564_v62 = vmul.f32 %v534_v50, %v3783_v33  ;;  %v773_v63 = vshll.u32 %v3805_v9, 16  ;;  %v3454_v35 = vld [vmem:[%s4356_s1 + $0x18] sm:$0xff]   ;;  %v348_v48 = vld [vmem:[%s3670_s10 + $0xa8] sm:$0xff]  ;;  %v349_v50 = vld [vmem:[%s3670_s10 + $0xb0] sm:$0xff] }
  0x35   : > { %v1166_v1 = vrot.slane %v3844_v19, 1  ;;  %v1167_v2 = vrot.slane %v588_v24, 1  ;;  %v565_v3 = vmul.f32 %v535_v58, %v3787_v40  ;;  %v778_v4 = vshll.u32 %v3808_v52, 16 }
  0x36   : > { %v757_v46 = vsel %vm745_vm1, %v752_v54, %v756_v36  ;;  %3121 = vmatpush3.bf16.msra.mxu0 %v3449_v27  ;;  %v3861_v30 = vpack.c.bf16 %v564_v62, %v563_v61  ;;  %v775_v33 = vrot.slane %v773_v63, 1  ;;  %v783_v10 = vshrl.u32 %v3844_v19, 16  ;;  %v353_v54 = vld [vmem:[%s3670_s10 + $0xd0] sm:$0x3]  ;;  %v351_v62 = vld [vmem:[%s3670_s10 + $0xc0] sm:$0xff] }
  0x37   : > { %2942 = vmatprep.mubr.bf16.mxu1 %v757_v46  ;;  %v3865_v11 = vsel %vm1156_vm0, %v1166_v1, %v1167_v2  ;;  %v3867_v40 = vpack.c.bf16 %v565_v3, %v565_v3  ;;  %3122 = vmatprep.subr.bf16.mxu0 %v3451_v51  ;;  %v780_v52 = vrot.slane %v778_v4, 1  ;;  %v785_v12 = vshll.u32 %v3844_v19, 16  ;;  %v352_v2 = vld [vmem:[%s3670_s10 + $0xc8] sm:$0xff]  ;;  %v3456_v4 = vld [vmem:[%s4356_s1 + $0x20] sm:$0xff]  }
  0x38   : > { %2943 = vmatmul.mubr.bf16.vlgmr.msra.gmra.mrb[0].mxu1 %v3838_v49  ;;  %3106 = vmatprep.mubr.bf16.mxu0 %v3865_v11  ;;  %v1169_v14 = vrot.slane %v3861_v30, 1  ;;  %v776_v18 = vor.u32 %v775_v33, %v771_v55  ;;  %v790_v20 = vshll.u32 %v588_v24, 16  ;;  %v381_v21 = vmul.f32 %v3684_v15, %v344_v59  ;;  %v350_v24 = vld [vmem:[%s3670_s10 + $0xb8] sm:$0x3] }
  0x39   : > { %2959 = vmatpush3.bf16.msra.mxu1 %v3749_v60  ;;  %v1170_v23 = vrot.slane %v3867_v40, 1  ;;  %v787_v0 = vrot.slane %v785_v12, 1  ;;  %v3880_v5 = vadd.f32 %v3689_v16, %v3793_v56  ;;  %v3884_v26 = vadd.f32 %v3689_v16, %v3800_v42  ;;  %v3452_v60 = vld [vmem:[%s4356_s1 + $0x10] sm:$0xff]  }
  0x3a   : > { %2960 = vmatprep.subr.bf16.mxu1 %v3450_v41  ;;  %3123 = vmatpush3.bf16.msra.mxu0 %v3451_v51  ;;  %v3887_v27 = vsel %vm745_vm1, %v776_v18, %v780_v52  ;;  %v792_v29 = vrot.slane %v790_v20, 1  ;;  %v3893_v31 = vadd.f32 %v3689_v16, %v381_v21  ;;  %v382_v56 = vmul.f32 %v3684_v15, %v345_v8 }
  0x3b   : > { %v3897_v6 = vsel %vm1156_vm0, %v1169_v14, %v1170_v23  ;;  %2946 = vmatprep.mubr.bf16.mxu1 %v3887_v27  ;;  %v788_v42 = vor.u32 %v787_v0, %v783_v10  ;;  %3124 = vmatprep.subr.bf16.mxu0 %v3453_v7  ;;  %v476_v37 = vmul.f32 0.70710677, %v3880_v5  ;;  %v477_v38 = vmul.f32 0.70710677, %v3884_v26  ;;  %v3459_v14 = vld [vmem:[%s4356_s1 + $0x1b0] sm:$0xff]  }
  0x3c   : > { %3107 = vmatmul.mubr.bf16.gmra.mrb[4].mxu0 %v3897_v6  ;;  %v383_v39 = vmul.f32 %v3684_v15, %v346_v13  ;;  %v478_v44 = vmul.f32 0.70710677, %v3893_v31  ;;  %v384_v45 = vmul.f32 %v3684_v15, %v347_v22  ;;  %v3916_v17 = vadd.f32 %v3689_v16, %v382_v56  ;;  %v3458_v22 = vld [vmem:[%s4356_s1 + $0x28] sm:$0xff]  }
  0x3d   : > { %2961 = vmatpush3.bf16.msra.mxu1 %v3450_v41  ;;  %v3911_v43 = vsel %vm745_vm1, %v788_v42, %v792_v29  ;;  %3541 = verf.f32 %v476_v37  ;;  %v795_v55 = vshrl.u32 %v3861_v30, 16  ;;  %v797_v36 = vshll.u32 %v3861_v30, 16 }
  0x3e   : > { %2962 = vmatprep.subr.bf16.mxu1 %v3452_v60  ;;  %3125 = vmatpush3.bf16.msra.mxu0 %v3453_v7  ;;  %v420_v51 = vadd.f32 %v3689_v16, %v383_v39  ;;  %3543 = verf.f32 %v477_v38  ;;  %v3928_v58 = vadd.f32 %v3689_v16, %v384_v45  ;;  %v479_v59 = vmul.f32 0.70710677, %v3916_v17 }
  0x3f   : > { %3126 = vmatprep.subr.bf16.mxu0 %v3455_v32  ;;  %3545 = verf.f32 %v478_v44  ;;  %v799_v61 = vrot.slane %v797_v36, 1  ;;  %v802_v1 = vshll.u32 %v3867_v40, 16  ;;  %v385_v7 = vmul.f32 %v3684_v15, %v348_v48 }
  0x40   : > { %2947 = vmatmul.mubr.bf16.gmra.mrb[4].mxu1 %v3911_v43  ;;  %v480_v41 = vmul.f32 0.70710677, %v420_v51  ;;  %v481_v63 = vmul.f32 0.70710677, %v3928_v58  ;;  %3547 = verf.f32 %v479_v59  ;;  %v386_v8 = vmul.f32 %v3684_v15, %v349_v50 }
  0x41   : > { %2963 = vmatpush3.bf16.msra.mxu1 %v3452_v60  ;;  %v800_v3 = vor.u32 %v799_v61, %v795_v55  ;;  %v804_v46 = vrot.slane %v802_v1, 1  ;;  %v387_v33 = vmul.f32 %v3684_v15, %v350_v24  ;;  %v388_v10 = vmul.f32 %v3684_v15, %v351_v62  ;;  %v3975_v55 = vld [vmem:[%s4356_s1 + $0x1c0] sm:$0xff]   ;;  %v3462_v62 = vld [vmem:[%s4356_s1 + $0x38] sm:$0xff]  }
  0x42   : > { %2964 = vmatprep.subr.bf16.mxu1 %v3454_v35  ;;  %3549 = verf.f32 %v480_v41  ;;  %3127 = vmatpush3.bf16.msra.mxu0 %v3455_v32  ;;  %v422_v40 = vadd.f32 %v3689_v16, %v385_v7  ;;  %v423_v52 = vadd.f32 %v3689_v16, %v386_v8  ;;  %v389_v12 = vmul.f32 %v3684_v15, %v352_v2  ;;  %v3461_v32 = vld [vmem:[%s4356_s1 + $0x1b8] sm:$0xff]  }
  0x43   : > { %3551 = verf.f32 %v481_v63  ;;  %3128 = vmatprep.subr.bf16.mxu0 %v3457_v47  ;;  %v390_v13 = vmul.f32 %v3684_v15, %v353_v54  ;;  %v3952_v18 = vsel %vm745_vm1, %v800_v3, %v804_v46  ;;  %v424_v20 = vadd.f32 %v3689_v16, %v387_v33 }
  0x44   : > { %v425_v21 = vadd.f32 %v3689_v16, %v388_v10  ;;  %2950 = vmatprep.mubr.bf16.mxu1 %v3952_v18  ;;  %v482_v23 = vmul.f32 0.70710677, %v422_v40  ;;  %v483_v0 = vmul.f32 0.70710677, %v423_v52  ;;  %v446_v60 = vmul.f32 0.5, %v3880_v5 }
  0x45   : > { %2965 = vmatpush3.bf16.msra.mxu1 %v3454_v35  ;;  %v484_v29 = vmul.f32 0.70710677, %v424_v20  ;;  %v426_v56 = vadd.f32 %v3689_v16, %v389_v12  ;;  %v427_v42 = vadd.f32 %v3689_v16, %v390_v13  ;;  %v447_v37 = vmul.f32 0.5, %v3884_v26  ;;  %v3460_v16 = vld [vmem:[%s4356_s1 + $0x30] sm:$0xff]  }
  0x46   : > { %2966 = vmatprep.subr.bf16.mxu1 %v3456_v4  ;;  %3129 = vmatpush3.bf16.msra.mxu0 %v3457_v47  ;;  %v448_v38 = vmul.f32 0.5, %v3893_v31  ;;  %3553 = verf.f32 %v482_v23  ;;  %v485_v39 = vmul.f32 0.70710677, %v425_v21  ;;  %v449_v45 = vmul.f32 0.5, %v3916_v17 }
  0x47   : > { %v3542_v35 = vpop.eup %3541  ;;  %3130 = vmatprep.subr.bf16.mxu0 %v3459_v14  ;;  %v450_v47 = vmul.f32 0.5, %v420_v51  ;;  %3555 = verf.f32 %v483_v0  ;;  %v486_v26 = vmul.f32 0.70710677, %v426_v56  ;;  %v487_v31 = vmul.f32 0.70710677, %v427_v42 }
  0x48   : > { %v3544_v44 = vpop.eup %3543  ;;  %v536_v5 = vadd.f32 1.0, %v3542_v35  ;;  %3557 = verf.f32 %v484_v29  ;;  %v451_v24 = vmul.f32 0.5, %v3928_v58  ;;  %v452_v61 = vmul.f32 0.5, %v422_v40 }
  0x49   : > { %2967 = vmatpush3.bf16.msra.mxu1 %v3456_v4  ;;  %v3546_v48 = vpop.eup %3545  ;;  %v537_v50 = vadd.f32 1.0, %v3544_v44  ;;  %3559 = verf.f32 %v485_v39  ;;  %v453_v3 = vmul.f32 0.5, %v423_v52  ;;  %v454_v8 = vmul.f32 0.5, %v424_v20 }
  0x4a   : > { %2968 = vmatprep.subr.bf16.mxu1 %v3458_v22  ;;  %v3548_v36 = vpop.eup %3547  ;;  %v538_v17 = vadd.f32 1.0, %v3546_v48  ;;  %v566_v51 = vmul.f32 %v536_v5, %v446_v60  ;;  %3131 = vmatpush3.bf16.msra.mxu0 %v3459_v14  ;;  %3561 = verf.f32 %v486_v26  ;;  %v455_v10 = vmul.f32 0.5, %v425_v21  ;;  %v3992_v21 = vld [vmem:[%s4356_s1 + $0x80] sm:$0xff]  }
  0x4b   : > { %v567_v54 = vmul.f32 %v537_v50, %v447_v37  ;;  %v539_v41 = vadd.f32 1.0, %v3548_v36  ;;  %3132 = vmatprep.subr.bf16.mxu0 %v3461_v32  ;;  %3563 = verf.f32 %v487_v31  ;;  %v456_v40 = vmul.f32 0.5, %v426_v56 }
  0x4c   : > { %v3550_v59 = vpop.eup %3549  ;;  %v568_v1 = vmul.f32 %v538_v17, %v448_v38  ;;  %v457_v20 = vmul.f32 0.5, %v427_v42 }
  0x4d   : > { %v3552_v63 = vpop.eup %3551  ;;  %v540_v2 = vadd.f32 1.0, %v3550_v59  ;;  %2969 = vmatpush3.bf16.msra.mxu1 %v3458_v22  ;;  %v3981_v4 = vpack.c.bf16 %v567_v54, %v566_v51  ;;  %v569_v7 = vmul.f32 %v539_v41, %v449_v45  ;;  %v354_v41 = vld [vmem:[%s3670_s10 + $0xd8] sm:$0xff] }
  0x4e   : > { %v541_v58 = vadd.f32 1.0, %v3552_v63  ;;  %2970 = vmatprep.subr.bf16.mxu1 %v3460_v16  ;;  %v592_v46 = vpack.c.bf16 %v568_v1, %v568_v1  ;;  %3133 = vmatpush3.bf16.msra.mxu0 %v3461_v32  ;;  %v1157_v32 = vrot.slane %v3819_v25, 1 }
  0x4f   : > { %v570_v33 = vmul.f32 %v540_v2, %v450_v47  ;;  %v1172_v12 = vrot.slane %v3981_v4, 1  ;;  %v807_v14 = vshrl.u32 %v3981_v4, 16  ;;  %v809_v52 = vshll.u32 %v3981_v4, 16  ;;  %3150 = vmatprep.subr.bf16.mxu0 %v3975_v55 }
  0x50   : > { %v571_v13 = vmul.f32 %v541_v58, %v451_v24  ;;  %v1173_v22 = vrot.slane %v592_v46, 1  ;;  %v814_v0 = vshll.u32 %v592_v46, 16  ;;  %v3554_v60 = vpop.eup %3553 }
  0x51   : > { %v3987_v23 = vpack.c.bf16 %v570_v33, %v569_v7  ;;  %2971 = vmatpush3.bf16.msra.mxu1 %v3460_v16  ;;  %v811_v56 = vrot.slane %v809_v52, 1  ;;  %v3556_v35 = vpop.eup %3555  ;;  %v542_v42 = vadd.f32 1.0, %v3554_v60  ;;  %v391_v52 = vmul.f32 %v3684_v15, %v354_v41  ;;  %v3571_v15 = vld [vmem:[%s4358_s3] ss:$0 sm:$0xff] }
  0x52   : > { %v594_v29 = vpack.c.bf16 %v571_v13, %v571_v13  ;;  %2972 = vmatprep.subr.bf16.mxu1 %v3462_v62  ;;  %v3996_v37 = vsel %vm1156_vm0, %v1172_v12, %v1173_v22  ;;  %v816_v39 = vrot.slane %v814_v0, 1  ;;  %v3558_v44 = vpop.eup %3557  ;;  %v543_v47 = vadd.f32 1.0, %v3556_v35 }
  0x53   : > { %v1175_v38 = vrot.slane %v3987_v23, 1  ;;  %3110 = vmatprep.mubr.bf16.mxu0 %v3996_v37  ;;  %v812_v45 = vor.u32 %v811_v56, %v807_v14  ;;  %v819_v16 = vshrl.u32 %v3987_v23, 16  ;;  %v3560_v48 = vpop.eup %3559  ;;  %v544_v50 = vadd.f32 1.0, %v3558_v44  ;;  %v355_v14 = vld [vmem:[%s3670_s10 + $0xe0] sm:$0xff] }
  0x54   : > { %v1176_v5 = vrot.slane %v594_v29, 1  ;;  %v572_v26 = vmul.f32 %v542_v42, %v452_v61  ;;  %v821_v31 = vshll.u32 %v3987_v23, 16  ;;  %v826_v36 = vshll.u32 %v594_v29, 16  ;;  %v3562_v17 = vpop.eup %3561 }
  0x55   : > { %2973 = vmatpush3.bf16.msra.mxu1 %v3462_v62  ;;  %v4006_v24 = vsel %vm745_vm1, %v812_v45, %v816_v39  ;;  %v573_v59 = vmul.f32 %v543_v47, %v453_v3  ;;  %v545_v54 = vadd.f32 1.0, %v3560_v48  ;;  %v3564_v63 = vpop.eup %3563  ;;  %v574_v61 = vmul.f32 %v544_v50, %v454_v8  ;;  %v3572_v47 = vld [vmem:[%s4359_s4] ss:$0 sm:$0xff] }
  0x56   : > { %v4003_v51 = vsel %vm1156_vm0, %v1175_v38, %v1176_v5  ;;  %2990 = vmatprep.subr.bf16.mxu1 %v3992_v21  ;;  %2951 = vmatmul.mubr.bf16.gmra.mrb[8].mxu1 %v4006_v24  ;;  %v546_v62 = vadd.f32 1.0, %v3562_v17  ;;  %v823_v1 = vrot.slane %v821_v31, 1  ;;  %v828_v2 = vrot.slane %v826_v36, 1  ;;  %v3465_v36 = vld [vmem:[%s4356_s1 + $0x1c8] sm:$0xff]  }
  0x57   : > { %3111 = vmatmul.mubr.bf16.gmra.mrb[8].mxu0 %v4003_v51  ;;  %v4012_v58 = vpack.c.bf16 %v573_v59, %v572_v26  ;;  %v547_v7 = vadd.f32 1.0, %v3564_v63  ;;  %v575_v46 = vmul.f32 %v545_v54, %v455_v10  ;;  %v1158_v3 = vrot.slane %v3824_v28, 1  ;;  %v3466_v17 = vld [vmem:[%s4356_s1 + $0x88] sm:$0xff]   ;;  %v3468_v59 = vld [vmem:[%s4356_s1 + $0x90] sm:$0xff]   ;;  %v3470_v54 = vld [vmem:[%s4356_s1 + $0x98] sm:$0xff]  }
  0x58   : > { %v596_v33 = vpack.c.bf16 %v574_v61, %v574_v61  ;;  %v576_v12 = vmul.f32 %v546_v62, %v456_v40  ;;  %v824_v13 = vor.u32 %v823_v1, %v819_v16  ;;  %v428_v16 = vadd.f32 %v3572_v47, %v391_v52  ;;  %v3471_v62 = vld [vmem:[%s4356_s1 + $0x1e0] sm:$0xff]  }
  0x59   : > { %v1178_v22 = vrot.slane %v4012_v58, 1  ;;  %v577_v0 = vmul.f32 %v547_v7, %v457_v20  ;;  %v831_v8 = vshrl.u32 %v4012_v58, 16  ;;  %v833_v60 = vshll.u32 %v4012_v58, 16  ;;  %v3472_v1 = vld [vmem:[%s4356_s1 + $0xa0] sm:$0xff]  }
  0x5a   : > { %v1179_v29 = vrot.slane %v596_v33, 1  ;;  %v4020_v56 = vpack.c.bf16 %v576_v12, %v575_v46  ;;  %v4023_v10 = vsel %vm745_vm1, %v824_v13, %v828_v2  ;;  %v838_v28 = vshll.u32 %v596_v33, 16  ;;  %v3473_v12 = vld [vmem:[%s4356_s1 + $0x1e8] sm:$0xff]  }
  0x5b   : > { %v4025_v35 = vpack.c.bf16 %v577_v0, %v577_v0  ;;  %2954 = vmatprep.mubr.bf16.mxu1 %v4023_v10  ;;  %v835_v40 = vrot.slane %v833_v60, 1  ;;  %v392_v20 = vmul.f32 %v3571_v15, %v355_v14  ;;  %v4032_v38 = vsel %vm1156_vm0, %v1157_v32, %v1158_v3  ;;  %v3474_v13 = vld [vmem:[%s4356_s1 + $0xa8] sm:$0xff]   ;;  %v3475_v0 = vld [vmem:[%s4356_s1 + $0x1f0] sm:$0xff]  }
  0x5c   : > { %v4035_v39 = vsel %vm1156_vm0, %v1178_v22, %v1179_v29  ;;  %v1687_v42 = vrot.slane %v4020_v56, 1  ;;  %v840_v44 = vrot.slane %v838_v28, 1  ;;  %v488_v26 = vmul.f32 0.70710677, %v428_v16  ;;  %v3477_v29 = vld [vmem:[%s4356_s1 + $0x1f8] sm:$0xff]  }
  0x5d   : > { %3114 = vmatprep.mubr.bf16.mxu0 %v4035_v39  ;;  %v1688_v5 = vrot.slane %v4025_v35, 1  ;;  %v836_v45 = vor.u32 %v835_v40, %v831_v8  ;;  %v429_v50 = vadd.f32 %v3572_v47, %v392_v20  ;;  %v458_v2 = vmul.f32 0.5, %v428_v16  ;;  %v3476_v8 = vld [vmem:[%s4356_s1 + $0xb0] sm:$0xff]   ;;  %v3478_v28 = vld [vmem:[%s4356_s1 + $0xb8] sm:$0xff]   ;;  %v3479_v40 = vld [vmem:[%s4356_s1 + $0x200] sm:$0xff]  }
  0x5e   : > { %3565 = verf.f32 %v488_v26  ;;  %v3486_v26 = vld [vmem:[%s4356_s1 + $0xd8] sm:$0xff]  }
  0x5f   : > { %v4044_v48 = vsel %vm1156_vm0, %v1687_v42, %v1688_v5  ;;  %v4047_v32 = vsel %vm745_vm1, %v836_v45, %v840_v44  ;;  %v489_v31 = vmul.f32 0.70710677, %v429_v50  ;;  %v459_v7 = vmul.f32 0.5, %v429_v50  ;;  %v3481_v42 = vld [vmem:[%s4356_s1 + $0x208] sm:$0xff]   ;;  %v3483_v45 = vld [vmem:[%s4356_s1 + $0x210] sm:$0xff]   ;;  %v3485_v50 = vld [vmem:[%s4356_s1 + $0x218] sm:$0xff]  }
  0x60   : > { %3115 = vmatmul.mubr.bf16.gmra.mrb[12].mxu0 %v4044_v48  ;;  %2955 = vmatmul.mubr.bf16.gmra.mrb[12].mxu1 %v4047_v32  ;;  %v3482_v44 = vld [vmem:[%s4356_s1 + $0xc8] sm:$0xff]  }
  0x61   : > { %3134 = vmatprep.mubr.bf16.mxu0 %v3805_v9  ;;  %2974 = vmatprep.mubr.bf16.mxu1 %v3819_v25  ;;  %3567 = verf.f32 %v489_v31  ;;  %v3467_v25 = vld [vmem:[%s4356_s1 + $0x1d0] sm:$0xff]   ;;  %v1512_v31 = vshrl.u32 %v4020_v56, 16 }
  0x68   : > { %3135 = vmatmul.mubr.bf16.vlgmr.msra.gmra.mrb[0].mxu0 %v3844_v19  ;;  %2975 = vmatmul.mubr.bf16.vlgmr.msra.gmra.mrb[0].mxu1 %v3795_v57  ;;  %v3566_v41 = vpop.eup %3565 }
  0x69   : > { %3151 = vmatpush3.bf16.msra.mxu0 %v3975_v55  ;;  %2991 = vmatpush3.bf16.msra.mxu1 %v3992_v21  ;;  %v3469_v55 = vld [vmem:[%s4356_s1 + $0x1d8] sm:$0xff]   ;;  %v356_v21 = vld [vmem:[%s3670_s10 + $0xe8] sm:$0x3]  ;;  %v548_v46 = vadd.f32 1.0, %v3566_v41 }
  0x6a   : > { %3152 = vmatprep.subr.bf16.mxu0 %v3465_v36  ;;  %2992 = vmatprep.subr.bf16.mxu1 %v3466_v17  ;;  %v393_v63 = vmul.f32 %v3571_v15, %v356_v21  ;;  %v3480_v15 = vld [vmem:[%s4356_s1 + $0xc0] sm:$0xff]  }
  0x6b   : > { %3138 = vmatprep.mubr.bf16.mxu0 %v3861_v30  ;;  %2978 = vmatprep.mubr.bf16.mxu1 %v3805_v9  ;;  %v3568_v61 = vpop.eup %3567  ;;  %v578_v14 = vmul.f32 %v548_v46, %v458_v2  ;;  %v3488_v21 = vld [vmem:[%s4356_s1 + $0xe0] sm:$0xff]  }
  0x6c   : > { %v549_v3 = vadd.f32 1.0, %v3568_v61  ;;  %v430_v33 = vadd.f32 %v3572_v47, %v393_v63  ;;  %v3484_v47 = vld [vmem:[%s4356_s1 + $0xd0] sm:$0xff]  }
  0x6d   : > { %3153 = vmatpush3.bf16.msra.mxu0 %v3465_v36  ;;  %2993 = vmatpush3.bf16.msra.mxu1 %v3466_v17  ;;  %v1519_v17 = vshll.u32 %v4025_v35, 16 }
  0x6e   : > { %3154 = vmatprep.subr.bf16.mxu0 %v3467_v25  ;;  %2994 = vmatprep.subr.bf16.mxu1 %v3468_v59  ;;  %v579_v52 = vmul.f32 %v549_v3, %v459_v7  ;;  %v490_v22 = vmul.f32 0.70710677, %v430_v33  ;;  %v3491_v3 = vld [vmem:[%s4356_s1 + $0x230] sm:$0xff]  }
  0x70   : > { %3139 = vmatmul.mubr.bf16.gmra.mrb[4].mxu0 %v3981_v4  ;;  %2979 = vmatmul.mubr.bf16.gmra.mrb[4].mxu1 %v3844_v19  ;;  %v4104_v60 = vpack.c.bf16 %v579_v52, %v578_v14  ;;  %3569 = verf.f32 %v490_v22  ;;  %v3494_v14 = vld [vmem:[%s4356_s1 + $0xf8] sm:$0xff]   ;;  %v3495_v52 = vld [vmem:[%s4361_s6] sm:$0xff]  }
  0x71   : > { %3155 = vmatpush3.bf16.msra.mxu0 %v3467_v25  ;;  %2995 = vmatpush3.bf16.msra.mxu1 %v3468_v59  ;;  %v3496_v22 = vld [vmem:[%s4356_s1 + $0x100] sm:$0xff]  }
  0x72   : > { %3156 = vmatprep.subr.bf16.mxu0 %v3469_v55  ;;  %2996 = vmatprep.subr.bf16.mxu1 %v3470_v54  ;;  %v2016_v59 = vshll.u32 %v4104_v60, 16  ;;  %v2014_v41 = vshrl.u32 %v4104_v60, 16 }
  0x73   : > { %3142 = vmatprep.mubr.bf16.mxu0 %v3987_v23  ;;  %2982 = vmatprep.mubr.bf16.mxu1 %v3861_v30 }
  0x74   : > { %v2018_v63 = vrot.slane %v2016_v59, 1 }
  0x75   : > { %3157 = vmatpush3.bf16.msra.mxu0 %v3469_v55  ;;  %2997 = vmatpush3.bf16.msra.mxu1 %v3470_v54  ;;  %v3487_v55 = vld [vmem:[%s4356_s1 + $0x220] sm:$0xff]   ;;  %v1521_v54 = vrot.slane %v1519_v17, 1 }
  0x76   : > { %3158 = vmatprep.subr.bf16.mxu0 %v3471_v62  ;;  %2998 = vmatprep.subr.bf16.mxu1 %v3472_v1  ;;  %v2019_v7 = vor.u32 %v2018_v63, %v2014_v41 }
  0x78   : > { %3143 = vmatmul.mubr.bf16.gmra.mrb[8].mxu0 %v4012_v58  ;;  %2983 = vmatmul.mubr.bf16.gmra.mrb[8].mxu1 %v3981_v4 }
  0x79   : > { %3159 = vmatpush3.bf16.msra.mxu0 %v3471_v62  ;;  %2999 = vmatpush3.bf16.msra.mxu1 %v3472_v1  ;;  %v3489_v62 = vld [vmem:[%s4356_s1 + $0x228] sm:$0xff]  }
  0x7a   : > { %3160 = vmatprep.subr.bf16.mxu0 %v3473_v12  ;;  %3000 = vmatprep.subr.bf16.mxu1 %v3474_v13  ;;  %v3570_v20 = vpop.eup %3569  ;;  %v3490_v1 = vld [vmem:[%s4356_s1 + $0xe8] sm:$0xff]  }
  0x7b   : > { %3146 = vmatprep.mubr.bf16.mxu0 %v4020_v56  ;;  %2986 = vmatprep.mubr.bf16.mxu1 %v3987_v23  ;;  %v550_v5 = vadd.f32 1.0, %v3570_v20  ;;  %v2380_v20 = vld [vmem:[%s4245_s17 + $0x18] sm:$0xff] }
  0x7d   : > { %3161 = vmatpush3.bf16.msra.mxu0 %v3473_v12  ;;  %3001 = vmatpush3.bf16.msra.mxu1 %v3474_v13  ;;  %v3493_v13 = vld [vmem:[%s4356_s1 + $0x238] sm:$0xff]  }
  0x7e   : > { %3162 = vmatprep.subr.bf16.mxu0 %v3475_v0  ;;  %3002 = vmatprep.subr.bf16.mxu1 %v3476_v8 }
  0x80   : > { %3147 = vmatmul.mubr.bf16.gmra.mrb[12].mxu0 %v4104_v60  ;;  %2987 = vmatmul.mubr.bf16.gmra.mrb[12].mxu1 %v4012_v58 }
  0x81   : > { %3163 = vmatpush3.bf16.msra.mxu0 %v3475_v0  ;;  %3003 = vmatpush3.bf16.msra.mxu1 %v3476_v8  ;;  %v3497_v0 = vld [vmem:[%s4361_s6 + $0x8] sm:$0xff]  }
  0x82   : > { %3164 = vmatprep.subr.bf16.mxu0 %v3477_v29  ;;  %3004 = vmatprep.subr.bf16.mxu1 %v3478_v28  ;;  %v3498_v8 = vld [vmem:[%s4356_s1 + $0x108] sm:$0xff]  }
  0x83   : > { %3166 = vmatprep.mubr.bf16.mxu0 %v3887_v27  ;;  %3006 = vmatprep.mubr.bf16.mxu1 %v4032_v38  ;;  %v460_v38 = vmul.f32 0.5, %v430_v33  ;;  %v3492_v33 = vld [vmem:[%s4356_s1 + $0xf0] sm:$0xff]  }
  0x85   : > { %3165 = vmatpush3.bf16.msra.mxu0 %v3477_v29  ;;  %3005 = vmatpush3.bf16.msra.mxu1 %v3478_v28  ;;  %v580_v16 = vmul.f32 %v550_v5, %v460_v38  ;;  %v2378_v29 = vld [vmem:[%s4245_s17 + $0x8] sm:$0xff]  ;;  %v2383_v5 = vld [vmem:[%s4245_s17 + $0x30] sm:$0xff] }
  0x86   : > { %3182 = vmatprep.subr.bf16.mxu0 %v3479_v40  ;;  %3022 = vmatprep.subr.bf16.mxu1 %v3480_v15 }
  0x87   : > { %v4149_v25 = vpack.c.bf16 %v580_v16, %v580_v16 }
  0x88   : > { %3167 = vmatmul.mubr.bf16.vlgmr.msra.gmra.mrb[0].mxu0 %v3911_v43  ;;  %3007 = vmatmul.mubr.bf16.vlgmr.msra.gmra.mrb[0].mxu1 %v3813_v53  ;;  %v1514_v53 = vshll.u32 %v4020_v56, 16 }
  0x89   : > { %3183 = vmatpush3.bf16.msra.mxu0 %v3479_v40  ;;  %3023 = vmatpush3.bf16.msra.mxu1 %v3480_v15  ;;  %v2021_v61 = vshll.u32 %v4149_v25, 16  ;;  %v3509_v40 = vld [vmem:[%s4361_s6 + $0x38] sm:$0xff]   ;;  %v2379_v15 = vld [vmem:[%s4245_s17 + $0x10] sm:$0xff] }
  0x8a   : > { %3184 = vmatprep.subr.bf16.mxu0 %v3481_v42  ;;  %3024 = vmatprep.subr.bf16.mxu1 %v3482_v44  ;;  %v1516_v36 = vrot.slane %v1514_v53, 1  ;;  %v2394_v38 = vpack.c.bf16 %v2380_v20, %v2379_v15  ;;  %v2386_v53 = vld [vmem:[%s4245_s17 + $0x48] sm:$0xff] }
  0x8b   : > { %3170 = vmatprep.mubr.bf16.mxu0 %v3952_v18  ;;  %3010 = vmatprep.mubr.bf16.mxu1 %v3828_v34  ;;  %v2023_v46 = vrot.slane %v2021_v61, 1 }
  0x8c   : > { %v1517_v35 = vor.u32 %v1516_v36, %v1512_v31  ;;  %v2390_v31 = vld [vmem:[%s4245_s17 + $0x68] sm:$0xff] }
  0x8d   : > { %3185 = vmatpush3.bf16.msra.mxu0 %v3481_v42  ;;  %3025 = vmatpush3.bf16.msra.mxu1 %v3482_v44  ;;  %v2024_v12 = vsel %vm745_vm1, %v2019_v7, %v2023_v46  ;;  %v2381_v42 = vld [vmem:[%s4245_s17 + $0x20] sm:$0xff]  ;;  %v2382_v44 = vld [vmem:[%s4245_s17 + $0x28] sm:$0xff] }
  0x8e   : > { %3186 = vmatprep.subr.bf16.mxu0 %v3483_v45  ;;  %3026 = vmatprep.subr.bf16.mxu1 %v3484_v47  ;;  %v4171_v2 = vsel %vm745_vm1, %v1517_v35, %v1521_v54 }
  0x90   : > { %3171 = vmatmul.mubr.bf16.gmra.mrb[4].mxu0 %v4006_v24  ;;  %3011 = vmatmul.mubr.bf16.gmra.mrb[4].mxu1 %v3865_v11 }
  0x91   : > { %3187 = vmatpush3.bf16.msra.mxu0 %v3483_v45  ;;  %3027 = vmatpush3.bf16.msra.mxu1 %v3484_v47  ;;  %v2384_v45 = vld [vmem:[%s4245_s17 + $0x38] sm:$0xff]  ;;  %v2385_v47 = vld [vmem:[%s4245_s17 + $0x40] sm:$0xff] }
  0x92   : > { %3188 = vmatprep.subr.bf16.mxu0 %v3485_v50  ;;  %3028 = vmatprep.subr.bf16.mxu1 %v3486_v26  ;;  %v2397_v16 = vpack.c.bf16 %v2386_v53, %v2385_v47 }
  0x93   : > { %3174 = vmatprep.mubr.bf16.mxu0 %v4023_v10  ;;  %3014 = vmatprep.mubr.bf16.mxu1 %v3897_v6 }
  0x95   : > { %3189 = vmatpush3.bf16.msra.mxu0 %v3485_v50  ;;  %3029 = vmatpush3.bf16.msra.mxu1 %v3486_v26  ;;  %v2387_v50 = vld [vmem:[%s4245_s17 + $0x50] sm:$0xff]  ;;  %v2388_v26 = vld [vmem:[%s4245_s17 + $0x58] sm:$0xff] }
  0x96   : > { %3190 = vmatprep.subr.bf16.mxu0 %v3487_v55  ;;  %3030 = vmatprep.subr.bf16.mxu1 %v3488_v21  ;;  %v2398_v36 = vpack.c.bf16 %v2388_v26, %v2387_v50 }
  0x98   : > { %3175 = vmatmul.mubr.bf16.gmra.mrb[8].mxu0 %v4047_v32  ;;  %3015 = vmatmul.mubr.bf16.gmra.mrb[8].mxu1 %v3996_v37 }
  0x99   : > { %3191 = vmatpush3.bf16.msra.mxu0 %v3487_v55  ;;  %3031 = vmatpush3.bf16.msra.mxu1 %v3488_v21 }
  0x9a   : > { %3192 = vmatprep.subr.bf16.mxu0 %v3489_v62  ;;  %3032 = vmatprep.subr.bf16.mxu1 %v3490_v1 }
  0x9b   : > { %3178 = vmatprep.mubr.bf16.mxu0 %v4171_v2  ;;  %3018 = vmatprep.mubr.bf16.mxu1 %v4003_v51 }
  0x9d   : > { %3193 = vmatpush3.bf16.msra.mxu0 %v3489_v62  ;;  %3033 = vmatpush3.bf16.msra.mxu1 %v3490_v1 }
  0x9e   : > { %3194 = vmatprep.subr.bf16.mxu0 %v3491_v3  ;;  %3034 = vmatprep.subr.bf16.mxu1 %v3492_v33 }
  0xa0   : > { %3179 = vmatmul.mubr.bf16.gmra.mrb[12].mxu0 %v2024_v12  ;;  %3019 = vmatmul.mubr.bf16.gmra.mrb[12].mxu1 %v4035_v39 }
  0xa1   : > { %3195 = vmatpush3.bf16.msra.mxu0 %v3491_v3  ;;  %3035 = vmatpush3.bf16.msra.mxu1 %v3492_v33 }
  0xa2   : > { %3196 = vmatprep.subr.bf16.mxu0 %v3493_v13  ;;  %3036 = vmatprep.subr.bf16.mxu1 %v3494_v14 }
  0xa3   : > { %3198 = vmatprep.mubr.bf16.mxu0 %v3828_v34  ;;  %3038 = vmatprep.mubr.bf16.mxu1 %v3795_v57  ;;  %v3499_v57 = vld [vmem:[%s4361_s6 + $0x10] sm:$0xff]  }
  0xa4   : > { %v3500_v34 = vld [vmem:[%s4356_s1 + $0x110] sm:$0xff]  }
  0xa5   : > { %3197 = vmatpush3.bf16.msra.mxu0 %v3493_v13  ;;  %3037 = vmatpush3.bf16.msra.mxu1 %v3494_v14 }
  0xa6   : > { %3214 = vmatprep.subr.bf16.mxu0 %v3495_v52  ;;  %3054 = vmatprep.subr.bf16.mxu1 %v3496_v22 }
  0xa8   : > { %3199 = vmatmul.mubr.bf16.vlgmr.msra.gmra.mrb[0].mxu0 %v3865_v11  ;;  %3039 = vmatmul.mubr.bf16.vlgmr.msra.gmra.mrb[0].mxu1 %v3805_v9  ;;  %v3501_v9 = vld [vmem:[%s4361_s6 + $0x18] sm:$0xff]  }
  0xa9   : > { %3215 = vmatpush3.bf16.msra.mxu0 %v3495_v52  ;;  %3055 = vmatpush3.bf16.msra.mxu1 %v3496_v22  ;;  %v3502_v11 = vld [vmem:[%s4356_s1 + $0x118] sm:$0xff]  }
  0xaa   : > { %3216 = vmatprep.subr.bf16.mxu0 %v3497_v0  ;;  %3056 = vmatprep.subr.bf16.mxu1 %v3498_v8 }
  0xab   : > { %3202 = vmatprep.mubr.bf16.mxu0 %v3897_v6  ;;  %3042 = vmatprep.mubr.bf16.mxu1 %v3844_v19  ;;  %v3503_v19 = vld [vmem:[%s4361_s6 + $0x20] sm:$0xff]  }
  0xac   : > { %v3504_v6 = vld [vmem:[%s4356_s1 + $0x120] sm:$0xff]  }
  0xad   : > { %3217 = vmatpush3.bf16.msra.mxu0 %v3497_v0  ;;  %3057 = vmatpush3.bf16.msra.mxu1 %v3498_v8 }
  0xae   : > { %3218 = vmatprep.subr.bf16.mxu0 %v3499_v57  ;;  %3058 = vmatprep.subr.bf16.mxu1 %v3500_v34 }
  0xb0   : > { %3203 = vmatmul.mubr.bf16.gmra.mrb[4].mxu0 %v3996_v37  ;;  %3043 = vmatmul.mubr.bf16.gmra.mrb[4].mxu1 %v3861_v30  ;;  %v3505_v30 = vld [vmem:[%s4361_s6 + $0x28] sm:$0xff]  }
  0xb1   : > { %3219 = vmatpush3.bf16.msra.mxu0 %v3499_v57  ;;  %3059 = vmatpush3.bf16.msra.mxu1 %v3500_v34  ;;  %v3506_v37 = vld [vmem:[%s4356_s1 + $0x128] sm:$0xff]  }
  0xb2   : > { %3220 = vmatprep.subr.bf16.mxu0 %v3501_v9  ;;  %3060 = vmatprep.subr.bf16.mxu1 %v3502_v11 }
  0xb3   : > { %3206 = vmatprep.mubr.bf16.mxu0 %v4003_v51  ;;  %3046 = vmatprep.mubr.bf16.mxu1 %v3981_v4  ;;  %v2189_v4 = vrot.slane %v4104_v60, 1  ;;  %v2190_v51 = vrot.slane %v4149_v25, 1  ;;  %v2377_v60 = vld [vmem:[%s4245_s17] sm:$0xff]  ;;  %v2392_v25 = vld [vmem:[%s4245_s17 + $0x78] sm:$0xff] }
  0xb5   : > { %3221 = vmatpush3.bf16.msra.mxu0 %v3501_v9  ;;  %3061 = vmatpush3.bf16.msra.mxu1 %v3502_v11  ;;  %v2191_v28 = vsel %vm1156_vm0, %v2189_v4, %v2190_v51 }
  0xb6   : > { %3222 = vmatprep.subr.bf16.mxu0 %v3503_v19  ;;  %3062 = vmatprep.subr.bf16.mxu1 %v3504_v6 }
  0xb8   : > { %3207 = vmatmul.mubr.bf16.gmra.mrb[8].mxu0 %v4035_v39  ;;  %3047 = vmatmul.mubr.bf16.gmra.mrb[8].mxu1 %v3987_v23  ;;  %v3507_v23 = vld [vmem:[%s4361_s6 + $0x30] sm:$0xff]  }
  0xb9   : > { %3223 = vmatpush3.bf16.msra.mxu0 %v3503_v19  ;;  %3063 = vmatpush3.bf16.msra.mxu1 %v3504_v6  ;;  %v3508_v39 = vld [vmem:[%s4356_s1 + $0x130] sm:$0xff]  }
  0xba   : > { %3224 = vmatprep.subr.bf16.mxu0 %v3505_v30  ;;  %3064 = vmatprep.subr.bf16.mxu1 %v3506_v37 }
  0xbb   : > { %3210 = vmatprep.mubr.bf16.mxu0 %v4044_v48  ;;  %3050 = vmatprep.mubr.bf16.mxu1 %v4012_v58  ;;  %v3510_v48 = vld [vmem:[%s4356_s1 + $0x138] sm:$0xff]   ;;  %v2393_v58 = vpack.c.bf16 %v2378_v29, %v2377_v60 }
  0xbd   : > { %3225 = vmatpush3.bf16.msra.mxu0 %v3505_v30  ;;  %3065 = vmatpush3.bf16.msra.mxu1 %v3506_v37 }
  0xbe   : > { %3226 = vmatprep.subr.bf16.mxu0 %v3507_v23  ;;  %3066 = vmatprep.subr.bf16.mxu1 %v3508_v39 }
  0xc0   : > { %3211 = vmatmul.mubr.bf16.gmra.mrb[12].mxu0 %v2191_v28  ;;  %3051 = vmatmul.mubr.bf16.gmra.mrb[12].mxu1 %v4020_v56  ;;  %v2395_v56 = vpack.c.bf16 %v2382_v44, %v2381_v42 }
  0xc1   : > { %3227 = vmatpush3.bf16.msra.mxu0 %v3507_v23  ;;  %3067 = vmatpush3.bf16.msra.mxu1 %v3508_v39 }
  0xc2   : > { %3228 = vmatprep.subr.bf16.mxu0 %v3509_v40  ;;  %3068 = vmatprep.subr.bf16.mxu1 %v3510_v48 }
  0xc3   : > { %3230 = vmatprep.mubr.bf16.mxu0 %v2393_v58  ;;  %3070 = vmatprep.mubr.bf16.mxu1 %v3838_v49  ;;  %v2396_v49 = vpack.c.bf16 %v2384_v45, %v2383_v5 }
  0xc5   : > { %3229 = vmatpush3.bf16.msra.mxu0 %v3509_v40  ;;  %3069 = vmatpush3.bf16.msra.mxu1 %v3510_v48 }
  0xc8   : > { %3231 = vmatmul.mubr.bf16.vlgmr.msra.gmra.mrb[0].mxu0 %v2394_v38  ;;  %3071 = vmatmul.mubr.bf16.vlgmr.msra.gmra.mrb[0].mxu1 %v3887_v27  ;;  %v2389_v27 = vld [vmem:[%s4245_s17 + $0x60] sm:$0xff] }
  0xc9   : > { %3234 = vmatprep.mubr.bf16.mxu0 %v2395_v56  ;;  %3074 = vmatprep.mubr.bf16.mxu1 %v3911_v43  ;;  %v2399_v17 = vpack.c.bf16 %v2390_v31, %v2389_v27  ;;  %v2391_v43 = vld [vmem:[%s4245_s17 + $0x70] sm:$0xff] }
  0xca   : > { %v2400_v59 = vpack.c.bf16 %v2392_v25, %v2391_v43 }
  0xd0   : > { %3235 = vmatmul.mubr.bf16.gmra.mrb[4].mxu0 %v2396_v49  ;;  %3075 = vmatmul.mubr.bf16.gmra.mrb[4].mxu1 %v3952_v18  ;;  %v4290_v18 = vld [vmem:[%s4357_s2] ss:$0 sm:$0xff] }
  0xd1   : > { %3238 = vmatprep.mubr.bf16.mxu0 %v2397_v16  ;;  %3078 = vmatprep.mubr.bf16.mxu1 %v4006_v24 }
  0xd8   : > { %3239 = vmatmul.mubr.bf16.gmra.mrb[8].mxu0 %v2398_v36  ;;  %3079 = vmatmul.mubr.bf16.gmra.mrb[8].mxu1 %v4023_v10 }
  0xd9   : > { %3242 = vmatprep.mubr.bf16.mxu0 %v2399_v17  ;;  %3082 = vmatprep.mubr.bf16.mxu1 %v4047_v32  ;;  %v4296_v32 = vld [vmem:[%s4362_s7] ss:$0 sm:$0xff] }
  0xe0   : > { %3243 = vmatmul.mubr.bf16.gmra.mrb[12].mxu0 %v2400_v59  ;;  %3083 = vmatmul.mubr.bf16.gmra.mrb[12].mxu1 %v4171_v2 }
 0x19b   : > { %v3232_v24 = vpop.f32.mrb[0].mxu0  ;;  %v3072_v55 = vpop.f32.mrb[0].mxu1 }
 0x19c   : > { %v2506_v21 = vpop.f32.mrb[1].mxu0  ;;  %v3246_v10 = vadd.f32 %v3072_v55, %v4290_v18  ;;  %v1606_v35 = vpop.f32.mrb[1].mxu1 }
 0x19d   : > { %v3233_v54 = vpop.f32.mrb[2].mxu0  ;;  %v3249_v41 = vadd.f32 %v4290_v18, %v1606_v35  ;;  %v3073_v63 = vpop.f32.mrb[2].mxu1 }
 0x19e   : > { %v2509_v61 = vpop.f32.mrb[3].mxu0  ;;  %v3247_v62 = vadd.f32 %v3246_v10, %v3232_v24  ;;  %v3252_v1 = vadd.f32 %v3073_v63, %v4290_v18  ;;  %v1609_v2 = vpop.f32.mrb[3].mxu1 }
 0x19f   : > { %v3250_v7 = vadd.f32 %v3249_v41, %v2506_v21  ;;  %v3255_v46 = vadd.f32 %v4290_v18, %v1609_v2 }
 0x1a0   : > { %v3248_v3 = vadd.f32 %v3247_v62, %v4296_v32  ;;  %v3253_v33 = vadd.f32 %v3252_v1, %v4296_v32 }
 0x1a1   : > { %v3251_v12 = vadd.f32 %v3250_v7, %v4296_v32  ;;  %v3256_v13 = vadd.f32 %v3255_v46, %v4296_v32 }
 0x1a2   : > { %2587 = vst [vmem:[%s4305_s12 + $0x10] sm:$0xff] %v3248_v3  ;;  %v3254_v14 = vadd.f32 %v3253_v33, %v3233_v54 }
 0x1a3   : > { %2585 = vst [vmem:[%s4305_s12] sm:$0xff] %v3251_v12  ;;  %v3257_v52 = vadd.f32 %v3256_v13, %v2509_v61  ;;  %v3236_v22 = vpop.f32.mrb[4].mxu0  ;;  %v3076_v0 = vpop.f32.mrb[4].mxu1 }
 0x1a4   : > { %2588 = vst [vmem:[%s4305_s12 + $0x18] sm:$0xff] %v3254_v14  ;;  %v2522_v8 = vpop.f32.mrb[5].mxu0  ;;  %v3258_v57 = vadd.f32 %v3076_v0, %v4290_v18  ;;  %v1622_v34 = vpop.f32.mrb[5].mxu1 }
 0x1a5   : > { %2586 = vst [vmem:[%s4305_s12 + $0x8] sm:$0xff] %v3257_v52  ;;  %v3237_v9 = vpop.f32.mrb[6].mxu0  ;;  %v3261_v11 = vadd.f32 %v4290_v18, %v1622_v34  ;;  %v3077_v19 = vpop.f32.mrb[6].mxu1 }
 0x1a6   : > { %v2525_v6 = vpop.f32.mrb[7].mxu0  ;;  %v3259_v30 = vadd.f32 %v3258_v57, %v4296_v32  ;;  %v3264_v37 = vadd.f32 %v3077_v19, %v4290_v18  ;;  %v1625_v4 = vpop.f32.mrb[7].mxu1 }
 0x1a7   : > { %v3262_v51 = vadd.f32 %v3261_v11, %v4296_v32  ;;  %v3267_v23 = vadd.f32 %v4290_v18, %v1625_v4 }
 0x1a8   : > { %v3260_v39 = vadd.f32 %v3259_v30, %v3236_v22  ;;  %v3265_v60 = vadd.f32 %v3264_v37, %v4296_v32 }
 0x1a9   : > { %v3263_v29 = vadd.f32 %v3262_v51, %v2522_v8  ;;  %v3268_v28 = vadd.f32 %v3267_v23, %v4296_v32 }
 0x1aa   : > { %2591 = vst [vmem:[%s4305_s12 + $0x30] sm:$0xff] %v3260_v39  ;;  %v3266_v40 = vadd.f32 %v3265_v60, %v3237_v9 }
 0x1ab   : > { %2589 = vst [vmem:[%s4305_s12 + $0x20] sm:$0xff] %v3263_v29  ;;  %v3269_v48 = vadd.f32 %v3268_v28, %v2525_v6  ;;  %v3240_v58 = vpop.f32.mrb[8].mxu0  ;;  %v3080_v15 = vpop.f32.mrb[8].mxu1 }
 0x1ac   : > { %2592 = vst [vmem:[%s4305_s12 + $0x38] sm:$0xff] %v3266_v40  ;;  %v2538_v20 = vpop.f32.mrb[9].mxu0  ;;  %v3270_v42 = vadd.f32 %v3080_v15, %v4290_v18  ;;  %v1638_v44 = vpop.f32.mrb[9].mxu1 }
 0x1ad   : > { %2590 = vst [vmem:[%s4305_s12 + $0x28] sm:$0xff] %v3269_v48  ;;  %v3241_v38 = vpop.f32.mrb[10].mxu0  ;;  %v3273_v56 = vadd.f32 %v4290_v18, %v1638_v44  ;;  %v3081_v5 = vpop.f32.mrb[10].mxu1 }
 0x1ae   : > { %v2541_v45 = vpop.f32.mrb[11].mxu0  ;;  %v3271_v47 = vadd.f32 %v3270_v42, %v4296_v32  ;;  %v3276_v53 = vadd.f32 %v3081_v5, %v4290_v18  ;;  %v1641_v49 = vpop.f32.mrb[11].mxu1 }
 0x1af   : > { %v3274_v16 = vadd.f32 %v3273_v56, %v4296_v32  ;;  %v3279_v50 = vadd.f32 %v4290_v18, %v1641_v49 }
 0x1b0   : > { %v3272_v26 = vadd.f32 %v3271_v47, %v3240_v58  ;;  %v3277_v27 = vadd.f32 %v3276_v53, %v4296_v32 }
 0x1b1   : > { %v3275_v31 = vadd.f32 %v3274_v16, %v2538_v20  ;;  %v3280_v36 = vadd.f32 %v3279_v50, %v4296_v32 }
 0x1b2   : > { %2595 = vst [vmem:[%s4305_s12 + $0x50] sm:$0xff] %v3272_v26  ;;  %v3278_v17 = vadd.f32 %v3277_v27, %v3241_v38 }
 0x1b3   : > { %2593 = vst [vmem:[%s4305_s12 + $0x40] sm:$0xff] %v3275_v31  ;;  %v3281_v43 = vadd.f32 %v3280_v36, %v2541_v45  ;;  %v3244_v25 = vpop.f32.mrb[12].mxu0  ;;  %v3084_v59 = vpop.f32.mrb[12].mxu1 }
 0x1b4   : > { %2596 = vst [vmem:[%s4305_s12 + $0x58] sm:$0xff] %v3278_v17  ;;  %v2554_v24 = vpop.f32.mrb[13].mxu0  ;;  %v3282_v55 = vadd.f32 %v3084_v59, %v4290_v18  ;;  %v1654_v21 = vpop.f32.mrb[13].mxu1 }
 0x1b5   : > { %2594 = vst [vmem:[%s4305_s12 + $0x48] sm:$0xff] %v3281_v43  ;;  %v3245_v10 = vpop.f32.mrb[14].mxu0  ;;  %v3285_v35 = vadd.f32 %v4290_v18, %v1654_v21  ;;  %v3085_v54 = vpop.f32.mrb[14].mxu1 }
 0x1b6   : > { %v2557_v41 = vpop.f32.mrb[15].mxu0  ;;  %v3283_v63 = vadd.f32 %v3282_v55, %v4296_v32  ;;  %v3288_v61 = vadd.f32 %v3085_v54, %v4290_v18  ;;  %v1657_v62 = vpop.f32.mrb[15].mxu1 }
 0x1b7   : > { %v3286_v1 = vadd.f32 %v3285_v35, %v4296_v32  ;;  %v3291_v2 = vadd.f32 %v4290_v18, %v1657_v62 }
 0x1b8   : > { %v3284_v7 = vadd.f32 %v3283_v63, %v3244_v25  ;;  %v3289_v46 = vadd.f32 %v3288_v61, %v4296_v32 }
 0x1b9   : > { %v3287_v3 = vadd.f32 %v3286_v1, %v2554_v24  ;;  %v3292_v33 = vadd.f32 %v3291_v2, %v4296_v32 }
 0x1ba   : > { %2599 = vst [vmem:[%s4305_s12 + $0x70] sm:$0xff] %v3284_v7  ;;  %v3290_v12 = vadd.f32 %v3289_v46, %v3245_v10 }
 0x1bb   : > { %2597 = vst [vmem:[%s4305_s12 + $0x60] sm:$0xff] %v3287_v3  ;;  %v3293_v13 = vadd.f32 %v3292_v33, %v2557_v41 }
 0x1bc   : > { %2600 = vst [vmem:[%s4305_s12 + $0x78] sm:$0xff] %v3290_v12 }
 0x1bd   : > { %2598 = vst [vmem:[%s4305_s12 + $0x68] sm:$0xff] %v3293_v13 }
 0x1be PF: > { %s18_s27 = sadd.s32 1, %s3579_s27  }
 0x1bf   : > { %p15_p4 = scmp.ge.s32.totalorder %s18_s27, 6  }
 0x1c1   :  { %17 = sbr.rel (!%p15_p4) target bundleno = 1 (0x1), region = 85 }

</bundles_post_ra>
